<compile_context>
chip_gen: v5e
topology: v5e:2x2
jax: 0.10.0
libtpu: 0.0.40
codegen_flags: <defaults>
</compile_context>

<pallas_src>
import functools

import jax
import jax.numpy as jnp
from jax.experimental import pallas as pl
from jax.experimental.pallas import tpu as pltpu  # noqa: F401  (TPU backend assumed)

# ---- model dimensions (small-shape stand-ins for bert-base) ----------------
B = 2                      # batch
S = 8                      # sequence length
H = 128                    # hidden size (stand-in for BERT_HIDDEN_SIZE=768)
NUM_HEADS = 2
DH = H // NUM_HEADS        # head dim
FFN = 4 * H                # intermediate size
LAYERS = 2                 # encoder layers
VOCAB = 64
N_SENTIMENT_CLASSES = 5
LN_EPS = 1e-12
HEAD_PAD = 128             # lane-dense padded width for tiny classifier heads


# =============================== in-kernel math ==============================

def _ln_math(x, gamma, beta):
    """LayerNorm over the last axis (f32 math). gamma/beta are [1, H]."""
    mu = jnp.mean(x, axis=-1, keepdims=True)
    var = jnp.mean((x - mu) ** 2, axis=-1, keepdims=True)
    return (x - mu) * jax.lax.rsqrt(var + LN_EPS) * gamma + beta


# =============================== Pallas kernels ==============================

def _encoder_layer_kernel(Bb, Ss,
                          x_ref, amask_ref,
                          wqkv_ref, bqkv_ref, wo_ref, bo_ref,
                          ln1g_ref, ln1b_ref,
                          w1_ref, b1_ref, w2_ref, b2_ref,
                          ln2g_ref, ln2b_ref,
                          o_ref):
    """One full transformer encoder layer, fused.

    x_ref:     [Bb*Ss, H]   activations
    amask_ref: [Bb, Ss]     raw attention mask (1.0 = keep, 0.0 = pad)
    """
    x = x_ref[...]                                                     # [M, H]

    # ---- fused QKV projection (single MXU pass, N = 3H) ----
    qkv = jnp.dot(x, wqkv_ref[...], preferred_element_type=jnp.float32)
    qkv = qkv + bqkv_ref[...]                                          # [M, 3H]

    # ---- additive key mask computed in-kernel from the raw [Bb, Ss] mask ----
    add_mask = (1.0 - amask_ref[...]) * -10000.0                       # [Bb, Ss]

    scale = 1.0 / (float(DH) ** 0.5)

    # ---- scaled-dot-product attention, all batches/heads, fully unrolled ----
    batch_rows = []
    for b in range(Bb):
        r0 = b * Ss
        m_b = add_mask[b:b + 1, :]                                     # [1, Ss]
        head_outs = []
        for h in range(NUM_HEADS):
            c0 = h * DH
            qb = qkv[r0:r0 + Ss, c0:c0 + DH]                           # [Ss, DH]
            kb = qkv[r0:r0 + Ss, H + c0:H + c0 + DH]                   # [Ss, DH]
            vb = qkv[r0:r0 + Ss, 2 * H + c0:2 * H + c0 + DH]           # [Ss, DH]
            s = jnp.dot(qb, kb.T, preferred_element_type=jnp.float32) * scale
            s = s + m_b                                                # broadcast over rows
            s = s - jnp.max(s, axis=-1, keepdims=True)
            p = jnp.exp(s)
            p = p / jnp.sum(p, axis=-1, keepdims=True)
            head_outs.append(jnp.dot(p, vb, preferred_element_type=jnp.float32))
        batch_rows.append(jnp.concatenate(head_outs, axis=-1))         # [Ss, H]
    ctx = jnp.concatenate(batch_rows, axis=0)                          # [M, H]

    # ---- output projection + residual + LN1 ----
    attn = jnp.dot(ctx, wo_ref[...], preferred_element_type=jnp.float32) + bo_ref[...]
    x1 = _ln_math(x + attn, ln1g_ref[...], ln1b_ref[...])

    # ---- FFN (up + GELU, down) + residual + LN2 ----
    # TODO(synk): PyTorch BERT uses exact erf GELU; tanh approximation used here
    #             for a guaranteed Mosaic lowering (small numeric drift).
    ff = jnp.dot(x1, w1_ref[...], preferred_element_type=jnp.float32) + b1_ref[...]
    ff = jax.nn.gelu(ff, approximate=True)
    ff2 = jnp.dot(ff, w2_ref[...], preferred_element_type=jnp.float32) + b2_ref[...]
    o_ref[...] = _ln_math(x1 + ff2, ln2g_ref[...], ln2b_ref[...]).astype(o_ref.dtype)


def encoder_layer(x, amask, lyr, Bb, Ss):
    """x: [Bb*Ss, H], amask: [Bb, Ss] float32 -> [Bb*Ss, H]."""
    M = Bb * Ss
    return pl.pallas_call(
        functools.partial(_encoder_layer_kernel, Bb, Ss),
        out_shape=jax.ShapeDtypeStruct((M, H), x.dtype),
    )(x, amask,
      lyr["wqkv"], lyr["bqkv"], lyr["wo"], lyr["bo"],
      lyr["ln1_g"], lyr["ln1_b"],
      lyr["w1"], lyr["b1"], lyr["w2"], lyr["b2"],
      lyr["ln2_g"], lyr["ln2_b"])


def _layernorm_kernel(x_ref, g_ref, b_ref, o_ref):
    o_ref[...] = _ln_math(x_ref[...], g_ref[...], b_ref[...]).astype(o_ref.dtype)


def layernorm(x, g2d, b2d):
    """x: [M, H]; g2d/b2d: [1, H]."""
    M, Hd = x.shape
    return pl.pallas_call(
        _layernorm_kernel,
        out_shape=jax.ShapeDtypeStruct((M, Hd), x.dtype),
    )(x, g2d, b2d)


def _linear_kernel(act, x_ref, w_ref, b_ref, o_ref):
    y = jnp.dot(x_ref[...], w_ref[...], preferred_element_type=jnp.float32)
    y = y + b_ref[...]
    if act == "tanh":
        y = jnp.tanh(y)
    o_ref[...] = y.astype(o_ref.dtype)


def linear(x, w, b2d, act="none"):
    """x: [M, K] @ w: [K, N] + b2d: [1, N] -> [M, N].  N must be lane-dense
    (multiple of 128); tiny heads are pre-padded at init and sliced outside."""
    M, K = x.shape
    N = w.shape[1]
    return pl.pallas_call(
        functools.partial(_linear_kernel, act),
        out_shape=jax.ShapeDtypeStruct((M, N), x.dtype),
    )(x, w, b2d)


# ============================ parameter construction =========================

def init_params(key):
    def nrm(k, shape):
        return jax.random.normal(k, shape, jnp.float32) * 0.02

    keys = iter(jax.random.split(key, 64))
    p = {
        "word_emb": nrm(next(keys), (VOCAB, H)),
        "pos_emb": nrm(next(keys), (S, H)),
        "type_emb": nrm(next(keys), (2, H)),
        "emb_ln_g": jnp.ones((1, H), jnp.float32),
        "emb_ln_b": jnp.zeros((1, H), jnp.float32),
        "layers": [],
    }
    for _ in range(LAYERS):
        wq = nrm(next(keys), (H, H))
        wk = nrm(next(keys), (H, H))
        wv = nrm(next(keys), (H, H))
        p["layers"].append({
            # fused QKV weights (single [H, 3H] matmul per layer)
            "wqkv": jnp.concatenate([wq, wk, wv], axis=1),
            "bqkv": jnp.zeros((1, 3 * H), jnp.float32),
            "wo": nrm(next(keys), (H, H)), "bo": jnp.zeros((1, H), jnp.float32),
            "ln1_g": jnp.ones((1, H), jnp.float32), "ln1_b": jnp.zeros((1, H), jnp.float32),
            "w1": nrm(next(keys), (H, FFN)), "b1": jnp.zeros((1, FFN), jnp.float32),
            "w2": nrm(next(keys), (FFN, H)), "b2": jnp.zeros((1, H), jnp.float32),
            "ln2_g": jnp.ones((1, H), jnp.float32), "ln2_b": jnp.zeros((1, H), jnp.float32),
        })
    p["pooler_w"] = nrm(next(keys), (H, H))
    p["pooler_b"] = jnp.zeros((1, H), jnp.float32)

    # MultitaskBERT heads, pre-padded to a lane-dense 128-wide output block.
    def padded_head(k, in_dim, out_dim):
        w = nrm(k, (in_dim, out_dim))
        w = jnp.pad(w, ((0, 0), (0, HEAD_PAD - out_dim)))
        b = jnp.zeros((1, HEAD_PAD), jnp.float32)
        return w, b

    p["sent_w"], p["sent_b"] = padded_head(next(keys), H, N_SENTIMENT_CLASSES)
    p["para_w"], p["para_b"] = padded_head(next(keys), 2 * H, 1)
    p["sim_w"], p["sim_b"] = padded_head(next(keys), 2 * H, 1)
    return p


# ================================ model forward ==============================

def bert_forward(params, input_ids, attention_mask):
    Bb, Ss = input_ids.shape
    # embeddings (gather is plain-JAX glue)
    x = (jnp.take(params["word_emb"], input_ids, axis=0)
         + params["pos_emb"][None, :Ss, :]
         + params["type_emb"][0][None, None, :])
    # TODO(synk): token_type_ids hard-coded to segment 0 (single-sentence inputs).
    x = layernorm(x.reshape(Bb * Ss, H), params["emb_ln_g"], params["emb_ln_b"])

    amask = attention_mask.astype(jnp.float32)          # raw [Bb, Ss] mask
    for lyr in params["layers"]:
        x = encoder_layer(x, amask, lyr, Bb, Ss)        # one fused kernel/layer

    cls = x.reshape(Bb, Ss, H)[:, 0, :]                 # [Bb, H]
    pooled = linear(cls, params["pooler_w"], params["pooler_b"], act="tanh")
    return pooled                                       # 'pooler_output'


def forward(params, input_ids, attention_mask, simcse=False):
    pooled = bert_forward(params, input_ids, attention_mask)
    if simcse:
        # GaussianDropout is identity in eval mode -> two identical views.
        # TODO(synk): training-mode Gaussian noise (torch.randn_like * p) not replicated.
        return pooled, pooled
    return pooled


def predict_sentiment(params, input_ids, attention_mask):
    emb = forward(params, input_ids, attention_mask)    # nn.Dropout: identity in eval
    logits = linear(emb, params["sent_w"], params["sent_b"])
    return logits[:, :N_SENTIMENT_CLASSES]


def _encode_pair(params, ids1, mask1, ids2, mask2):
    # Batch both sentences into ONE encoder pass (halves launches, doubles M).
    ids = jnp.concatenate((ids1, ids2), axis=0)
    mask = jnp.concatenate((mask1, mask2), axis=0)
    pooled = forward(params, ids, mask)
    n = ids1.shape[0]
    return jnp.concatenate((pooled[:n], pooled[n:]), axis=1)   # [B, 2H]


def predict_paraphrase(params, ids1, mask1, ids2, mask2):
    emb = _encode_pair(params, ids1, mask1, ids2, mask2)
    return linear(emb, params["para_w"], params["para_b"])[:, :1]


def predict_similarity(params, ids1, mask1, ids2, mask2):
    emb = _encode_pair(params, ids1, mask1, ids2, mask2)
    return linear(emb, params["sim_w"], params["sim_b"])[:, :1]


# ==================================== main ===================================

if __name__ == "__main__":
    key = jax.random.PRNGKey(0)
    k_param, k_ids1, k_ids2 = jax.random.split(key, 3)

    params = init_params(k_param)

    input_ids_1 = jax.random.randint(k_ids1, (B, S), 0, VOCAB, dtype=jnp.int32)
    input_ids_2 = jax.random.randint(k_ids2, (B, S), 0, VOCAB, dtype=jnp.int32)
    attention_mask = jnp.ones((B, S), jnp.int32).at[1, S - 2:].set(0)  # pad tail of 2nd sent

    fwd = jax.jit(forward, static_argnames=("simcse",))
    sent_fn = jax.jit(predict_sentiment)
    para_fn = jax.jit(predict_paraphrase)
    sim_fn = jax.jit(predict_similarity)

    pooled = fwd(params, input_ids_1, attention_mask)                       # [B, H]
    pooled_a, pooled_b = fwd(params, input_ids_1, attention_mask, simcse=True)
    sent_logits = sent_fn(params, input_ids_1, attention_mask)              # [B, 5]
    para_logit = para_fn(params, input_ids_1, attention_mask,
                         input_ids_2, attention_mask)                       # [B, 1]
    sim_logit = sim_fn(params, input_ids_1, attention_mask,
                       input_ids_2, attention_mask)                         # [B, 1]

    jax.block_until_ready((pooled, pooled_a, pooled_b, sent_logits, para_logit, sim_logit))

    assert pooled.shape == (B, H)
    assert pooled_a.shape == (B, H) and pooled_b.shape == (B, H)
    assert sent_logits.shape == (B, N_SENTIMENT_CLASSES)
    assert para_logit.shape == (B, 1)
    assert sim_logit.shape == (B, 1)
    print("KERNEL_OK")
</pallas_src>

<mosaic_0001>
module attributes {stable_mosaic.version = 11 : i64} {
  func.func @_layernorm_kernel(%arg0: memref<16x128xf32, #tpu.memory_space<vmem>>, %arg1: memref<1x128xf32, #tpu.memory_space<vmem>>, %arg2: memref<1x128xf32, #tpu.memory_space<vmem>>, %arg3: memref<16x128xf32, #tpu.memory_space<vmem>>) attributes {dimension_semantics = [], scalar_prefetch = 0 : i64, scratch_operands = 0 : i64, tpu.core_type = #tpu.core_type<tc>} {
    %c0 = arith.constant 0 : index
    %c0_0 = arith.constant 0 : index
    %0 = vector.load %arg0[%c0, %c0_0] : memref<16x128xf32, #tpu.memory_space<vmem>>, vector<16x128xf32>
    %c0_1 = arith.constant 0 : index
    %c0_2 = arith.constant 0 : index
    %1 = vector.load %arg1[%c0_1, %c0_2] : memref<1x128xf32, #tpu.memory_space<vmem>>, vector<1x128xf32>
    %c0_3 = arith.constant 0 : index
    %c0_4 = arith.constant 0 : index
    %2 = vector.load %arg2[%c0_3, %c0_4] : memref<1x128xf32, #tpu.memory_space<vmem>>, vector<1x128xf32>
    %cst = arith.constant dense<0.000000e+00> : vector<16xf32>
    %3 = vector.multi_reduction <add>, %0, %cst [1] : vector<16x128xf32> to vector<16xf32>
    %4 = vector.shape_cast %3 : vector<16xf32> to vector<16x1xf32>
    %cst_5 = arith.constant 1.280000e+02 : f32
    %5 = vector.broadcast %cst_5 : f32 to vector<16x1xf32>
    %6 = arith.divf %4, %5 : vector<16x1xf32>
    %7 = vector.broadcast %6 : vector<16x1xf32> to vector<16x128xf32>
    %8 = arith.subf %0, %7 : vector<16x128xf32>
    %9 = arith.mulf %8, %8 : vector<16x128xf32>
    %cst_6 = arith.constant dense<0.000000e+00> : vector<16xf32>
    %10 = vector.multi_reduction <add>, %9, %cst_6 [1] : vector<16x128xf32> to vector<16xf32>
    %11 = vector.shape_cast %10 : vector<16xf32> to vector<16x1xf32>
    %cst_7 = arith.constant 1.280000e+02 : f32
    %12 = vector.broadcast %cst_7 : f32 to vector<16x1xf32>
    %13 = arith.divf %11, %12 : vector<16x1xf32>
    %14 = vector.broadcast %6 : vector<16x1xf32> to vector<16x128xf32>
    %15 = arith.subf %0, %14 : vector<16x128xf32>
    %cst_8 = arith.constant 9.99999996E-13 : f32
    %16 = vector.broadcast %cst_8 : f32 to vector<16x1xf32>
    %17 = arith.addf %13, %16 : vector<16x1xf32>
    %18 = math.rsqrt %17 : vector<16x1xf32>
    %19 = vector.broadcast %18 : vector<16x1xf32> to vector<16x128xf32>
    %20 = arith.mulf %15, %19 : vector<16x128xf32>
    %21 = vector.broadcast %1 : vector<1x128xf32> to vector<16x128xf32>
    %22 = arith.mulf %20, %21 : vector<16x128xf32>
    %23 = vector.broadcast %2 : vector<1x128xf32> to vector<16x128xf32>
    %24 = arith.addf %22, %23 : vector<16x128xf32>
    %c0_9 = arith.constant 0 : index
    %c0_10 = arith.constant 0 : index
    %25 = vector.load %arg3[%c0_9, %c0_10] : memref<16x128xf32, #tpu.memory_space<vmem>>, vector<16x128xf32>
    tpu.vector_store %arg3[%c0_9, %c0_10], %24 {strides = array<i32>} : memref<16x128xf32, #tpu.memory_space<vmem>>, vector<16x128xf32>,
    return
  }
}

module attributes {stable_mosaic.version = 11 : i64} {
  func.func @_encoder_layer_kernel(%arg0: memref<16x128xf32, #tpu.memory_space<vmem>>, %arg1: memref<2x8xf32, #tpu.memory_space<vmem>>, %arg2: memref<128x384xf32, #tpu.memory_space<vmem>>, %arg3: memref<1x384xf32, #tpu.memory_space<vmem>>, %arg4: memref<128x128xf32, #tpu.memory_space<vmem>>, %arg5: memref<1x128xf32, #tpu.memory_space<vmem>>, %arg6: memref<1x128xf32, #tpu.memory_space<vmem>>, %arg7: memref<1x128xf32, #tpu.memory_space<vmem>>, %arg8: memref<128x512xf32, #tpu.memory_space<vmem>>, %arg9: memref<1x512xf32, #tpu.memory_space<vmem>>, %arg10: memref<512x128xf32, #tpu.memory_space<vmem>>, %arg11: memref<1x128xf32, #tpu.memory_space<vmem>>, %arg12: memref<1x128xf32, #tpu.memory_space<vmem>>, %arg13: memref<1x128xf32, #tpu.memory_space<vmem>>, %arg14: memref<16x128xf32, #tpu.memory_space<vmem>>) attributes {dimension_semantics = [], scalar_prefetch = 0 : i64, scratch_operands = 0 : i64, tpu.core_type = #tpu.core_type<tc>} {
    %c0 = arith.constant 0 : index
    %c0_0 = arith.constant 0 : index
    %0 = vector.load %arg0[%c0, %c0_0] : memref<16x128xf32, #tpu.memory_space<vmem>>, vector<16x128xf32>
    %c0_1 = arith.constant 0 : index
    %c0_2 = arith.constant 0 : index
    %1 = vector.load %arg2[%c0_1, %c0_2] : memref<128x384xf32, #tpu.memory_space<vmem>>, vector<128x384xf32>
    %cst = arith.constant dense<0.000000e+00> : vector<16x384xf32>
    %2 = tpu.matmul %0, %1, %cst {dimension_numbers = #tpu.dot_dimension_numbers<[1], [0], [0], [1], [0, 0, 1, 1], [], []>} : vector<16x128xf32>, vector<128x384xf32>, vector<16x384xf32> -> vector<16x384xf32>
    %c0_3 = arith.constant 0 : index
    %c0_4 = arith.constant 0 : index
    %3 = vector.load %arg3[%c0_3, %c0_4] : memref<1x384xf32, #tpu.memory_space<vmem>>, vector<1x384xf32>
    %4 = vector.broadcast %3 : vector<1x384xf32> to vector<16x384xf32>
    %5 = arith.addf %2, %4 : vector<16x384xf32>
    %c0_5 = arith.constant 0 : index
    %c0_6 = arith.constant 0 : index
    %6 = vector.load %arg1[%c0_5, %c0_6] : memref<2x8xf32, #tpu.memory_space<vmem>>, vector<2x8xf32>
    %cst_7 = arith.constant 1.000000e+00 : f32
    %7 = vector.broadcast %cst_7 : f32 to vector<2x8xf32>
    %8 = arith.subf %7, %6 : vector<2x8xf32>
    %cst_8 = arith.constant -1.000000e+04 : f32
    %9 = vector.broadcast %cst_8 : f32 to vector<2x8xf32>
    %10 = arith.mulf %8, %9 : vector<2x8xf32>
    %11 = vector.extract_strided_slice %10 {offsets = [0, 0], sizes = [1, 8], strides = [1, 1]} : vector<2x8xf32> to vector<1x8xf32>
    %12 = vector.extract_strided_slice %5 {offsets = [0, 0], sizes = [8, 64], strides = [1, 1]} : vector<16x384xf32> to vector<8x64xf32>
    %13 = vector.extract_strided_slice %5 {offsets = [0, 128], sizes = [8, 64], strides = [1, 1]} : vector<16x384xf32> to vector<8x64xf32>
    %14 = vector.extract_strided_slice %5 {offsets = [0, 256], sizes = [8, 64], strides = [1, 1]} : vector<16x384xf32> to vector<8x64xf32>
    %15 = tpu.transpose %13, [1, 0] : vector<8x64xf32> -> vector<64x8xf32>
    %cst_9 = arith.constant dense<0.000000e+00> : vector<8x8xf32>
    %16 = tpu.matmul %12, %15, %cst_9 {dimension_numbers = #tpu.dot_dimension_numbers<[1], [0], [0], [1], [0, 0, 1, 1], [], []>} : vector<8x64xf32>, vector<64x8xf32>, vector<8x8xf32> -> vector<8x8xf32>
    %cst_10 = arith.constant 1.250000e-01 : f32
    %17 = vector.broadcast %cst_10 : f32 to vector<8x8xf32>
    %18 = arith.mulf %16, %17 : vector<8x8xf32>
    %19 = vector.broadcast %11 : vector<1x8xf32> to vector<8x8xf32>
    %20 = arith.addf %18, %19 : vector<8x8xf32>
    %cst_11 = arith.constant dense<0xFF800000> : vector<8xf32>
    %21 = vector.multi_reduction <maximumf>, %20, %cst_11 [1] : vector<8x8xf32> to vector<8xf32>
    %22 = vector.shape_cast %21 : vector<8xf32> to vector<8x1xf32>
    %23 = vector.broadcast %22 : vector<8x1xf32> to vector<8x8xf32>
    %24 = arith.subf %20, %23 : vector<8x8xf32>
    %25 = math.exp %24 : vector<8x8xf32>
    %cst_12 = arith.constant dense<0.000000e+00> : vector<8xf32>
    %26 = vector.multi_reduction <add>, %25, %cst_12 [1] : vector<8x8xf32> to vector<8xf32>
    %27 = vector.shape_cast %26 : vector<8xf32> to vector<8x1xf32>
    %28 = vector.broadcast %27 : vector<8x1xf32> to vector<8x8xf32>
    %29 = arith.divf %25, %28 : vector<8x8xf32>
    %cst_13 = arith.constant dense<0.000000e+00> : vector<8x64xf32>
    %30 = tpu.matmul %29, %14, %cst_13 {dimension_numbers = #tpu.dot_dimension_numbers<[1], [0], [0], [1], [0, 0, 1, 1], [], []>} : vector<8x8xf32>, vector<8x64xf32>, vector<8x64xf32> -> vector<8x64xf32>
    %31 = vector.extract_strided_slice %5 {offsets = [0, 64], sizes = [8, 64], strides = [1, 1]} : vector<16x384xf32> to vector<8x64xf32>
    %32 = vector.extract_strided_slice %5 {offsets = [0, 192], sizes = [8, 64], strides = [1, 1]} : vector<16x384xf32> to vector<8x64xf32>
    %33 = vector.extract_strided_slice %5 {offsets = [0, 320], sizes = [8, 64], strides = [1, 1]} : vector<16x384xf32> to vector<8x64xf32>
    %34 = tpu.transpose %32, [1, 0] : vector<8x64xf32> -> vector<64x8xf32>
    %cst_14 = arith.constant dense<0.000000e+00> : vector<8x8xf32>
    %35 = tpu.matmul %31, %34, %cst_14 {dimension_numbers = #tpu.dot_dimension_numbers<[1], [0], [0], [1], [0, 0, 1, 1], [], []>} : vector<8x64xf32>, vector<64x8xf32>, vector<8x8xf32> -> vector<8x8xf32>
    %cst_15 = arith.constant 1.250000e-01 : f32
    %36 = vector.broadcast %cst_15 : f32 to vector<8x8xf32>
    %37 = arith.mulf %35, %36 : vector<8x8xf32>
    %38 = vector.broadcast %11 : vector<1x8xf32> to vector<8x8xf32>
    %39 = arith.addf %37, %38 : vector<8x8xf32>
    %cst_16 = arith.constant dense<0xFF800000> : vector<8xf32>
    %40 = vector.multi_reduction <maximumf>, %39, %cst_16 [1] : vector<8x8xf32> to vector<8xf32>
    %41 = vector.shape_cast %40 : vector<8xf32> to vector<8x1xf32>
    %42 = vector.broadcast %41 : vector<8x1xf32> to vector<8x8xf32>
    %43 = arith.subf %39, %42 : vector<8x8xf32>
    %44 = math.exp %43 : vector<8x8xf32>
    %cst_17 = arith.constant dense<0.000000e+00> : vector<8xf32>
    %45 = vector.multi_reduction <add>, %44, %cst_17 [1] : vector<8x8xf32> to vector<8xf32>
    %46 = vector.shape_cast %45 : vector<8xf32> to vector<8x1xf32>
    %47 = vector.broadcast %46 : vector<8x1xf32> to vector<8x8xf32>
    %48 = arith.divf %44, %47 : vector<8x8xf32>
    %cst_18 = arith.constant dense<0.000000e+00> : vector<8x64xf32>
    %49 = tpu.matmul %48, %33, %cst_18 {dimension_numbers = #tpu.dot_dimension_numbers<[1], [0], [0], [1], [0, 0, 1, 1], [], []>} : vector<8x8xf32>, vector<8x64xf32>, vector<8x64xf32> -> vector<8x64xf32>
    %50 = tpu.concatenate %30, %49 in 1 : vector<8x64xf32>, vector<8x64xf32> -> vector<8x128xf32>
    %51 = vector.extract_strided_slice %10 {offsets = [1, 0], sizes = [1, 8], strides = [1, 1]} : vector<2x8xf32> to vector<1x8xf32>
    %52 = vector.extract_strided_slice %5 {offsets = [8, 0], sizes = [8, 64], strides = [1, 1]} : vector<16x384xf32> to vector<8x64xf32>
    %53 = vector.extract_strided_slice %5 {offsets = [8, 128], sizes = [8, 64], strides = [1, 1]} : vector<16x384xf32> to vector<8x64xf32>
    %54 = vector.extract_strided_slice %5 {offsets = [8, 256], sizes = [8, 64], strides = [1, 1]} : vector<16x384xf32> to vector<8x64xf32>
    %55 = tpu.transpose %53, [1, 0] : vector<8x64xf32> -> vector<64x8xf32>
    %cst_19 = arith.constant dense<0.000000e+00> : vector<8x8xf32>
    %56 = tpu.matmul %52, %55, %cst_19 {dimension_numbers = #tpu.dot_dimension_numbers<[1], [0], [0], [1], [0, 0, 1, 1], [], []>} : vector<8x64xf32>, vector<64x8xf32>, vector<8x8xf32> -> vector<8x8xf32>
    %cst_20 = arith.constant 1.250000e-01 : f32
    %57 = vector.broadcast %cst_20 : f32 to vector<8x8xf32>
    %58 = arith.mulf %56, %57 : vector<8x8xf32>
    %59 = vector.broadcast %51 : vector<1x8xf32> to vector<8x8xf32>
    %60 = arith.addf %58, %59 : vector<8x8xf32>
    %cst_21 = arith.constant dense<0xFF800000> : vector<8xf32>
    %61 = vector.multi_reduction <maximumf>, %60, %cst_21 [1] : vector<8x8xf32> to vector<8xf32>
    %62 = vector.shape_cast %61 : vector<8xf32> to vector<8x1xf32>
    %63 = vector.broadcast %62 : vector<8x1xf32> to vector<8x8xf32>
    %64 = arith.subf %60, %63 : vector<8x8xf32>
    %65 = math.exp %64 : vector<8x8xf32>
    %cst_22 = arith.constant dense<0.000000e+00> : vector<8xf32>
    %66 = vector.multi_reduction <add>, %65, %cst_22 [1] : vector<8x8xf32> to vector<8xf32>
    %67 = vector.shape_cast %66 : vector<8xf32> to vector<8x1xf32>
    %68 = vector.broadcast %67 : vector<8x1xf32> to vector<8x8xf32>
    %69 = arith.divf %65, %68 : vector<8x8xf32>
    %cst_23 = arith.constant dense<0.000000e+00> : vector<8x64xf32>
    %70 = tpu.matmul %69, %54, %cst_23 {dimension_numbers = #tpu.dot_dimension_numbers<[1], [0], [0], [1], [0, 0, 1, 1], [], []>} : vector<8x8xf32>, vector<8x64xf32>, vector<8x64xf32> -> vector<8x64xf32>
    %71 = vector.extract_strided_slice %5 {offsets = [8, 64], sizes = [8, 64], strides = [1, 1]} : vector<16x384xf32> to vector<8x64xf32>
    %72 = vector.extract_strided_slice %5 {offsets = [8, 192], sizes = [8, 64], strides = [1, 1]} : vector<16x384xf32> to vector<8x64xf32>
    %73 = vector.extract_strided_slice %5 {offsets = [8, 320], sizes = [8, 64], strides = [1, 1]} : vector<16x384xf32> to vector<8x64xf32>
    %74 = tpu.transpose %72, [1, 0] : vector<8x64xf32> -> vector<64x8xf32>
    %cst_24 = arith.constant dense<0.000000e+00> : vector<8x8xf32>
    %75 = tpu.matmul %71, %74, %cst_24 {dimension_numbers = #tpu.dot_dimension_numbers<[1], [0], [0], [1], [0, 0, 1, 1], [], []>} : vector<8x64xf32>, vector<64x8xf32>, vector<8x8xf32> -> vector<8x8xf32>
    %cst_25 = arith.constant 1.250000e-01 : f32
    %76 = vector.broadcast %cst_25 : f32 to vector<8x8xf32>
    %77 = arith.mulf %75, %76 : vector<8x8xf32>
    %78 = vector.broadcast %51 : vector<1x8xf32> to vector<8x8xf32>
    %79 = arith.addf %77, %78 : vector<8x8xf32>
    %cst_26 = arith.constant dense<0xFF800000> : vector<8xf32>
    %80 = vector.multi_reduction <maximumf>, %79, %cst_26 [1] : vector<8x8xf32> to vector<8xf32>
    %81 = vector.shape_cast %80 : vector<8xf32> to vector<8x1xf32>
    %82 = vector.broadcast %81 : vector<8x1xf32> to vector<8x8xf32>
    %83 = arith.subf %79, %82 : vector<8x8xf32>
    %84 = math.exp %83 : vector<8x8xf32>
    %cst_27 = arith.constant dense<0.000000e+00> : vector<8xf32>
    %85 = vector.multi_reduction <add>, %84, %cst_27 [1] : vector<8x8xf32> to vector<8xf32>
    %86 = vector.shape_cast %85 : vector<8xf32> to vector<8x1xf32>
    %87 = vector.broadcast %86 : vector<8x1xf32> to vector<8x8xf32>
    %88 = arith.divf %84, %87 : vector<8x8xf32>
    %cst_28 = arith.constant dense<0.000000e+00> : vector<8x64xf32>
    %89 = tpu.matmul %88, %73, %cst_28 {dimension_numbers = #tpu.dot_dimension_numbers<[1], [0], [0], [1], [0, 0, 1, 1], [], []>} : vector<8x8xf32>, vector<8x64xf32>, vector<8x64xf32> -> vector<8x64xf32>
    %90 = tpu.concatenate %70, %89 in 1 : vector<8x64xf32>, vector<8x64xf32> -> vector<8x128xf32>
    %91 = tpu.concatenate %50, %90 in 0 : vector<8x128xf32>, vector<8x128xf32> -> vector<16x128xf32>
    %c0_29 = arith.constant 0 : index
    %c0_30 = arith.constant 0 : index
    %92 = vector.load %arg4[%c0_29, %c0_30] : memref<128x128xf32, #tpu.memory_space<vmem>>, vector<128x128xf32>
    %cst_31 = arith.constant dense<0.000000e+00> : vector<16x128xf32>
    %93 = tpu.matmul %91, %92, %cst_31 {dimension_numbers = #tpu.dot_dimension_numbers<[1], [0], [0], [1], [0, 0, 1, 1], [], []>} : vector<16x128xf32>, vector<128x128xf32>, vector<16x128xf32> -> vector<16x128xf32>
    %c0_32 = arith.constant 0 : index
    %c0_33 = arith.constant 0 : index
    %94 = vector.load %arg5[%c0_32, %c0_33] : memref<1x128xf32, #tpu.memory_space<vmem>>, vector<1x128xf32>
    %95 = vector.broadcast %94 : vector<1x128xf32> to vector<16x128xf32>
    %96 = arith.addf %93, %95 : vector<16x128xf32>
    %97 = arith.addf %0, %96 : vector<16x128xf32>
    %c0_34 = arith.constant 0 : index
    %c0_35 = arith.constant 0 : index
    %98 = vector.load %arg6[%c0_34, %c0_35] : memref<1x128xf32, #tpu.memory_space<vmem>>, vector<1x128xf32>
    %c0_36 = arith.constant 0 : index
    %c0_37 = arith.constant 0 : index
    %99 = vector.load %arg7[%c0_36, %c0_37] : memref<1x128xf32, #tpu.memory_space<vmem>>, vector<1x128xf32>
    %cst_38 = arith.constant dense<0.000000e+00> : vector<16xf32>
    %100 = vector.multi_reduction <add>, %97, %cst_38 [1] : vector<16x128xf32> to vector<16xf32>
    %101 = vector.shape_cast %100 : vector<16xf32> to vector<16x1xf32>
    %cst_39 = arith.constant 1.280000e+02 : f32
    %102 = vector.broadcast %cst_39 : f32 to vector<16x1xf32>
    %103 = arith.divf %101, %102 : vector<16x1xf32>
    %104 = vector.broadcast %103 : vector<16x1xf32> to vector<16x128xf32>
    %105 = arith.subf %97, %104 : vector<16x128xf32>
    %106 = arith.mulf %105, %105 : vector<16x128xf32>
    %cst_40 = arith.constant dense<0.000000e+00> : vector<16xf32>
    %107 = vector.multi_reduction <add>, %106, %cst_40 [1] : vector<16x128xf32> to vector<16xf32>
    %108 = vector.shape_cast %107 : vector<16xf32> to vector<16x1xf32>
    %cst_41 = arith.constant 1.280000e+02 : f32
    %109 = vector.broadcast %cst_41 : f32 to vector<16x1xf32>
    %110 = arith.divf %108, %109 : vector<16x1xf32>
    %111 = vector.broadcast %103 : vector<16x1xf32> to vector<16x128xf32>
    %112 = arith.subf %97, %111 : vector<16x128xf32>
    %cst_42 = arith.constant 9.99999996E-13 : f32
    %113 = vector.broadcast %cst_42 : f32 to vector<16x1xf32>
    %114 = arith.addf %110, %113 : vector<16x1xf32>
    %115 = math.rsqrt %114 : vector<16x1xf32>
    %116 = vector.broadcast %115 : vector<16x1xf32> to vector<16x128xf32>
    %117 = arith.mulf %112, %116 : vector<16x128xf32>
    %118 = vector.broadcast %98 : vector<1x128xf32> to vector<16x128xf32>
    %119 = arith.mulf %117, %118 : vector<16x128xf32>
    %120 = vector.broadcast %99 : vector<1x128xf32> to vector<16x128xf32>
    %121 = arith.addf %119, %120 : vector<16x128xf32>
    %c0_43 = arith.constant 0 : index
    %c0_44 = arith.constant 0 : index
    %122 = vector.load %arg8[%c0_43, %c0_44] : memref<128x512xf32, #tpu.memory_space<vmem>>, vector<128x512xf32>
    %cst_45 = arith.constant dense<0.000000e+00> : vector<16x512xf32>
    %123 = tpu.matmul %121, %122, %cst_45 {dimension_numbers = #tpu.dot_dimension_numbers<[1], [0], [0], [1], [0, 0, 1, 1], [], []>} : vector<16x128xf32>, vector<128x512xf32>, vector<16x512xf32> -> vector<16x512xf32>
    %c0_46 = arith.constant 0 : index
    %c0_47 = arith.constant 0 : index
    %124 = vector.load %arg9[%c0_46, %c0_47] : memref<1x512xf32, #tpu.memory_space<vmem>>, vector<1x512xf32>
    %125 = vector.broadcast %124 : vector<1x512xf32> to vector<16x512xf32>
    %126 = arith.addf %123, %125 : vector<16x512xf32>
    %127 = arith.mulf %126, %126 : vector<16x512xf32>
    %128 = arith.mulf %126, %127 : vector<16x512xf32>
    %cst_48 = arith.constant 4.471500e-02 : f32
    %129 = vector.broadcast %cst_48 : f32 to vector<16x512xf32>
    %130 = arith.mulf %129, %128 : vector<16x512xf32>
    %131 = arith.addf %126, %130 : vector<16x512xf32>
    %cst_49 = arith.constant 0.797884583 : f32
    %132 = vector.broadcast %cst_49 : f32 to vector<16x512xf32>
    %133 = arith.mulf %132, %131 : vector<16x512xf32>
    %134 = math.tanh %133 : vector<16x512xf32>
    %cst_50 = arith.constant 1.000000e+00 : f32
    %135 = vector.broadcast %cst_50 : f32 to vector<16x512xf32>
    %136 = arith.addf %135, %134 : vector<16x512xf32>
    %cst_51 = arith.constant 5.000000e-01 : f32
    %137 = vector.broadcast %cst_51 : f32 to vector<16x512xf32>
    %138 = arith.mulf %137, %136 : vector<16x512xf32>
    %139 = arith.mulf %126, %138 : vector<16x512xf32>
    %c0_52 = arith.constant 0 : index
    %c0_53 = arith.constant 0 : index
    %140 = vector.load %arg10[%c0_52, %c0_53] : memref<512x128xf32, #tpu.memory_space<vmem>>, vector<512x128xf32>
    %cst_54 = arith.constant dense<0.000000e+00> : vector<16x128xf32>
    %141 = tpu.matmul %139, %140, %cst_54 {dimension_numbers = #tpu.dot_dimension_numbers<[1], [0], [0], [1], [0, 0, 1, 1], [], []>} : vector<16x512xf32>, vector<512x128xf32>, vector<16x128xf32> -> vector<16x128xf32>
    %c0_55 = arith.constant 0 : index
    %c0_56 = arith.constant 0 : index
    %142 = vector.load %arg11[%c0_55, %c0_56] : memref<1x128xf32, #tpu.memory_space<vmem>>, vector<1x128xf32>
    %143 = vector.broadcast %142 : vector<1x128xf32> to vector<16x128xf32>
    %144 = arith.addf %141, %143 : vector<16x128xf32>
    %145 = arith.addf %121, %144 : vector<16x128xf32>
    %c0_57 = arith.constant 0 : index
    %c0_58 = arith.constant 0 : index
    %146 = vector.load %arg12[%c0_57, %c0_58] : memref<1x128xf32, #tpu.memory_space<vmem>>, vector<1x128xf32>
    %c0_59 = arith.constant 0 : index
    %c0_60 = arith.constant 0 : index
    %147 = vector.load %arg13[%c0_59, %c0_60] : memref<1x128xf32, #tpu.memory_space<vmem>>, vector<1x128xf32>
    %cst_61 = arith.constant dense<0.000000e+00> : vector<16xf32>
    %148 = vector.multi_reduction <add>, %145, %cst_61 [1] : vector<16x128xf32> to vector<16xf32>
    %149 = vector.shape_cast %148 : vector<16xf32> to vector<16x1xf32>
    %cst_62 = arith.constant 1.280000e+02 : f32
    %150 = vector.broadcast %cst_62 : f32 to vector<16x1xf32>
    %151 = arith.divf %149, %150 : vector<16x1xf32>
    %152 = vector.broadcast %151 : vector<16x1xf32> to vector<16x128xf32>
    %153 = arith.subf %145, %152 : vector<16x128xf32>
    %154 = arith.mulf %153, %153 : vector<16x128xf32>
    %cst_63 = arith.constant dense<0.000000e+00> : vector<16xf32>
    %155 = vector.multi_reduction <add>, %154, %cst_63 [1] : vector<16x128xf32> to vector<16xf32>
    %156 = vector.shape_cast %155 : vector<16xf32> to vector<16x1xf32>
    %cst_64 = arith.constant 1.280000e+02 : f32
    %157 = vector.broadcast %cst_64 : f32 to vector<16x1xf32>
    %158 = arith.divf %156, %157 : vector<16x1xf32>
    %159 = vector.broadcast %151 : vector<16x1xf32> to vector<16x128xf32>
    %160 = arith.subf %145, %159 : vector<16x128xf32>
    %cst_65 = arith.constant 9.99999996E-13 : f32
    %161 = vector.broadcast %cst_65 : f32 to vector<16x1xf32>
    %162 = arith.addf %158, %161 : vector<16x1xf32>
    %163 = math.rsqrt %162 : vector<16x1xf32>
    %164 = vector.broadcast %163 : vector<16x1xf32> to vector<16x128xf32>
    %165 = arith.mulf %160, %164 : vector<16x128xf32>
    %166 = vector.broadcast %146 : vector<1x128xf32> to vector<16x128xf32>
    %167 = arith.mulf %165, %166 : vector<16x128xf32>
    %168 = vector.broadcast %147 : vector<1x128xf32> to vector<16x128xf32>
    %169 = arith.addf %167, %168 : vector<16x128xf32>
    %c0_66 = arith.constant 0 : index
    %c0_67 = arith.constant 0 : index
    %170 = vector.load %arg14[%c0_66, %c0_67] : memref<16x128xf32, #tpu.memory_space<vmem>>, vector<16x128xf32>
    tpu.vector_store %arg14[%c0_66, %c0_67], %169 {strides = array<i32>} : memref<16x128xf32, #tpu.memory_space<vmem>>, vector<16x128xf32>,
    return
  }
}

module attributes {stable_mosaic.version = 11 : i64} {
  func.func @_linear_kernel(%arg0: memref<2x128xf32, #tpu.memory_space<vmem>>, %arg1: memref<128x128xf32, #tpu.memory_space<vmem>>, %arg2: memref<1x128xf32, #tpu.memory_space<vmem>>, %arg3: memref<2x128xf32, #tpu.memory_space<vmem>>) attributes {dimension_semantics = [], scalar_prefetch = 0 : i64, scratch_operands = 0 : i64, tpu.core_type = #tpu.core_type<tc>} {
    %c0 = arith.constant 0 : index
    %c0_0 = arith.constant 0 : index
    %0 = vector.load %arg0[%c0, %c0_0] : memref<2x128xf32, #tpu.memory_space<vmem>>, vector<2x128xf32>
    %c0_1 = arith.constant 0 : index
    %c0_2 = arith.constant 0 : index
    %1 = vector.load %arg1[%c0_1, %c0_2] : memref<128x128xf32, #tpu.memory_space<vmem>>, vector<128x128xf32>
    %cst = arith.constant dense<0.000000e+00> : vector<2x128xf32>
    %2 = tpu.matmul %0, %1, %cst {dimension_numbers = #tpu.dot_dimension_numbers<[1], [0], [0], [1], [0, 0, 1, 1], [], []>} : vector<2x128xf32>, vector<128x128xf32>, vector<2x128xf32> -> vector<2x128xf32>
    %c0_3 = arith.constant 0 : index
    %c0_4 = arith.constant 0 : index
    %3 = vector.load %arg2[%c0_3, %c0_4] : memref<1x128xf32, #tpu.memory_space<vmem>>, vector<1x128xf32>
    %4 = vector.broadcast %3 : vector<1x128xf32> to vector<2x128xf32>
    %5 = arith.addf %2, %4 : vector<2x128xf32>
    %6 = math.tanh %5 : vector<2x128xf32>
    %c0_5 = arith.constant 0 : index
    %c0_6 = arith.constant 0 : index
    %7 = vector.load %arg3[%c0_5, %c0_6] : memref<2x128xf32, #tpu.memory_space<vmem>>, vector<2x128xf32>
    tpu.vector_store %arg3[%c0_5, %c0_6], %6 {strides = array<i32>} : memref<2x128xf32, #tpu.memory_space<vmem>>, vector<2x128xf32>,
    return
  }
}

module attributes {stable_mosaic.version = 11 : i64} {
  func.func @_encoder_layer_kernel(%arg0: memref<16x128xf32, #tpu.memory_space<vmem>>, %arg1: memref<2x8xf32, #tpu.memory_space<vmem>>, %arg2: memref<128x384xf32, #tpu.memory_space<vmem>>, %arg3: memref<1x384xf32, #tpu.memory_space<vmem>>, %arg4: memref<128x128xf32, #tpu.memory_space<vmem>>, %arg5: memref<1x128xf32, #tpu.memory_space<vmem>>, %arg6: memref<1x128xf32, #tpu.memory_space<vmem>>, %arg7: memref<1x128xf32, #tpu.memory_space<vmem>>, %arg8: memref<128x512xf32, #tpu.memory_space<vmem>>, %arg9: memref<1x512xf32, #tpu.memory_space<vmem>>, %arg10: memref<512x128xf32, #tpu.memory_space<vmem>>, %arg11: memref<1x128xf32, #tpu.memory_space<vmem>>, %arg12: memref<1x128xf32, #tpu.memory_space<vmem>>, %arg13: memref<1x128xf32, #tpu.memory_space<vmem>>, %arg14: memref<16x128xf32, #tpu.memory_space<vmem>>) attributes {dimension_semantics = [], scalar_prefetch = 0 : i64, scratch_operands = 0 : i64, tpu.core_type = #tpu.core_type<tc>} {
    %c0 = arith.constant 0 : index
    %c0_0 = arith.constant 0 : index
    %0 = vector.load %arg0[%c0, %c0_0] : memref<16x128xf32, #tpu.memory_space<vmem>>, vector<16x128xf32>
    %c0_1 = arith.constant 0 : index
    %c0_2 = arith.constant 0 : index
    %1 = vector.load %arg2[%c0_1, %c0_2] : memref<128x384xf32, #tpu.memory_space<vmem>>, vector<128x384xf32>
    %cst = arith.constant dense<0.000000e+00> : vector<16x384xf32>
    %2 = tpu.matmul %0, %1, %cst {dimension_numbers = #tpu.dot_dimension_numbers<[1], [0], [0], [1], [0, 0, 1, 1], [], []>} : vector<16x128xf32>, vector<128x384xf32>, vector<16x384xf32> -> vector<16x384xf32>
    %c0_3 = arith.constant 0 : index
    %c0_4 = arith.constant 0 : index
    %3 = vector.load %arg3[%c0_3, %c0_4] : memref<1x384xf32, #tpu.memory_space<vmem>>, vector<1x384xf32>
    %4 = vector.broadcast %3 : vector<1x384xf32> to vector<16x384xf32>
    %5 = arith.addf %2, %4 : vector<16x384xf32>
    %c0_5 = arith.constant 0 : index
    %c0_6 = arith.constant 0 : index
    %6 = vector.load %arg1[%c0_5, %c0_6] : memref<2x8xf32, #tpu.memory_space<vmem>>, vector<2x8xf32>
    %cst_7 = arith.constant 1.000000e+00 : f32
    %7 = vector.broadcast %cst_7 : f32 to vector<2x8xf32>
    %8 = arith.subf %7, %6 : vector<2x8xf32>
    %cst_8 = arith.constant -1.000000e+04 : f32
    %9 = vector.broadcast %cst_8 : f32 to vector<2x8xf32>
    %10 = arith.mulf %8, %9 : vector<2x8xf32>
    %11 = vector.extract_strided_slice %10 {offsets = [0, 0], sizes = [1, 8], strides = [1, 1]} : vector<2x8xf32> to vector<1x8xf32>
    %12 = vector.extract_strided_slice %5 {offsets = [0, 0], sizes = [8, 64], strides = [1, 1]} : vector<16x384xf32> to vector<8x64xf32>
    %13 = vector.extract_strided_slice %5 {offsets = [0, 128], sizes = [8, 64], strides = [1, 1]} : vector<16x384xf32> to vector<8x64xf32>
    %14 = vector.extract_strided_slice %5 {offsets = [0, 256], sizes = [8, 64], strides = [1, 1]} : vector<16x384xf32> to vector<8x64xf32>
    %15 = tpu.transpose %13, [1, 0] : vector<8x64xf32> -> vector<64x8xf32>
    %cst_9 = arith.constant dense<0.000000e+00> : vector<8x8xf32>
    %16 = tpu.matmul %12, %15, %cst_9 {dimension_numbers = #tpu.dot_dimension_numbers<[1], [0], [0], [1], [0, 0, 1, 1], [], []>} : vector<8x64xf32>, vector<64x8xf32>, vector<8x8xf32> -> vector<8x8xf32>
    %cst_10 = arith.constant 1.250000e-01 : f32
    %17 = vector.broadcast %cst_10 : f32 to vector<8x8xf32>
    %18 = arith.mulf %16, %17 : vector<8x8xf32>
    %19 = vector.broadcast %11 : vector<1x8xf32> to vector<8x8xf32>
    %20 = arith.addf %18, %19 : vector<8x8xf32>
    %cst_11 = arith.constant dense<0xFF800000> : vector<8xf32>
    %21 = vector.multi_reduction <maximumf>, %20, %cst_11 [1] : vector<8x8xf32> to vector<8xf32>
    %22 = vector.shape_cast %21 : vector<8xf32> to vector<8x1xf32>
    %23 = vector.broadcast %22 : vector<8x1xf32> to vector<8x8xf32>
    %24 = arith.subf %20, %23 : vector<8x8xf32>
    %25 = math.exp %24 : vector<8x8xf32>
    %cst_12 = arith.constant dense<0.000000e+00> : vector<8xf32>
    %26 = vector.multi_reduction <add>, %25, %cst_12 [1] : vector<8x8xf32> to vector<8xf32>
    %27 = vector.shape_cast %26 : vector<8xf32> to vector<8x1xf32>
    %28 = vector.broadcast %27 : vector<8x1xf32> to vector<8x8xf32>
    %29 = arith.divf %25, %28 : vector<8x8xf32>
    %cst_13 = arith.constant dense<0.000000e+00> : vector<8x64xf32>
    %30 = tpu.matmul %29, %14, %cst_13 {dimension_numbers = #tpu.dot_dimension_numbers<[1], [0], [0], [1], [0, 0, 1, 1], [], []>} : vector<8x8xf32>, vector<8x64xf32>, vector<8x64xf32> -> vector<8x64xf32>
    %31 = vector.extract_strided_slice %5 {offsets = [0, 64], sizes = [8, 64], strides = [1, 1]} : vector<16x384xf32> to vector<8x64xf32>
    %32 = vector.extract_strided_slice %5 {offsets = [0, 192], sizes = [8, 64], strides = [1, 1]} : vector<16x384xf32> to vector<8x64xf32>
    %33 = vector.extract_strided_slice %5 {offsets = [0, 320], sizes = [8, 64], strides = [1, 1]} : vector<16x384xf32> to vector<8x64xf32>
    %34 = tpu.transpose %32, [1, 0] : vector<8x64xf32> -> vector<64x8xf32>
    %cst_14 = arith.constant dense<0.000000e+00> : vector<8x8xf32>
    %35 = tpu.matmul %31, %34, %cst_14 {dimension_numbers = #tpu.dot_dimension_numbers<[1], [0], [0], [1], [0, 0, 1, 1], [], []>} : vector<8x64xf32>, vector<64x8xf32>, vector<8x8xf32> -> vector<8x8xf32>
    %cst_15 = arith.constant 1.250000e-01 : f32
    %36 = vector.broadcast %cst_15 : f32 to vector<8x8xf32>
    %37 = arith.mulf %35, %36 : vector<8x8xf32>
    %38 = vector.broadcast %11 : vector<1x8xf32> to vector<8x8xf32>
    %39 = arith.addf %37, %38 : vector<8x8xf32>
    %cst_16 = arith.constant dense<0xFF800000> : vector<8xf32>
    %40 = vector.multi_reduction <maximumf>, %39, %cst_16 [1] : vector<8x8xf32> to vector<8xf32>
    %41 = vector.shape_cast %40 : vector<8xf32> to vector<8x1xf32>
    %42 = vector.broadcast %41 : vector<8x1xf32> to vector<8x8xf32>
    %43 = arith.subf %39, %42 : vector<8x8xf32>
    %44 = math.exp %43 : vector<8x8xf32>
    %cst_17 = arith.constant dense<0.000000e+00> : vector<8xf32>
    %45 = vector.multi_reduction <add>, %44, %cst_17 [1] : vector<8x8xf32> to vector<8xf32>
    %46 = vector.shape_cast %45 : vector<8xf32> to vector<8x1xf32>
    %47 = vector.broadcast %46 : vector<8x1xf32> to vector<8x8xf32>
    %48 = arith.divf %44, %47 : vector<8x8xf32>
    %cst_18 = arith.constant dense<0.000000e+00> : vector<8x64xf32>
    %49 = tpu.matmul %48, %33, %cst_18 {dimension_numbers = #tpu.dot_dimension_numbers<[1], [0], [0], [1], [0, 0, 1, 1], [], []>} : vector<8x8xf32>, vector<8x64xf32>, vector<8x64xf32> -> vector<8x64xf32>
    %50 = tpu.concatenate %30, %49 in 1 : vector<8x64xf32>, vector<8x64xf32> -> vector<8x128xf32>
    %51 = vector.extract_strided_slice %10 {offsets = [1, 0], sizes = [1, 8], strides = [1, 1]} : vector<2x8xf32> to vector<1x8xf32>
    %52 = vector.extract_strided_slice %5 {offsets = [8, 0], sizes = [8, 64], strides = [1, 1]} : vector<16x384xf32> to vector<8x64xf32>
    %53 = vector.extract_strided_slice %5 {offsets = [8, 128], sizes = [8, 64], strides = [1, 1]} : vector<16x384xf32> to vector<8x64xf32>
    %54 = vector.extract_strided_slice %5 {offsets = [8, 256], sizes = [8, 64], strides = [1, 1]} : vector<16x384xf32> to vector<8x64xf32>
    %55 = tpu.transpose %53, [1, 0] : vector<8x64xf32> -> vector<64x8xf32>
    %cst_19 = arith.constant dense<0.000000e+00> : vector<8x8xf32>
    %56 = tpu.matmul %52, %55, %cst_19 {dimension_numbers = #tpu.dot_dimension_numbers<[1], [0], [0], [1], [0, 0, 1, 1], [], []>} : vector<8x64xf32>, vector<64x8xf32>, vector<8x8xf32> -> vector<8x8xf32>
    %cst_20 = arith.constant 1.250000e-01 : f32
    %57 = vector.broadcast %cst_20 : f32 to vector<8x8xf32>
    %58 = arith.mulf %56, %57 : vector<8x8xf32>
    %59 = vector.broadcast %51 : vector<1x8xf32> to vector<8x8xf32>
    %60 = arith.addf %58, %59 : vector<8x8xf32>
    %cst_21 = arith.constant dense<0xFF800000> : vector<8xf32>
    %61 = vector.multi_reduction <maximumf>, %60, %cst_21 [1] : vector<8x8xf32> to vector<8xf32>
    %62 = vector.shape_cast %61 : vector<8xf32> to vector<8x1xf32>
    %63 = vector.broadcast %62 : vector<8x1xf32> to vector<8x8xf32>
    %64 = arith.subf %60, %63 : vector<8x8xf32>
    %65 = math.exp %64 : vector<8x8xf32>
    %cst_22 = arith.constant dense<0.000000e+00> : vector<8xf32>
    %66 = vector.multi_reduction <add>, %65, %cst_22 [1] : vector<8x8xf32> to vector<8xf32>
    %67 = vector.shape_cast %66 : vector<8xf32> to vector<8x1xf32>
    %68 = vector.broadcast %67 : vector<8x1xf32> to vector<8x8xf32>
    %69 = arith.divf %65, %68 : vector<8x8xf32>
    %cst_23 = arith.constant dense<0.000000e+00> : vector<8x64xf32>
    %70 = tpu.matmul %69, %54, %cst_23 {dimension_numbers = #tpu.dot_dimension_numbers<[1], [0], [0], [1], [0, 0, 1, 1], [], []>} : vector<8x8xf32>, vector<8x64xf32>, vector<8x64xf32> -> vector<8x64xf32>
    %71 = vector.extract_strided_slice %5 {offsets = [8, 64], sizes = [8, 64], strides = [1, 1]} : vector<16x384xf32> to vector<8x64xf32>
    %72 = vector.extract_strided_slice %5 {offsets = [8, 192], sizes = [8, 64], strides = [1, 1]} : vector<16x384xf32> to vector<8x64xf32>
    %73 = vector.extract_strided_slice %5 {offsets = [8, 320], sizes = [8, 64], strides = [1, 1]} : vector<16x384xf32> to vector<8x64xf32>
    %74 = tpu.transpose %72, [1, 0] : vector<8x64xf32> -> vector<64x8xf32>
    %cst_24 = arith.constant dense<0.000000e+00> : vector<8x8xf32>
    %75 = tpu.matmul %71, %74, %cst_24 {dimension_numbers = #tpu.dot_dimension_numbers<[1], [0], [0], [1], [0, 0, 1, 1], [], []>} : vector<8x64xf32>, vector<64x8xf32>, vector<8x8xf32> -> vector<8x8xf32>
    %cst_25 = arith.constant 1.250000e-01 : f32
    %76 = vector.broadcast %cst_25 : f32 to vector<8x8xf32>
    %77 = arith.mulf %75, %76 : vector<8x8xf32>
    %78 = vector.broadcast %51 : vector<1x8xf32> to vector<8x8xf32>
    %79 = arith.addf %77, %78 : vector<8x8xf32>
    %cst_26 = arith.constant dense<0xFF800000> : vector<8xf32>
    %80 = vector.multi_reduction <maximumf>, %79, %cst_26 [1] : vector<8x8xf32> to vector<8xf32>
    %81 = vector.shape_cast %80 : vector<8xf32> to vector<8x1xf32>
    %82 = vector.broadcast %81 : vector<8x1xf32> to vector<8x8xf32>
    %83 = arith.subf %79, %82 : vector<8x8xf32>
    %84 = math.exp %83 : vector<8x8xf32>
    %cst_27 = arith.constant dense<0.000000e+00> : vector<8xf32>
    %85 = vector.multi_reduction <add>, %84, %cst_27 [1] : vector<8x8xf32> to vector<8xf32>
    %86 = vector.shape_cast %85 : vector<8xf32> to vector<8x1xf32>
    %87 = vector.broadcast %86 : vector<8x1xf32> to vector<8x8xf32>
    %88 = arith.divf %84, %87 : vector<8x8xf32>
    %cst_28 = arith.constant dense<0.000000e+00> : vector<8x64xf32>
    %89 = tpu.matmul %88, %73, %cst_28 {dimension_numbers = #tpu.dot_dimension_numbers<[1], [0], [0], [1], [0, 0, 1, 1], [], []>} : vector<8x8xf32>, vector<8x64xf32>, vector<8x64xf32> -> vector<8x64xf32>
    %90 = tpu.concatenate %70, %89 in 1 : vector<8x64xf32>, vector<8x64xf32> -> vector<8x128xf32>
    %91 = tpu.concatenate %50, %90 in 0 : vector<8x128xf32>, vector<8x128xf32> -> vector<16x128xf32>
    %c0_29 = arith.constant 0 : index
    %c0_30 = arith.constant 0 : index
    %92 = vector.load %arg4[%c0_29, %c0_30] : memref<128x128xf32, #tpu.memory_space<vmem>>, vector<128x128xf32>
    %cst_31 = arith.constant dense<0.000000e+00> : vector<16x128xf32>
    %93 = tpu.matmul %91, %92, %cst_31 {dimension_numbers = #tpu.dot_dimension_numbers<[1], [0], [0], [1], [0, 0, 1, 1], [], []>} : vector<16x128xf32>, vector<128x128xf32>, vector<16x128xf32> -> vector<16x128xf32>
    %c0_32 = arith.constant 0 : index
    %c0_33 = arith.constant 0 : index
    %94 = vector.load %arg5[%c0_32, %c0_33] : memref<1x128xf32, #tpu.memory_space<vmem>>, vector<1x128xf32>
    %95 = vector.broadcast %94 : vector<1x128xf32> to vector<16x128xf32>
    %96 = arith.addf %93, %95 : vector<16x128xf32>
    %97 = arith.addf %0, %96 : vector<16x128xf32>
    %c0_34 = arith.constant 0 : index
    %c0_35 = arith.constant 0 : index
    %98 = vector.load %arg6[%c0_34, %c0_35] : memref<1x128xf32, #tpu.memory_space<vmem>>, vector<1x128xf32>
    %c0_36 = arith.constant 0 : index
    %c0_37 = arith.constant 0 : index
    %99 = vector.load %arg7[%c0_36, %c0_37] : memref<1x128xf32, #tpu.memory_space<vmem>>, vector<1x128xf32>
    %cst_38 = arith.constant dense<0.000000e+00> : vector<16xf32>
    %100 = vector.multi_reduction <add>, %97, %cst_38 [1] : vector<16x128xf32> to vector<16xf32>
    %101 = vector.shape_cast %100 : vector<16xf32> to vector<16x1xf32>
    %cst_39 = arith.constant 1.280000e+02 : f32
    %102 = vector.broadcast %cst_39 : f32 to vector<16x1xf32>
    %103 = arith.divf %101, %102 : vector<16x1xf32>
    %104 = vector.broadcast %103 : vector<16x1xf32> to vector<16x128xf32>
    %105 = arith.subf %97, %104 : vector<16x128xf32>
    %106 = arith.mulf %105, %105 : vector<16x128xf32>
    %cst_40 = arith.constant dense<0.000000e+00> : vector<16xf32>
    %107 = vector.multi_reduction <add>, %106, %cst_40 [1] : vector<16x128xf32> to vector<16xf32>
    %108 = vector.shape_cast %107 : vector<16xf32> to vector<16x1xf32>
    %cst_41 = arith.constant 1.280000e+02 : f32
    %109 = vector.broadcast %cst_41 : f32 to vector<16x1xf32>
    %110 = arith.divf %108, %109 : vector<16x1xf32>
    %111 = vector.broadcast %103 : vector<16x1xf32> to vector<16x128xf32>
    %112 = arith.subf %97, %111 : vector<16x128xf32>
    %cst_42 = arith.constant 9.99999996E-13 : f32
    %113 = vector.broadcast %cst_42 : f32 to vector<16x1xf32>
    %114 = arith.addf %110, %113 : vector<16x1xf32>
    %115 = math.rsqrt %114 : vector<16x1xf32>
    %116 = vector.broadcast %115 : vector<16x1xf32> to vector<16x128xf32>
    %117 = arith.mulf %112, %116 : vector<16x128xf32>
    %118 = vector.broadcast %98 : vector<1x128xf32> to vector<16x128xf32>
    %119 = arith.mulf %117, %118 : vector<16x128xf32>
    %120 = vector.broadcast %99 : vector<1x128xf32> to vector<16x128xf32>
    %121 = arith.addf %119, %120 : vector<16x128xf32>
    %c0_43 = arith.constant 0 : index
    %c0_44 = arith.constant 0 : index
    %122 = vector.load %arg8[%c0_43, %c0_44] : memref<128x512xf32, #tpu.memory_space<vmem>>, vector<128x512xf32>
    %cst_45 = arith.constant dense<0.000000e+00> : vector<16x512xf32>
    %123 = tpu.matmul %121, %122, %cst_45 {dimension_numbers = #tpu.dot_dimension_numbers<[1], [0], [0], [1], [0, 0, 1, 1], [], []>} : vector<16x128xf32>, vector<128x512xf32>, vector<16x512xf32> -> vector<16x512xf32>
    %c0_46 = arith.constant 0 : index
    %c0_47 = arith.constant 0 : index
    %124 = vector.load %arg9[%c0_46, %c0_47] : memref<1x512xf32, #tpu.memory_space<vmem>>, vector<1x512xf32>
    %125 = vector.broadcast %124 : vector<1x512xf32> to vector<16x512xf32>
    %126 = arith.addf %123, %125 : vector<16x512xf32>
    %127 = arith.mulf %126, %126 : vector<16x512xf32>
    %128 = arith.mulf %126, %127 : vector<16x512xf32>
    %cst_48 = arith.constant 4.471500e-02 : f32
    %129 = vector.broadcast %cst_48 : f32 to vector<16x512xf32>
    %130 = arith.mulf %129, %128 : vector<16x512xf32>
    %131 = arith.addf %126, %130 : vector<16x512xf32>
    %cst_49 = arith.constant 0.797884583 : f32
    %132 = vector.broadcast %cst_49 : f32 to vector<16x512xf32>
    %133 = arith.mulf %132, %131 : vector<16x512xf32>
    %134 = math.tanh %133 : vector<16x512xf32>
    %cst_50 = arith.constant 1.000000e+00 : f32
    %135 = vector.broadcast %cst_50 : f32 to vector<16x512xf32>
    %136 = arith.addf %135, %134 : vector<16x512xf32>
    %cst_51 = arith.constant 5.000000e-01 : f32
    %137 = vector.broadcast %cst_51 : f32 to vector<16x512xf32>
    %138 = arith.mulf %137, %136 : vector<16x512xf32>
    %139 = arith.mulf %126, %138 : vector<16x512xf32>
    %c0_52 = arith.constant 0 : index
    %c0_53 = arith.constant 0 : index
    %140 = vector.load %arg10[%c0_52, %c0_53] : memref<512x128xf32, #tpu.memory_space<vmem>>, vector<512x128xf32>
    %cst_54 = arith.constant dense<0.000000e+00> : vector<16x128xf32>
    %141 = tpu.matmul %139, %140, %cst_54 {dimension_numbers = #tpu.dot_dimension_numbers<[1], [0], [0], [1], [0, 0, 1, 1], [], []>} : vector<16x512xf32>, vector<512x128xf32>, vector<16x128xf32> -> vector<16x128xf32>
    %c0_55 = arith.constant 0 : index
    %c0_56 = arith.constant 0 : index
    %142 = vector.load %arg11[%c0_55, %c0_56] : memref<1x128xf32, #tpu.memory_space<vmem>>, vector<1x128xf32>
    %143 = vector.broadcast %142 : vector<1x128xf32> to vector<16x128xf32>
    %144 = arith.addf %141, %143 : vector<16x128xf32>
    %145 = arith.addf %121, %144 : vector<16x128xf32>
    %c0_57 = arith.constant 0 : index
    %c0_58 = arith.constant 0 : index
    %146 = vector.load %arg12[%c0_57, %c0_58] : memref<1x128xf32, #tpu.memory_space<vmem>>, vector<1x128xf32>
    %c0_59 = arith.constant 0 : index
    %c0_60 = arith.constant 0 : index
    %147 = vector.load %arg13[%c0_59, %c0_60] : memref<1x128xf32, #tpu.memory_space<vmem>>, vector<1x128xf32>
    %cst_61 = arith.constant dense<0.000000e+00> : vector<16xf32>
    %148 = vector.multi_reduction <add>, %145, %cst_61 [1] : vector<16x128xf32> to vector<16xf32>
    %149 = vector.shape_cast %148 : vector<16xf32> to vector<16x1xf32>
    %cst_62 = arith.constant 1.280000e+02 : f32
    %150 = vector.broadcast %cst_62 : f32 to vector<16x1xf32>
    %151 = arith.divf %149, %150 : vector<16x1xf32>
    %152 = vector.broadcast %151 : vector<16x1xf32> to vector<16x128xf32>
    %153 = arith.subf %145, %152 : vector<16x128xf32>
    %154 = arith.mulf %153, %153 : vector<16x128xf32>
    %cst_63 = arith.constant dense<0.000000e+00> : vector<16xf32>
    %155 = vector.multi_reduction <add>, %154, %cst_63 [1] : vector<16x128xf32> to vector<16xf32>
    %156 = vector.shape_cast %155 : vector<16xf32> to vector<16x1xf32>
    %cst_64 = arith.constant 1.280000e+02 : f32
    %157 = vector.broadcast %cst_64 : f32 to vector<16x1xf32>
    %158 = arith.divf %156, %157 : vector<16x1xf32>
    %159 = vector.broadcast %151 : vector<16x1xf32> to vector<16x128xf32>
    %160 = arith.subf %145, %159 : vector<16x128xf32>
    %cst_65 = arith.constant 9.99999996E-13 : f32
    %161 = vector.broadcast %cst_65 : f32 to vector<16x1xf32>
    %162 = arith.addf %158, %161 : vector<16x1xf32>
    %163 = math.rsqrt %162 : vector<16x1xf32>
    %164 = vector.broadcast %163 : vector<16x1xf32> to vector<16x128xf32>
    %165 = arith.mulf %160, %164 : vector<16x128xf32>
    %166 = vector.broadcast %146 : vector<1x128xf32> to vector<16x128xf32>
    %167 = arith.mulf %165, %166 : vector<16x128xf32>
    %168 = vector.broadcast %147 : vector<1x128xf32> to vector<16x128xf32>
    %169 = arith.addf %167, %168 : vector<16x128xf32>
    %c0_66 = arith.constant 0 : index
    %c0_67 = arith.constant 0 : index
    %170 = vector.load %arg14[%c0_66, %c0_67] : memref<16x128xf32, #tpu.memory_space<vmem>>, vector<16x128xf32>
    tpu.vector_store %arg14[%c0_66, %c0_67], %169 {strides = array<i32>} : memref<16x128xf32, #tpu.memory_space<vmem>>, vector<16x128xf32>,
    return
  }
}

</mosaic_0001>

<bundles_post_ra>
// kernel: forward.7
= control target key start
LH: loop header
LB: loop body
LE: loop exit
PB: predicated region body
PF: predicated region fallthrough
CT: control target
= control target key end

     0   :  { %8 = vsyncpa [#allocation3], 0  ;;  %s186_s0 = inlined_call_operand.vmem [shape: f32[2,128], index: 0, kind: input, shape index: {}]   ;;  %s187_s1 = inlined_call_operand.hbm [shape: f32[128,128], index: 1, kind: input, shape index: {}]   ;;  %s188_s2 = inlined_call_operand.vmem [shape: f32[1,128], index: 2, kind: input, shape index: {}]   ;;  %s189_s3 = inlined_call_operand.hbm [shape: f32[2,128], index: 3, kind: output, shape index: {}]  }
   0x1   :  { %9 = vsyncpa [#allocation4], 0  ;;  %s16_s14 = sshll.u32 %s187_s1, 4  ;;  %s150_s15 = smov [#allocation2]   ;;  %s17_s14 = int_to_ptr.hbm [resolvable:$true] %s16_s14 }
   0x2   :  { %s18_s16 = sshll.u32 %s150_s15, 4  ;;  %s151_s17 = smov 128   ;;  %s19_s16 = int_to_ptr.vmem [resolvable:$true] %s18_s16 }
   0x3   :  { %s152_s18 = smov 8  }
   0x4   :  { %24 = dma.hbm_to_vmem [thread:$0]  %s17_s14, 2048, %s19_s16, [#allocation3], %s151_s17, %s151_s17, %s152_s18  }
   0x5   :  { %146 = dma.done.wait [#allocation3], 2048  }
   0x6   :  { %147 = vsyncadd [#allocation3], 4294965248  ;;  %v47_v0 = vld [vmem:[#allocation2 + $0x78] sm:$0xff]  ;;  %v46_v1 = vld [vmem:[#allocation2 + $0x70] sm:$0xff]  ;;  %s153_s22 = smov [#allocation5]   ;;  %s81_s26 = sshll.u32 %s189_s3, 4  ;;  %s82_s26 = int_to_ptr.hbm [resolvable:$true] %s81_s26 }
   0x7   :  { %52 = vmatpush.msra.mxu0 %v47_v0  ;;  %v45_v2 = vld [vmem:[#allocation2 + $0x68] sm:$0xff]  ;;  %v44_v3 = vld [vmem:[#allocation2 + $0x60] sm:$0xff]  ;;  %v43_v4 = vld [vmem:[#allocation2 + $0x58] sm:$0xff]  ;;  %s79_s23 = sshll.u32 %s153_s22, 4  ;;  %s80_s23 = int_to_ptr.vmem [resolvable:$true] %s79_s23 }
   0x8   :  { %v42_v5 = vld [vmem:[#allocation2 + $0x50] sm:$0xff]  ;;  %v41_v6 = vld [vmem:[#allocation2 + $0x48] sm:$0xff]  ;;  %v40_v7 = vld [vmem:[#allocation2 + $0x40] sm:$0xff] }
   0x9   :  { %53 = vmatpush.msra.mxu0 %v46_v1  ;;  %v39_v8 = vld [vmem:[#allocation2 + $0x38] sm:$0xff]  ;;  %v38_v9 = vld [vmem:[#allocation2 + $0x30] sm:$0xff]  ;;  %v37_v10 = vld [vmem:[#allocation2 + $0x28] sm:$0xff] }
   0xa   :  { %v36_v11 = vld [vmem:[#allocation2 + $0x20] sm:$0xff]  ;;  %v35_v12 = vld [vmem:[#allocation2 + $0x18] sm:$0xff]  ;;  %v34_v13 = vld [vmem:[#allocation2 + $0x10] sm:$0xff] }
   0xb   :  { %54 = vmatpush.msra.mxu0 %v45_v2  ;;  %v33_v14 = vld [vmem:[#allocation2 + $0x8] sm:$0xff]  ;;  %v32_v15 = vld [vmem:[#allocation2] sm:$0xff] }
   0xc   :  { %v31_v16 = vld [vmem:[%s186_s0] sm:$0x3] }
   0xd   :  { %55 = vmatpush.msra.mxu0 %v44_v3  ;;  %v95_v17 = vld [vmem:[%s188_s2] ss:$0 sm:$0xff] }
   0xf   :  { %56 = vmatpush.msra.mxu0 %v43_v4 }
  0x11   :  { %57 = vmatpush.msra.mxu0 %v42_v5 }
  0x13   :  { %58 = vmatpush.msra.mxu0 %v41_v6 }
  0x15   :  { %59 = vmatpush.msra.mxu0 %v40_v7 }
  0x17   :  { %60 = vmatpush.msra.mxu0 %v39_v8 }
  0x19   :  { %61 = vmatpush.msra.mxu0 %v38_v9 }
  0x1b   :  { %62 = vmatpush.msra.mxu0 %v37_v10 }
  0x1d   :  { %63 = vmatpush.msra.mxu0 %v36_v11 }
  0x1f   :  { %64 = vmatpush.msra.mxu0 %v35_v12 }
  0x21   :  { %65 = vmatpush.msra.mxu0 %v34_v13 }
  0x23   :  { %66 = vmatpush.msra.mxu0 %v33_v14 }
  0x25   :  { %67 = vmatpush.msra.mxu0 %v32_v15 }
  0x26   :  { %68 = vmatmul.f32.vlgmr.msra.gmra.mxu0 %v31_v16 }
  0xa3   :  { %v69_v18 = vpop.f32.mrf.mxu0 }
  0xa4   :  { %v70_v19 = vadd.f32 %v95_v17, %v69_v18 }
  0xa6   :  { %96 = vtanh.f32 %v70_v19 }
  0xac   :  { %v97_v20 = vpop.eup %96 }
  0xad   :  { %73 = vst [vmem:[#allocation5] sm:$0x3] %v97_v20 }
  0xae   :  { %84 = dma.vmem_to_hbm [thread:$0]  %s80_s23, 32, %s82_s26, [#allocation4]  }
  0xaf   :  { %148 = dma.done.wait [#allocation4], 32  }
  0xb0   :  { %149 = vsyncadd [#allocation4], 4294967264 }
  0xb1   :  { %89 = vsyncpa [#allocation3], 1 }
  0xb2   :  { %90 = vsyncpa [#allocation4], 1 }

// kernel: forward.4
= control target key start
LH: loop header
LB: loop body
LE: loop exit
PB: predicated region body
PF: predicated region fallthrough
CT: control target
= control target key end

     0   :  { %v90_v2 = vmov 128.0   ;;  %s129_s0 = inlined_call_operand.vmem [shape: f32[16,128], index: 0, kind: input, shape index: {}]   ;;  %s130_s1 = inlined_call_operand.vmem [shape: f32[1,128], index: 1, kind: input, shape index: {}]   ;;  %s131_s2 = inlined_call_operand.vmem [shape: f32[1,128], index: 2, kind: input, shape index: {}]   ;;  %s132_s3 = inlined_call_operand.vmem [shape: f32[16,128], index: 3, kind: output, shape index: {}]  }
   0x1   :  { %v14_v0 = vld [vmem:[%s129_s0] sm:$0xff]  ;;  %v15_v1 = vld [vmem:[%s129_s0 + $0x8] sm:$0xff]  ;;  %84 = vrcp.f32 %v90_v2 }
   0x2   :  { %18 = vadd.xlane.f32.xlu0 %v14_v0  ;;  %v82_v31 = vld [vmem:[%s130_s1] ss:$0 sm:$0xff] }
   0x3   :  { %v83_v34 = vld [vmem:[%s131_s2] ss:$0 sm:$0xff] }
   0x7   :  { %v85_v3 = vpop.eup %84 }
   0x8   :  { %v23_v4 = vmul.f32 128.0, %v85_v3  ;;  %vm27_vm0 = vweird.f32 %v85_v3 }
   0xa   :  { %20 = vadd.xlane.f32.xlu0 %v15_v1  ;;  %v24_v5 = vsub.f32 1.0, %v23_v4 }
   0xc   :  { %v25_v6 = vmul.f32 %v85_v3, %v24_v5 }
   0xe   :  { %v26_v7 = vadd.f32 %v85_v3, %v25_v6 }
  0x10   :  { %v28_v8 = vsel %vm27_vm0, %v85_v3, %v26_v7 }
  0x75   :  { %v19_v9 = vpop.xlane.xlu0 %18 }
  0x76   :  { %v29_v10 = vmul.f32 %v28_v8, %v19_v9 }
  0x78   :  { %v31_v11 = vsub.f32 %v14_v0, %v29_v10 }
  0x7a   :  { %v33_v12 = vmul.f32 %v31_v11, %v31_v11 }
  0x7c   :  { %35 = vadd.xlane.f32.xlu1 %v33_v12 }
  0x7d   :  { %v21_v13 = vpop.xlane.xlu0 %20 }
  0x7e   :  { %v30_v14 = vmul.f32 %v28_v8, %v21_v13 }
  0x80   :  { %v32_v15 = vsub.f32 %v15_v1, %v30_v14 }
  0x82   :  { %v34_v16 = vmul.f32 %v32_v15, %v32_v15 }
  0x84   :  { %37 = vadd.xlane.f32.xlu1 %v34_v16 }
  0xef   :  { %v36_v17 = vpop.xlane.xlu1 %35 }
  0xf0   :  { %v39_v18 = vmul.f32 %v36_v17, %v28_v8 }
  0xf2   :  { %v41_v19 = vadd.f32 1e-12, %v39_v18 }
  0xf4   :  { %86 = vrsqrt.f32 %v41_v19  ;;  %vm49_vm2 = vweird.f32 %v41_v19 }
  0xf7   :  { %v38_v20 = vpop.xlane.xlu1 %37 }
  0xf8   :  { %v40_v21 = vmul.f32 %v38_v20, %v28_v8 }
  0xfa   :  { %v87_v22 = vpop.eup %86  ;;  %v42_v23 = vadd.f32 1e-12, %v40_v21 }
  0xfb   :  { %v44_v24 = vmul.f32 %v87_v22, %v41_v19  ;;  %vm50_vm1 = vweird.f32 %v87_v22 }
  0xfc   :  { %88 = vrsqrt.f32 %v42_v23  ;;  %vm51_vm3 = vmor %vm49_vm2, %vm50_vm1  ;;  %vm59_vm5 = vweird.f32 %v42_v23 }
  0xfd   :  { %v45_v25 = vmul.f32 %v87_v22, %v44_v24 }
  0xff   :  { %v46_v26 = vmul.f32 0.5, %v45_v25 }
 0x101   :  { %v47_v27 = vsub.f32 1.5, %v46_v26 }
 0x102   :  { %v89_v28 = vpop.eup %88 }
 0x103   :  { %v48_v29 = vmul.f32 %v87_v22, %v47_v27  ;;  %v54_v30 = vmul.f32 %v89_v28, %v42_v23  ;;  %vm60_vm4 = vweird.f32 %v89_v28 }
 0x104   :  { %vm61_vm6 = vmor %vm59_vm5, %vm60_vm4 }
 0x105   :  { %v52_v32 = vsel %vm51_vm3, %v87_v22, %v48_v29  ;;  %v55_v33 = vmul.f32 %v89_v28, %v54_v30 }
 0x106   :  { %v63_v35 = vmul.f32 %v52_v32, %v31_v11 }
 0x107   :  { %v56_v36 = vmul.f32 0.5, %v55_v33 }
 0x108   :  { %v68_v37 = vmul.f32 %v82_v31, %v63_v35 }
 0x109   :  { %v57_v38 = vsub.f32 1.5, %v56_v36 }
 0x10a   :  { %v73_v39 = vadd.f32 %v83_v34, %v68_v37 }
 0x10b   :  { %v58_v40 = vmul.f32 %v89_v28, %v57_v38 }
 0x10c   :  { %75 = vst [vmem:[%s132_s3] sm:$0xff] %v73_v39 }
 0x10d   :  { %v62_v41 = vsel %vm61_vm6, %v89_v28, %v58_v40 }
 0x10e   :  { %v64_v42 = vmul.f32 %v62_v41, %v32_v15 }
 0x110   :  { %v69_v43 = vmul.f32 %v82_v31, %v64_v42 }
 0x112   :  { %v74_v44 = vadd.f32 %v83_v34, %v69_v43 }
 0x114   :  { %76 = vst [vmem:[%s132_s3 + $0x8] sm:$0xff] %v74_v44 }

// kernel: forward.5
= control target key start
LH: loop header
LB: loop body
LE: loop exit
PB: predicated region body
PF: predicated region fallthrough
CT: control target
= control target key end

     0   :  { %19 = vsyncpa [#allocation3], 0  ;;  %s1577_s0 = inlined_call_operand.vmem [shape: f32[16,128], index: 0, kind: input, shape index: {}]   ;;  %s1578_s1 = inlined_call_operand.vmem [shape: f32[2,8], index: 1, kind: input, shape index: {}]   ;;  %s1579_s2 = inlined_call_operand.hbm [shape: f32[128,384], index: 2, kind: input, shape index: {}]   ;;  %s1580_s3 = inlined_call_operand.vmem [shape: f32[1,384], index: 3, kind: input, shape index: {}]   ;;  %s1581_s4 = inlined_call_operand.vmem [shape: f32[128,128], index: 4, kind: input, shape index: {}]   ;;  %s1582_s5 = inlined_call_operand.vmem [shape: f32[1,128], index: 5, kind: input, shape index: {}]   ;;  %s1583_s6 = inlined_call_operand.vmem [shape: f32[1,128], index: 6, kind: input, shape index: {}]   ;;  %s1584_s7 = inlined_call_operand.vmem [shape: f32[1,128], index: 7, kind: input, shape index: {}]   ;;  %s1585_s8 = inlined_call_operand.hbm [shape: f32[128,512], index: 8, kind: input, shape index: {}]   ;;  %s1586_s9 = inlined_call_operand.vmem [shape: f32[1,512], index: 9, kind: input, shape index: {}]   ;;  %s1587_s10 = inlined_call_operand.hbm [shape: f32[512,128], index: 10, kind: input, shape index: {}]   ;;  %s1588_s11 = inlined_call_operand.vmem [shape: f32[1,128], index: 11, kind: input, shape index: {}]   ;;  %s1589_s12 = inlined_call_operand.vmem [shape: f32[1,128], index: 12, kind: input, shape index: {}]   ;;  %s1590_s13 = inlined_call_operand.vmem [shape: f32[1,128], index: 13, kind: input, shape index: {}]   ;;  %s1591_s14 = inlined_call_operand.vmem [shape: f32[16,128], index: 14, kind: output, shape index: {}]  }
   0x1   :  { %20 = vsyncpa [#allocation5], 0  ;;  %s52_s15 = sshll.u32 %s1585_s8, 4  ;;  %s1261_s16 = smov [#allocation4]   ;;  %s53_s15 = int_to_ptr.hbm [resolvable:$true] %s52_s15 }
   0x2   :  { %s54_s17 = sshll.u32 %s1261_s16, 4  ;;  %s29_s20 = sshll.u32 %s1579_s2, 4  ;;  %s55_s17 = int_to_ptr.vmem [resolvable:$true] %s54_s17  ;;  %s30_s20 = int_to_ptr.hbm [resolvable:$true] %s29_s20 }
   0x3   :  { %s1262_s21 = smov 512   ;;  %s1263_s22 = smov 32  }
   0x4   :  { %60 = dma.hbm_to_vmem [thread:$0]  %s53_s15, 8192, %s55_s17, [#allocation5], %s1262_s21, %s1262_s21, %s1263_s22  }
   0x5   :  { %s1264_s23 = smov [#allocation2]   ;;  %s1265_s25 = smov 384  }
   0x6   :  { %s31_s24 = sshll.u32 %s1264_s23, 4  ;;  %s1266_s26 = smov 24   ;;  %s32_s24 = int_to_ptr.vmem [resolvable:$true] %s31_s24 }
   0x7   :  { %37 = dma.hbm_to_vmem [thread:$0]  %s30_s20, 6144, %s32_s24, [#allocation3], %s1265_s25, %s1265_s25, %s1266_s26  }
   0x8   :  { %s67_s28 = sshll.u32 %s1587_s10, 4  ;;  %s1267_s29 = smov [#allocation6]   ;;  %s68_s28 = int_to_ptr.hbm [resolvable:$true] %s67_s28 }
   0x9   :  { %s69_s30 = sshll.u32 %s1267_s29, 4  ;;  %s1268_s16 = smov 128   ;;  %s70_s30 = int_to_ptr.vmem [resolvable:$true] %s69_s30 }
   0xa   :  { %s1269_s2 = smov 8  }
   0xb   :  { %75 = dma.hbm_to_vmem [thread:$0]  %s68_s28, 8192, %s70_s30, [#allocation5], %s1268_s16, %s1268_s16, %s1269_s2  }
   0xc   :  { %1257 = dma.done.wait [#allocation3], 6144  }
   0xd   :  { %1258 = vsyncadd [#allocation3], 4294961152 }
   0xe   :  { %1259 = dma.done.wait [#allocation5], 16384  }
   0xf   :  { %1260 = vsyncadd [#allocation5], 4294950912  ;;  %v142_v0 = vld [vmem:[#allocation2 + $0x170] sm:$0xff]  ;;  %v139_v1 = vld [vmem:[#allocation2 + $0x158] sm:$0xff]  ;;  %vm224_vm0 = vcmask 523264   ;;  %s1270_s19 = smov 64  }
  0x10   :  { %v141_v2 = vld [vmem:[#allocation2 + $0x168] sm:$0xff]  ;;  %175 = vmatpush.msra.mxu1 %v142_v0  ;;  %v138_v3 = vld [vmem:[#allocation2 + $0x150] sm:$0xff]  ;;  %v136_v4 = vld [vmem:[#allocation2 + $0x140] sm:$0xff]  ;;  %vm254_vm1 = vcmask 64512  }
  0x11   :  { %152 = vmatpush.msra.mxu0 %v141_v2  ;;  %v135_v5 = vld [vmem:[#allocation2 + $0x138] sm:$0xff]  ;;  %v133_v6 = vld [vmem:[#allocation2 + $0x128] sm:$0xff]  ;;  %v132_v7 = vld [vmem:[#allocation2 + $0x120] sm:$0xff] }
  0x12   :  { %176 = vmatpush.msra.mxu1 %v139_v1  ;;  %v130_v8 = vld [vmem:[#allocation2 + $0x110] sm:$0xff]  ;;  %v129_v9 = vld [vmem:[#allocation2 + $0x108] sm:$0xff]  ;;  %v127_v10 = vld [vmem:[#allocation2 + $0xf8] sm:$0xff] }
  0x13   :  { %153 = vmatpush.msra.mxu0 %v138_v3  ;;  %v126_v11 = vld [vmem:[#allocation2 + $0xf0] sm:$0xff]  ;;  %v124_v12 = vld [vmem:[#allocation2 + $0xe0] sm:$0xff]  ;;  %v123_v13 = vld [vmem:[#allocation2 + $0xd8] sm:$0xff] }
  0x14   :  { %177 = vmatpush.msra.mxu1 %v136_v4  ;;  %v143_v14 = vld [vmem:[#allocation2 + $0x178] sm:$0xff]  ;;  %v140_v15 = vld [vmem:[#allocation2 + $0x160] sm:$0xff]  ;;  %v121_v16 = vld [vmem:[#allocation2 + $0xc8] sm:$0xff] }
  0x15   :  { %154 = vmatpush.msra.mxu0 %v135_v5  ;;  %v120_v17 = vld [vmem:[#allocation2 + $0xc0] sm:$0xff]  ;;  %198 = vmatpush.msra.mxu2 %v143_v14  ;;  %v137_v18 = vld [vmem:[#allocation2 + $0x148] sm:$0xff]  ;;  %v118_v19 = vld [vmem:[#allocation2 + $0xb0] sm:$0xff] }
  0x16   :  { %178 = vmatpush.msra.mxu1 %v133_v6  ;;  %v117_v20 = vld [vmem:[#allocation2 + $0xa8] sm:$0xff]  ;;  %v115_v21 = vld [vmem:[#allocation2 + $0x98] sm:$0xff]  ;;  %v134_v22 = vld [vmem:[#allocation2 + $0x130] sm:$0xff] }
  0x17   :  { %155 = vmatpush.msra.mxu0 %v132_v7  ;;  %199 = vmatpush.msra.mxu2 %v140_v15  ;;  %v112_v23 = vld [vmem:[#allocation2 + $0x80] sm:$0xff]  ;;  %v114_v24 = vld [vmem:[#allocation2 + $0x90] sm:$0xff]  ;;  %v111_v25 = vld [vmem:[#allocation2 + $0x78] sm:$0xff] }
  0x18   :  { %179 = vmatpush.msra.mxu1 %v130_v8  ;;  %v131_v26 = vld [vmem:[#allocation2 + $0x118] sm:$0xff]  ;;  %v128_v27 = vld [vmem:[#allocation2 + $0x100] sm:$0xff]  ;;  %v109_v28 = vld [vmem:[#allocation2 + $0x68] sm:$0xff] }
  0x19   :  { %156 = vmatpush.msra.mxu0 %v129_v9  ;;  %200 = vmatpush.msra.mxu2 %v137_v18  ;;  %v108_v29 = vld [vmem:[#allocation2 + $0x60] sm:$0xff]  ;;  %v125_v30 = vld [vmem:[#allocation2 + $0xe8] sm:$0xff]  ;;  %v106_v31 = vld [vmem:[#allocation2 + $0x50] sm:$0xff] }
  0x1a   :  { %180 = vmatpush.msra.mxu1 %v127_v10  ;;  %v105_v32 = vld [vmem:[#allocation2 + $0x48] sm:$0xff]  ;;  %v122_v33 = vld [vmem:[#allocation2 + $0xd0] sm:$0xff]  ;;  %v103_v34 = vld [vmem:[#allocation2 + $0x38] sm:$0xff] }
  0x1b   :  { %157 = vmatpush.msra.mxu0 %v126_v11  ;;  %201 = vmatpush.msra.mxu2 %v134_v22  ;;  %v102_v35 = vld [vmem:[#allocation2 + $0x30] sm:$0xff]  ;;  %v119_v36 = vld [vmem:[#allocation2 + $0xb8] sm:$0xff]  ;;  %v100_v37 = vld [vmem:[#allocation2 + $0x20] sm:$0xff] }
  0x1c   :  { %181 = vmatpush.msra.mxu1 %v124_v12  ;;  %v99_v38 = vld [vmem:[#allocation2 + $0x18] sm:$0xff]  ;;  %v116_v39 = vld [vmem:[#allocation2 + $0xa0] sm:$0xff]  ;;  %v97_v40 = vld [vmem:[#allocation2 + $0x8] sm:$0xff] }
  0x1d   :  { %158 = vmatpush.msra.mxu0 %v123_v13  ;;  %202 = vmatpush.msra.mxu2 %v131_v26  ;;  %v96_v41 = vld [vmem:[#allocation2] sm:$0xff]  ;;  %v113_v43 = vld [vmem:[#allocation2 + $0x88] sm:$0xff]  ;;  %v110_v44 = vld [vmem:[#allocation2 + $0x70] sm:$0xff] }
  0x1e   :  { %182 = vmatpush.msra.mxu1 %v121_v16  ;;  %v1359_v42 = vld [vmem:[%s1577_s0] sm:$0xff]  ;;  %v107_v45 = vld [vmem:[#allocation2 + $0x58] sm:$0xff]  ;;  %v101_v47 = vld [vmem:[#allocation2 + $0x28] sm:$0xff] }
  0x1f   :  { %159 = vmatpush.msra.mxu0 %v120_v17  ;;  %203 = vmatpush.msra.mxu2 %v128_v27  ;;  %v104_v46 = vld [vmem:[#allocation2 + $0x40] sm:$0xff]  ;;  %v98_v48 = vld [vmem:[#allocation2 + $0x10] sm:$0xff]  ;;  %v1395_v9 = vld [vmem:[%s1577_s0 + $0x8] sm:$0xff] }
  0x20   :  { %183 = vmatpush.msra.mxu1 %v118_v19  ;;  %v1367_v49 = vld [vmem:[%s1580_s3] sm:$0x7] }
  0x21   :  { %160 = vmatpush.msra.mxu0 %v117_v20  ;;  %204 = vmatpush.msra.mxu2 %v125_v30  ;;  %v147_v50 = vperm.slane %v1367_v49, 1  ;;  %v146_v51 = vperm.slane %v1367_v49, 0  ;;  %v148_v56 = vperm.slane %v1367_v49, 2  ;;  %v221_v60 = vld [vmem:[%s1578_s1] sm:$0x3] }
  0x22   :  { %184 = vmatpush.msra.mxu1 %v115_v21  ;;  %v222_v61 = vsub.f32 1.0, %v221_v60 }
  0x23   :  { %161 = vmatpush.msra.mxu0 %v114_v24  ;;  %205 = vmatpush.msra.mxu2 %v122_v33 }
  0x24   :  { %185 = vmatpush.msra.mxu1 %v112_v23  ;;  %v1387_v62 = vmul.f32 -10000.0, %v222_v61 }
  0x25   :  { %162 = vmatpush.msra.mxu0 %v111_v25  ;;  %206 = vmatpush.msra.mxu2 %v119_v36 }
  0x26   :  { %186 = vmatpush.msra.mxu1 %v109_v28  ;;  %v252_v63 = vperm.slane %v1387_v62, 0 }
  0x27   :  { %163 = vmatpush.msra.mxu0 %v108_v29  ;;  %207 = vmatpush.msra.mxu2 %v116_v39 }
  0x28   :  { %187 = vmatpush.msra.mxu1 %v106_v31 }
  0x29   :  { %164 = vmatpush.msra.mxu0 %v105_v32  ;;  %208 = vmatpush.msra.mxu2 %v113_v43  ;;  %v415_v43 = vperm.slane %v1387_v62, 1 }
  0x2a   :  { %188 = vmatpush.msra.mxu1 %v103_v34 }
  0x2b   :  { %165 = vmatpush.msra.mxu0 %v102_v35  ;;  %209 = vmatpush.msra.mxu2 %v110_v44 }
  0x2c   :  { %189 = vmatpush.msra.mxu1 %v100_v37 }
  0x2d   :  { %166 = vmatpush.msra.mxu0 %v99_v38  ;;  %210 = vmatpush.msra.mxu2 %v107_v45 }
  0x2e   :  { %190 = vmatpush.msra.mxu1 %v97_v40 }
  0x2f   :  { %167 = vmatpush.msra.mxu0 %v96_v41  ;;  %191 = vmatmul.f32.vlgmr.msra.gmra.mxu1 %v1359_v42 }
  0x30   :  { %168 = vmatmul.f32.vlgmr.msra.gmra.mxu0 %v1359_v42  ;;  %211 = vmatpush.msra.mxu2 %v104_v46 }
  0x32   :  { %212 = vmatpush.msra.mxu2 %v101_v47 }
  0x34   :  { %213 = vmatpush.msra.mxu2 %v98_v48 }
  0x35   :  { %214 = vmatmul.f32.vlgmr.msra.gmra.mxu2 %v1359_v42 }
  0x37   :  { %194 = vmatmul.f32.gmra.mxu1 %v1395_v9 }
  0x38   :  { %171 = vmatmul.f32.gmra.mxu0 %v1395_v9 }
  0x3d   :  { %217 = vmatmul.f32.gmra.mxu2 %v1395_v9 }
  0xac   :  { %v192_v52 = vpop.f32.mrf.mxu1 }
  0xad   :  { %v169_v53 = vpop.f32.mrf.mxu0  ;;  %v193_v54 = vadd.f32 %v192_v52, %v147_v50 }
  0xae   :  { %v170_v55 = vadd.f32 %v169_v53, %v146_v51 }
  0xaf   :  { %304 = vrot.lane.b32.xlu1 %v193_v54, %s1270_s19  ;;  %1114 = vmatpush.xpose.msk.msra.mxu3 %vm224_vm0, %v193_v54 }
  0xb2   :  { %1115 = vmatmul.msk.f32.vlgmr.msra.gmra.mxu3 %vm224_vm0, %v170_v55 }
  0xb4   :  { %v195_v30 = vpop.f32.mrf.mxu1 }
  0xb5   :  { %v172_v23 = vpop.f32.mrf.mxu0  ;;  %v196_v31 = vadd.f32 %v195_v30, %v147_v50 }
  0xb6   :  { %v173_v24 = vadd.f32 %v172_v23, %v146_v51  ;;  %v565_v23 = vld [vmem:[%s1581_s4 + $0x78] sm:$0xff] }
  0xb7   :  { %302 = vrot.lane.b32.xlu1 %v170_v55, %s1270_s19  ;;  %570 = vmatpush.msrb.mxu2 %v565_v23  ;;  %v707_v23 = vld [vmem:[#allocation4 + $0x1a8] sm:$0xff] }
  0xb8   :  { %v215_v57 = vpop.f32.mrf.mxu2 }
  0xb9   :  { %v1380_v58 = vadd.f32 %v215_v57, %v148_v56 }
  0xbb   :  { %297 = vmatpush.msrb.mxu3 %v1380_v58 }
  0xbf   :  { %464 = vrot.lane.b32.xlu1 %v173_v24, %s1270_s19 }
  0xc0   :  { %v218_v60 = vpop.f32.mrf.mxu2 }
  0xc1   :  { %v219_v61 = vadd.f32 %v218_v60, %v148_v56 }
 0x121   :  { %v305_v59 = vpop.permute.xlu1 %304 }
 0x122   :  { %1117 = vmatpush.xpose.msk.msra.mxu3 %vm224_vm0, %v305_v59 }
 0x129   :  { %v303_v22 = vpop.permute.xlu1 %302 }
 0x131   :  { %v465_v36 = vpop.permute.xlu1 %464 }
 0x135   :  { %v248_v0 = vpop.f32.mrf.mxu3 }
 0x136   :  { %v251_v1 = vmul.f32 0.125, %v248_v0 }
 0x138   :  { %v253_v2 = vadd.f32 %v252_v63, %v251_v1 }
 0x13a   :  { %v255_v3 = vsel %vm254_vm1, %v253_v2, -inf }
 0x13b   :  { %256 = vmax.xlane.f32.xlu0 %v255_v3 }
 0x1ae   :  { %v257_v4 = vpop.xlane.xlu0 %256 }
 0x1af   :  { %v258_v5 = vsub.f32 %v253_v2, %v257_v4 }
 0x1b1   :  { %v259_v6 = vmul.f32 1.442695, %v258_v5 }
 0x1b3   :  { %1143 = vpow2.f32 %v259_v6 }
 0x1b9   :  { %v1144_v7 = vpop.eup %1143 }
 0x1ba   :  { %v261_v8 = vsel %vm254_vm1, %v1144_v7, 0.0 }
 0x1bb   :  { %262 = vadd.xlane.f32.xlu0 %v261_v8 }
 0x22e   :  { %v263_v10 = vpop.xlane.xlu0 %262 }
 0x22f   :  { %1145 = vrcp.f32 %v263_v10  ;;  %v275_v14 = vand.u32 2147483648, %v263_v10  ;;  %v273_v16 = vand.u32 2147483647, %v263_v10  ;;  %vm269_vm3 = vweird.f32 %v263_v10 }
 0x231   :  { %v276_v18 = vor.u32 1.1754944e-38, %v275_v14  ;;  %vm274_vm5 = vcmp.eq.f32.partialorder %v273_v16, 8.507059e+37 }
 0x235   :  { %v1146_v11 = vpop.eup %1145 }
 0x236   :  { %v265_v12 = vmul.f32 %v1146_v11, %v263_v10  ;;  %vm270_vm2 = vweird.f32 %v1146_v11 }
 0x237   :  { %vm271_vm4 = vmor %vm269_vm3, %vm270_vm2 }
 0x238   :  { %v266_v13 = vsub.f32 1.0, %v265_v12 }
 0x23a   :  { %v267_v15 = vmul.f32 %v1146_v11, %v266_v13 }
 0x23c   :  { %v268_v17 = vadd.f32 %v1146_v11, %v267_v15 }
 0x23e   :  { %v272_v19 = vsel %vm271_vm4, %v1146_v11, %v268_v17 }
 0x23f   :  { %v277_v20 = vsel %vm274_vm5, %v276_v18, %v272_v19 }
 0x240   :  { %v278_v21 = vmul.f32 %v1144_v7, %v277_v20 }
 0x242   :  { %1116 = vmatmul.msk.f32.vlgmr.msrb.gmra.mxu3 %vm254_vm1, %v278_v21 }
 0x24a   :  { %1118 = vmatmul.msk.f32.vlgmr.msra.gmra.mxu3 %vm224_vm0, %v303_v22 }
 0x2c5   :  { %v1403_v25 = vpop.f32.mrf.mxu3 }
 0x2cd   :  { %v327_v26 = vpop.f32.mrf.mxu3 }
 0x2ce   :  { %v330_v27 = vmul.f32 0.125, %v327_v26  ;;  %v563_v26 = vld [vmem:[%s1581_s4 + $0x68] sm:$0xff] }
 0x2d0   :  { %v331_v28 = vadd.f32 %v330_v27, %v252_v63  ;;  %v562_v27 = vld [vmem:[%s1581_s4 + $0x60] sm:$0xff] }
 0x2d2   :  { %v332_v29 = vsel %vm254_vm1, %v331_v28, -inf }
 0x2d3   :  { %333 = vmax.xlane.f32.xlu2 %v332_v29  ;;  %v561_v29 = vld [vmem:[%s1581_s4 + $0x58] sm:$0xff] }
 0x2eb   :  { %466 = vrot.lane.b32.xlu2 %v196_v31, %s1270_s19 }
 0x346   :  { %v334_v32 = vpop.xlane.xlu2 %333 }
 0x347   :  { %v335_v33 = vsub.f32 %v331_v28, %v334_v32  ;;  %v559_v32 = vld [vmem:[%s1581_s4 + $0x48] sm:$0xff] }
 0x349   :  { %v336_v34 = vmul.f32 1.442695, %v335_v33  ;;  %v558_v33 = vld [vmem:[%s1581_s4 + $0x40] sm:$0xff] }
 0x34b   :  { %1147 = vpow2.f32 %v336_v34  ;;  %v557_v34 = vld [vmem:[%s1581_s4 + $0x38] sm:$0xff] }
 0x34e   :  { %v467_v35 = vpop.permute.xlu2 %466 }
 0x34f   :  { %1123 = vmatpush.xpose.msk.msrb.mxu0 %vm224_vm0, %v467_v35  ;;  %v556_v35 = vld [vmem:[%s1581_s4 + $0x30] sm:$0xff] }
 0x351   :  { %v1148_v37 = vpop.eup %1147 }
 0x352   :  { %1124 = vmatmul.msk.f32.vlgmr.msrb.gmra.mxu0 %vm224_vm0, %v465_v36  ;;  %v338_v38 = vsel %vm254_vm1, %v1148_v37, 0.0  ;;  %v555_v36 = vld [vmem:[%s1581_s4 + $0x28] sm:$0xff] }
 0x353   :  { %339 = vadd.xlane.f32.xlu0 %v338_v38  ;;  %v553_v38 = vld [vmem:[%s1581_s4 + $0x18] sm:$0xff] }
 0x367   :  { %357 = vrot.lane.b32.xlu0 %v1380_v58, %s1270_s19 }
 0x3c6   :  { %v340_v39 = vpop.xlane.xlu0 %339 }
 0x3c7   :  { %1149 = vrcp.f32 %v340_v39  ;;  %v352_v47 = vand.u32 2147483648, %v340_v39  ;;  %v350_v50 = vand.u32 2147483647, %v340_v39  ;;  %vm346_vm7 = vweird.f32 %v340_v39 }
 0x3c9   :  { %v353_v54 = vor.u32 1.1754944e-38, %v352_v47  ;;  %vm351_vm9 = vcmp.eq.f32.partialorder %v350_v50, 8.507059e+37 }
 0x3cd   :  { %v1150_v40 = vpop.eup %1149 }
 0x3ce   :  { %v342_v41 = vmul.f32 %v1150_v40, %v340_v39  ;;  %vm347_vm6 = vweird.f32 %v1150_v40  ;;  %v552_v39 = vld [vmem:[%s1581_s4 + $0x10] sm:$0xff] }
 0x3cf   :  { %v489_v44 = vpop.f32.mrf.mxu0  ;;  %vm348_vm8 = vmor %vm346_vm7, %vm347_vm6 }
 0x3d0   :  { %v343_v45 = vsub.f32 1.0, %v342_v41  ;;  %v492_v46 = vmul.f32 0.125, %v489_v44  ;;  %v550_v41 = vld [vmem:[%s1581_s4] sm:$0xff] }
 0x3d2   :  { %v344_v48 = vmul.f32 %v1150_v40, %v343_v45  ;;  %v493_v51 = vadd.f32 %v492_v46, %v415_v43 }
 0x3d4   :  { %v345_v52 = vadd.f32 %v1150_v40, %v344_v48  ;;  %v494_v53 = vsel %vm254_vm1, %v493_v51, -inf }
 0x3d5   :  { %495 = vmax.xlane.f32.xlu1 %v494_v53 }
 0x3d6   :  { %v349_v55 = vsel %vm348_vm8, %v1150_v40, %v345_v52  ;;  %v551_v40 = vld [vmem:[%s1581_s4 + $0x8] sm:$0xff] }
 0x3d7   :  { %v354_v57 = vsel %vm351_vm9, %v353_v54, %v349_v55 }
 0x3d8   :  { %v355_v58 = vmul.f32 %v1148_v37, %v354_v57  ;;  %v554_v37 = vld [vmem:[%s1581_s4 + $0x20] sm:$0xff] }
 0x3d9   :  { %v358_v59 = vpop.permute.xlu0 %357 }
 0x3da   :  { %378 = vmatpush.msrb.mxu3 %v358_v59 }
 0x3db   :  { %1119 = vmatmul.msk.f32.vlgmr.msrb.gmra.mxu3 %vm254_vm1, %v355_v58 }
 0x3dc   :  { %1120 = vmatpush.xpose.msk.msra.mxu3 %vm224_vm0, %v196_v31  ;;  %v560_v31 = vld [vmem:[%s1581_s4 + $0x50] sm:$0xff] }
 0x3e0   :  { %459 = vmatpush.msrb.mxu3 %v219_v61 }
 0x3e3   :  { %1121 = vmatmul.msk.f32.vlgmr.msra.gmra.mxu3 %vm224_vm0, %v173_v24  ;;  %v564_v24 = vld [vmem:[%s1581_s4 + $0x70] sm:$0xff] }
 0x3e4   :  { %571 = vmatpush.msrb.mxu2 %v564_v24  ;;  %v708_v24 = vld [vmem:[#allocation4 + $0x1b0] sm:$0xff] }
 0x3e6   :  { %572 = vmatpush.msrb.mxu2 %v563_v26  ;;  %v709_v26 = vld [vmem:[#allocation4 + $0x1b8] sm:$0xff] }
 0x3e8   :  { %573 = vmatpush.msrb.mxu2 %v562_v27  ;;  %v702_v27 = vld [vmem:[#allocation4 + $0x180] sm:$0xff] }
 0x3ea   :  { %574 = vmatpush.msrb.mxu2 %v561_v29  ;;  %v704_v29 = vld [vmem:[#allocation4 + $0x190] sm:$0xff] }
 0x3ec   :  { %575 = vmatpush.msrb.mxu2 %v560_v31  ;;  %v699_v31 = vld [vmem:[#allocation4 + $0x168] sm:$0xff] }
 0x3ee   :  { %519 = vrot.lane.b32.xlu1 %v219_v61, %s1270_s19  ;;  %576 = vmatpush.msrb.mxu2 %v559_v32  ;;  %v700_v32 = vld [vmem:[#allocation4 + $0x170] sm:$0xff] }
 0x3f0   :  { %577 = vmatpush.msrb.mxu2 %v558_v33  ;;  %v701_v33 = vld [vmem:[#allocation4 + $0x178] sm:$0xff] }
 0x3f2   :  { %578 = vmatpush.msrb.mxu2 %v557_v34  ;;  %v694_v34 = vld [vmem:[#allocation4 + $0x140] sm:$0xff] }
 0x3f4   :  { %579 = vmatpush.msrb.mxu2 %v556_v35  ;;  %v695_v35 = vld [vmem:[#allocation4 + $0x148] sm:$0xff] }
 0x3f6   :  { %580 = vmatpush.msrb.mxu2 %v555_v36  ;;  %v696_v36 = vld [vmem:[#allocation4 + $0x150] sm:$0xff] }
 0x3f8   :  { %581 = vmatpush.msrb.mxu2 %v554_v37  ;;  %v697_v37 = vld [vmem:[#allocation4 + $0x158] sm:$0xff] }
 0x3fa   :  { %582 = vmatpush.msrb.mxu2 %v553_v38  ;;  %v690_v38 = vld [vmem:[#allocation4 + $0x120] sm:$0xff] }
 0x3fc   :  { %583 = vmatpush.msrb.mxu2 %v552_v39  ;;  %v691_v39 = vld [vmem:[#allocation4 + $0x128] sm:$0xff] }
 0x3fe   :  { %584 = vmatpush.msrb.mxu2 %v551_v40  ;;  %v692_v40 = vld [vmem:[#allocation4 + $0x130] sm:$0xff] }
 0x400   :  { %585 = vmatpush.msrb.mxu2 %v550_v41  ;;  %v693_v41 = vld [vmem:[#allocation4 + $0x138] sm:$0xff] }
 0x448   :  { %v496_v62 = vpop.xlane.xlu1 %495 }
 0x449   :  { %v497_v63 = vsub.f32 %v493_v51, %v496_v62 }
 0x44b   :  { %v498_v0 = vmul.f32 1.442695, %v497_v63 }
 0x44d   :  { %1151 = vpow2.f32 %v498_v0 }
 0x453   :  { %v1152_v1 = vpop.eup %1151 }
 0x454   :  { %v500_v2 = vsel %vm254_vm1, %v1152_v1, 0.0 }
 0x455   :  { %501 = vadd.xlane.f32.xlu0 %v500_v2  ;;  %v1271_v2 = vmov 128.0  }
 0x45e   :  { %v380_v3 = vpop.f32.mrf.mxu3 }
 0x460   :  { %v520_v49 = vpop.permute.xlu1 %519 }
 0x461   :  { %540 = vmatpush.msrb.mxu1 %v520_v49  ;;  %v714_v49 = vld [vmem:[#allocation4 + $0x1e0] sm:$0xff] }
 0x462   :  { %728 = vmatpush.msra.mxu3 %v714_v49  ;;  %v658_v49 = vld [vmem:[#allocation4 + $0x20] sm:$0xff] }
 0x466   :  { %v411_v4 = vpop.f32.mrf.mxu3 }
 0x467   :  { %v414_v5 = vmul.f32 0.125, %v411_v4 }
 0x469   :  { %v416_v6 = vadd.f32 %v415_v43, %v414_v5 }
 0x46b   :  { %v417_v7 = vsel %vm254_vm1, %v416_v6, -inf }
 0x46c   :  { %418 = vmax.xlane.f32.xlu2 %v417_v7 }
 0x4c8   :  { %v502_v56 = vpop.xlane.xlu0 %501 }
 0x4c9   :  { %1153 = vrcp.f32 %v502_v56  ;;  %v514_v12 = vand.u32 2147483648, %v502_v56  ;;  %v512_v14 = vand.u32 2147483647, %v502_v56  ;;  %vm508_vm11 = vweird.f32 %v502_v56 }
 0x4cb   :  { %v515_v16 = vor.u32 1.1754944e-38, %v514_v12  ;;  %vm513_vm13 = vcmp.eq.f32.partialorder %v512_v14, 8.507059e+37  ;;  %v713_v14 = vld [vmem:[#allocation4 + $0x1d8] sm:$0xff] }
 0x4cf   :  { %v1154_v8 = vpop.eup %1153 }
 0x4d0   :  { %v504_v10 = vmul.f32 %v1154_v8, %v502_v56  ;;  %vm509_vm10 = vweird.f32 %v1154_v8  ;;  %v715_v56 = vld [vmem:[#allocation4 + $0x1e8] sm:$0xff] }
 0x4d1   :  { %vm510_vm12 = vmor %vm508_vm11, %vm509_vm10  ;;  %751 = vmatpush.msra.mxu0 %v715_v56  ;;  %v659_v56 = vld [vmem:[#allocation4 + $0x28] sm:$0xff] }
 0x4d2   :  { %v505_v11 = vsub.f32 1.0, %v504_v10  ;;  %v710_v10 = vld [vmem:[#allocation4 + $0x1c0] sm:$0xff] }
 0x4d3   :  { %729 = vmatpush.msra.mxu3 %v710_v10  ;;  %v654_v10 = vld [vmem:[#allocation4] sm:$0xff] }
 0x4d4   :  { %v506_v13 = vmul.f32 %v1154_v8, %v505_v11  ;;  %v711_v11 = vld [vmem:[#allocation4 + $0x1c8] sm:$0xff] }
 0x4d5   :  { %752 = vmatpush.msra.mxu0 %v711_v11  ;;  %v655_v11 = vld [vmem:[#allocation4 + $0x8] sm:$0xff] }
 0x4d6   :  { %v507_v15 = vadd.f32 %v1154_v8, %v506_v13  ;;  %v712_v13 = vld [vmem:[#allocation4 + $0x1d0] sm:$0xff] }
 0x4d7   :  { %753 = vmatpush.msra.mxu0 %v707_v23 }
 0x4d8   :  { %v511_v17 = vsel %vm510_vm12, %v1154_v8, %v507_v15  ;;  %v716_v8 = vld [vmem:[#allocation4 + $0x1f0] sm:$0xff] }
 0x4d9   :  { %v516_v18 = vsel %vm513_vm13, %v515_v16, %v511_v17  ;;  %774 = vmatpush.msra.mxu1 %v716_v8  ;;  %v660_v8 = vld [vmem:[#allocation4 + $0x30] sm:$0xff] }
 0x4da   :  { %v517_v19 = vmul.f32 %v1152_v1, %v516_v18 }
 0x4db   :  { %775 = vmatpush.msra.mxu1 %v712_v13  ;;  %v656_v13 = vld [vmem:[#allocation4 + $0x10] sm:$0xff] }
 0x4dc   :  { %1125 = vmatmul.msk.f32.vlgmr.msrb.gmra.mxu1 %vm254_vm1, %v517_v19 }
 0x4dd   :  { %776 = vmatpush.msra.mxu1 %v708_v24 }
 0x4df   :  { %v419_v20 = vpop.xlane.xlu2 %418  ;;  %777 = vmatpush.msra.mxu1 %v704_v29 }
 0x4e0   :  { %v420_v21 = vsub.f32 %v416_v6, %v419_v20 }
 0x4e1   :  { %778 = vmatpush.msra.mxu1 %v700_v32 }
 0x4e2   :  { %v421_v22 = vmul.f32 1.442695, %v420_v21 }
 0x4e3   :  { %779 = vmatpush.msra.mxu1 %v696_v36  ;;  %v922_v36 = vld [vmem:[#allocation6 + $0xf0] sm:$0xff] }
 0x4e4   :  { %1155 = vpow2.f32 %v421_v22  ;;  %v706_v22 = vld [vmem:[#allocation4 + $0x1a0] sm:$0xff] }
 0x4e5   :  { %730 = vmatpush.msra.mxu3 %v706_v22  ;;  %780 = vmatpush.msra.mxu1 %v692_v40  ;;  %v907_v40 = vld [vmem:[#allocation6 + $0x78] sm:$0xff] }
 0x4e7   :  { %731 = vmatpush.msra.mxu3 %v702_v27  ;;  %v1499_v27 = vld [vmem:[%s1583_s6] ss:$0 sm:$0xff] }
 0x4ea   :  { %v1156_v28 = vpop.eup %1155 }
 0x4eb   :  { %v423_v30 = vsel %vm254_vm1, %v1156_v28, 0.0 }
 0x4ec   :  { %424 = vadd.xlane.f32.xlu2 %v423_v30  ;;  %v705_v30 = vld [vmem:[#allocation4 + $0x198] sm:$0xff] }
 0x504   :  { %384 = vrot.lane.b32.xlu2 %v380_v3, %s1270_s19 }
 0x559   :  { %v542_v43 = vpop.f32.mrf.mxu1 }
 0x55a   :  { %546 = vrot.lane.b32.xlu0 %v542_v43, %s1270_s19  ;;  %v686_v43 = vld [vmem:[#allocation4 + $0x100] sm:$0xff] }
 0x55f   :  { %v425_v44 = vpop.xlane.xlu2 %424 }
 0x560   :  { %1157 = vrcp.f32 %v425_v44  ;;  %v437_v51 = vand.u32 2147483648, %v425_v44  ;;  %v435_v53 = vand.u32 2147483647, %v425_v44  ;;  %vm431_vm15 = vweird.f32 %v425_v44 }
 0x561   :  { %1159 = vrcp.f32 %v1271_v2  ;;  %v668_v2 = vld [vmem:[#allocation4 + $0x70] sm:$0xff] }
 0x562   :  { %v438_v55 = vor.u32 1.1754944e-38, %v437_v51  ;;  %vm436_vm3 = vcmp.eq.f32.partialorder %v435_v53, 8.507059e+37  ;;  %v685_v51 = vld [vmem:[#allocation4 + $0xf8] sm:$0xff]  ;;  %v679_v53 = vld [vmem:[#allocation4 + $0xc8] sm:$0xff] }
 0x566   :  { %v1158_v45 = vpop.eup %1157 }
 0x567   :  { %v427_v46 = vmul.f32 %v1158_v45, %v425_v44  ;;  %v385_v47 = vpop.permute.xlu2 %384  ;;  %vm432_vm14 = vweird.f32 %v1158_v45  ;;  %v1160_v3 = vpop.eup %1159  ;;  %v687_v44 = vld [vmem:[#allocation4 + $0x108] sm:$0xff] }
 0x568   :  { %v387_v48 = vsel %vm224_vm0, %v1403_v25, %v385_v47  ;;  %vm433_vm2 = vmor %vm431_vm15, %vm432_vm14  ;;  %v1137_v25 = vld [vmem:[%s1582_s5] ss:$0 sm:$0xff]  ;;  %v602_v4 = vmul.f32 128.0, %v1160_v3 }
 0x569   :  { %v428_v50 = vsub.f32 1.0, %v427_v46  ;;  %586 = vmatmul.f32.vlgmr.msrb.gmra.mxu2 %v387_v48  ;;  %v689_v46 = vld [vmem:[#allocation4 + $0x118] sm:$0xff]  ;;  %v682_v47 = vld [vmem:[#allocation4 + $0xe0] sm:$0xff]  ;;  %v683_v48 = vld [vmem:[#allocation4 + $0xe8] sm:$0xff] }
 0x56a   :  { %v603_v5 = vsub.f32 1.0, %v602_v4  ;;  %v662_v4 = vld [vmem:[#allocation4 + $0x40] sm:$0xff] }
 0x56b   :  { %v429_v52 = vmul.f32 %v1158_v45, %v428_v50  ;;  %v684_v50 = vld [vmem:[#allocation4 + $0xf0] sm:$0xff] }
 0x56c   :  { %v604_v6 = vmul.f32 %v1160_v3, %v603_v5  ;;  %v663_v5 = vld [vmem:[#allocation4 + $0x48] sm:$0xff] }
 0x56d   :  { %v430_v54 = vadd.f32 %v1158_v45, %v429_v52  ;;  %v678_v52 = vld [vmem:[#allocation4 + $0xc0] sm:$0xff] }
 0x56e   :  { %v605_v7 = vadd.f32 %v1160_v3, %v604_v6  ;;  %v664_v6 = vld [vmem:[#allocation4 + $0x50] sm:$0xff] }
 0x56f   :  { %v434_v57 = vsel %vm433_vm2, %v1158_v45, %v430_v54  ;;  %v688_v45 = vld [vmem:[#allocation4 + $0x110] sm:$0xff] }
 0x570   :  { %v439_v58 = vsel %vm436_vm3, %v438_v55, %v434_v57  ;;  %781 = vmatpush.msra.mxu1 %v688_v45  ;;  %v680_v54 = vld [vmem:[#allocation4 + $0xd0] sm:$0xff]  ;;  %v681_v55 = vld [vmem:[#allocation4 + $0xd8] sm:$0xff]  ;;  %v674_v57 = vld [vmem:[#allocation4 + $0xa0] sm:$0xff] }
 0x571   :  { %v440_v59 = vmul.f32 %v1156_v28, %v439_v58  ;;  %v703_v28 = vld [vmem:[#allocation4 + $0x188] sm:$0xff]  ;;  %v906_v45 = vld [vmem:[#allocation6 + $0x70] sm:$0xff] }
 0x572   :  { %754 = vmatpush.msra.mxu0 %v703_v28  ;;  %782 = vmatpush.msra.mxu1 %v684_v50  ;;  %v675_v58 = vld [vmem:[#allocation4 + $0xa8] sm:$0xff] }
 0x573   :  { %1122 = vmatmul.msk.f32.vlgmr.msrb.gmra.mxu3 %vm254_vm1, %v440_v59  ;;  %vm606_vm1 = vweird.f32 %v1160_v3  ;;  %v676_v59 = vld [vmem:[#allocation4 + $0xb0] sm:$0xff]  ;;  %v905_v50 = vld [vmem:[#allocation6 + $0x68] sm:$0xff] }
 0x574   :  { %v1484_v12 = vsel %vm606_vm1, %v1160_v3, %v605_v7  ;;  %755 = vmatpush.msra.mxu0 %v699_v31  ;;  %783 = vmatpush.msra.mxu1 %v680_v54  ;;  %v669_v3 = vld [vmem:[#allocation4 + $0x78] sm:$0xff]  ;;  %v1506_v31 = vld [vmem:[%s1584_s7] ss:$0 sm:$0xff] }
 0x575   :  { %v665_v7 = vld [vmem:[#allocation4 + $0x58] sm:$0xff]  ;;  %v904_v54 = vld [vmem:[#allocation6 + $0x60] sm:$0xff] }
 0x576   :  { %756 = vmatpush.msra.mxu0 %v695_v35  ;;  %784 = vmatpush.msra.mxu1 %v676_v59  ;;  %v903_v59 = vld [vmem:[#allocation6 + $0x58] sm:$0xff] }
 0x578   :  { %757 = vmatpush.msra.mxu0 %v691_v39  ;;  %v937_v39 = vld [vmem:[#allocation6 + $0x168] sm:$0xff] }
 0x57a   :  { %758 = vmatpush.msra.mxu0 %v687_v44  ;;  %v955_v44 = vld [vmem:[#allocation6 + $0x1f8] sm:$0xff] }
 0x57c   :  { %759 = vmatpush.msra.mxu0 %v683_v48  ;;  %v954_v48 = vld [vmem:[#allocation6 + $0x1f0] sm:$0xff] }
 0x57e   :  { %760 = vmatpush.msra.mxu0 %v679_v53  ;;  %v953_v53 = vld [vmem:[#allocation6 + $0x1e8] sm:$0xff] }
 0x580   :  { %761 = vmatpush.msra.mxu0 %v675_v58  ;;  %v952_v58 = vld [vmem:[#allocation6 + $0x1e0] sm:$0xff] }
 0x5cc   :  { %v547_v63 = vpop.permute.xlu0 %546 }
 0x5ec   :  { %v587_v60 = vpop.f32.mrf.mxu2 }
 0x5ed   :  { %v588_v61 = vadd.f32 %v1137_v25, %v587_v60  ;;  %v670_v60 = vld [vmem:[#allocation4 + $0x80] sm:$0xff] }
 0x5ef   :  { %v593_v62 = vadd.f32 %v588_v61, %v1359_v42  ;;  %v717_v42 = vld [vmem:[#allocation4 + $0x1f8] sm:$0xff]  ;;  %v671_v61 = vld [vmem:[#allocation4 + $0x88] sm:$0xff] }
 0x5f0   :  { %797 = vmatpush.msra.mxu2 %v717_v42  ;;  %762 = vmatpush.msra.mxu0 %v671_v61  ;;  %v661_v42 = vld [vmem:[#allocation4 + $0x38] sm:$0xff] }
 0x5f1   :  { %597 = vadd.xlane.f32.xlu1 %v593_v62  ;;  %v951_v61 = vld [vmem:[#allocation6 + $0x1d8] sm:$0xff] }
 0x5f2   :  { %798 = vmatpush.msra.mxu2 %v713_v14  ;;  %v657_v14 = vld [vmem:[#allocation4 + $0x18] sm:$0xff] }
 0x5f4   :  { %799 = vmatpush.msra.mxu2 %v709_v26 }
 0x5f6   :  { %v461_v0 = vpop.f32.mrf.mxu3  ;;  %800 = vmatpush.msra.mxu2 %v705_v30 }
 0x5f7   :  { %v549_v1 = vsel %vm224_vm0, %v461_v0, %v547_v63  ;;  %v673_v63 = vld [vmem:[#allocation4 + $0x98] sm:$0xff]  ;;  %v666_v0 = vld [vmem:[#allocation4 + $0x60] sm:$0xff] }
 0x5f8   :  { %589 = vmatmul.f32.gmra.mxu2 %v549_v1  ;;  %v667_v1 = vld [vmem:[#allocation4 + $0x68] sm:$0xff] }
 0x5f9   :  { %801 = vmatpush.msra.mxu2 %v701_v33  ;;  %763 = vmatpush.msra.mxu0 %v667_v1  ;;  %v950_v1 = vld [vmem:[#allocation6 + $0x1d0] sm:$0xff] }
 0x5fb   :  { %802 = vmatpush.msra.mxu2 %v697_v37  ;;  %764 = vmatpush.msra.mxu0 %v663_v5  ;;  %v938_v37 = vld [vmem:[#allocation6 + $0x170] sm:$0xff]  ;;  %v949_v5 = vld [vmem:[#allocation6 + $0x1c8] sm:$0xff] }
 0x5fd   :  { %803 = vmatpush.msra.mxu2 %v693_v41  ;;  %765 = vmatpush.msra.mxu0 %v659_v56  ;;  %v920_v41 = vld [vmem:[#allocation6 + $0xe0] sm:$0xff] }
 0x5fe   :  { %v948_v56 = vld [vmem:[#allocation6 + $0x1c0] sm:$0xff] }
 0x5ff   :  { %804 = vmatpush.msra.mxu2 %v689_v46  ;;  %766 = vmatpush.msra.mxu0 %v655_v11  ;;  %v919_v46 = vld [vmem:[#allocation6 + $0xd8] sm:$0xff] }
 0x600   :  { %v947_v11 = vld [vmem:[#allocation6 + $0x1b8] sm:$0xff] }
 0x601   :  { %805 = vmatpush.msra.mxu2 %v685_v51  ;;  %v918_v51 = vld [vmem:[#allocation6 + $0xd0] sm:$0xff] }
 0x603   :  { %806 = vmatpush.msra.mxu2 %v681_v55  ;;  %v917_v55 = vld [vmem:[#allocation6 + $0xc8] sm:$0xff] }
 0x664   :  { %v598_v15 = vpop.xlane.xlu1 %597 }
 0x665   :  { %v608_v16 = vmul.f32 %v1484_v12, %v598_v15 }
 0x667   :  { %v1487_v17 = vsub.f32 %v593_v62, %v608_v16  ;;  %v672_v62 = vld [vmem:[#allocation4 + $0x90] sm:$0xff] }
 0x668   :  { %785 = vmatpush.msra.mxu1 %v672_v62  ;;  %v902_v62 = vld [vmem:[#allocation6 + $0x50] sm:$0xff] }
 0x669   :  { %v612_v18 = vmul.f32 %v1487_v17, %v1487_v17 }
 0x66a   :  { %786 = vmatpush.msra.mxu1 %v668_v2  ;;  %v901_v2 = vld [vmem:[#allocation6 + $0x48] sm:$0xff] }
 0x66b   :  { %614 = vadd.xlane.f32.xlu0 %v612_v18 }
 0x66c   :  { %787 = vmatpush.msra.mxu1 %v664_v6  ;;  %v900_v6 = vld [vmem:[#allocation6 + $0x40] sm:$0xff] }
 0x66e   :  { %788 = vmatpush.msra.mxu1 %v660_v8  ;;  %v899_v8 = vld [vmem:[#allocation6 + $0x38] sm:$0xff] }
 0x670   :  { %789 = vmatpush.msra.mxu1 %v656_v13  ;;  %v898_v13 = vld [vmem:[#allocation6 + $0x30] sm:$0xff] }
 0x67b   :  { %v590_v19 = vpop.f32.mrf.mxu2 }
 0x67c   :  { %v591_v20 = vadd.f32 %v1137_v25, %v590_v19  ;;  %v677_v25 = vld [vmem:[#allocation4 + $0xb8] sm:$0xff] }
 0x67d   :  { %807 = vmatpush.msra.mxu2 %v677_v25  ;;  %v916_v25 = vld [vmem:[#allocation6 + $0xc0] sm:$0xff] }
 0x67e   :  { %v1492_v21 = vadd.f32 %v591_v20, %v1395_v9  ;;  %v698_v9 = vld [vmem:[#allocation4 + $0x160] sm:$0xff] }
 0x67f   :  { %732 = vmatpush.msra.mxu3 %v698_v9  ;;  %808 = vmatpush.msra.mxu2 %v673_v63  ;;  %v915_v63 = vld [vmem:[#allocation6 + $0xb8] sm:$0xff] }
 0x680   :  { %599 = vadd.xlane.f32.xlu2 %v1492_v21 }
 0x681   :  { %733 = vmatpush.msra.mxu3 %v694_v34  ;;  %809 = vmatpush.msra.mxu2 %v669_v3  ;;  %v914_v3 = vld [vmem:[#allocation6 + $0xb0] sm:$0xff] }
 0x683   :  { %734 = vmatpush.msra.mxu3 %v690_v38  ;;  %810 = vmatpush.msra.mxu2 %v665_v7  ;;  %v921_v38 = vld [vmem:[#allocation6 + $0xe8] sm:$0xff] }
 0x684   :  { %v913_v7 = vld [vmem:[#allocation6 + $0xa8] sm:$0xff] }
 0x685   :  { %735 = vmatpush.msra.mxu3 %v686_v43  ;;  %811 = vmatpush.msra.mxu2 %v661_v42  ;;  %v936_v43 = vld [vmem:[#allocation6 + $0x160] sm:$0xff] }
 0x686   :  { %v912_v42 = vld [vmem:[#allocation6 + $0xa0] sm:$0xff] }
 0x687   :  { %736 = vmatpush.msra.mxu3 %v682_v47  ;;  %812 = vmatpush.msra.mxu2 %v657_v14  ;;  %v935_v47 = vld [vmem:[#allocation6 + $0x158] sm:$0xff] }
 0x688   :  { %v911_v14 = vld [vmem:[#allocation6 + $0x98] sm:$0xff] }
 0x689   :  { %737 = vmatpush.msra.mxu3 %v678_v52  ;;  %1029 = vmatpush.msrb.mxu2 %v955_v44  ;;  %v934_v52 = vld [vmem:[#allocation6 + $0x150] sm:$0xff] }
 0x68b   :  { %738 = vmatpush.msra.mxu3 %v674_v57  ;;  %1030 = vmatpush.msrb.mxu2 %v954_v48  ;;  %v933_v57 = vld [vmem:[#allocation6 + $0x148] sm:$0xff] }
 0x68d   :  { %739 = vmatpush.msra.mxu3 %v670_v60  ;;  %1031 = vmatpush.msrb.mxu2 %v953_v53  ;;  %v932_v60 = vld [vmem:[#allocation6 + $0x140] sm:$0xff] }
 0x68f   :  { %740 = vmatpush.msra.mxu3 %v666_v0  ;;  %1032 = vmatpush.msrb.mxu2 %v952_v58  ;;  %v931_v0 = vld [vmem:[#allocation6 + $0x138] sm:$0xff] }
 0x691   :  { %741 = vmatpush.msra.mxu3 %v662_v4  ;;  %1033 = vmatpush.msrb.mxu2 %v951_v61  ;;  %v930_v4 = vld [vmem:[#allocation6 + $0x130] sm:$0xff] }
 0x693   :  { %742 = vmatpush.msra.mxu3 %v658_v49  ;;  %1034 = vmatpush.msrb.mxu2 %v950_v1  ;;  %v929_v49 = vld [vmem:[#allocation6 + $0x128] sm:$0xff] }
 0x695   :  { %743 = vmatpush.msra.mxu3 %v654_v10  ;;  %1035 = vmatpush.msrb.mxu2 %v949_v5  ;;  %v928_v10 = vld [vmem:[#allocation6 + $0x120] sm:$0xff] }
 0x697   :  { %960 = vmatpush.msrb.mxu3 %v907_v40  ;;  %1036 = vmatpush.msrb.mxu2 %v948_v56  ;;  %v941_v40 = vld [vmem:[#allocation6 + $0x188] sm:$0xff] }
 0x699   :  { %961 = vmatpush.msrb.mxu3 %v906_v45  ;;  %1037 = vmatpush.msrb.mxu2 %v947_v11  ;;  %v940_v45 = vld [vmem:[#allocation6 + $0x180] sm:$0xff] }
 0x69b   :  { %962 = vmatpush.msrb.mxu3 %v905_v50 }
 0x69d   :  { %963 = vmatpush.msrb.mxu3 %v904_v54 }
 0x69f   :  { %964 = vmatpush.msrb.mxu3 %v903_v59 }
 0x6a1   :  { %965 = vmatpush.msrb.mxu3 %v902_v62 }
 0x6a3   :  { %966 = vmatpush.msrb.mxu3 %v901_v2 }
 0x6a5   :  { %967 = vmatpush.msrb.mxu3 %v900_v6 }
 0x6a7   :  { %968 = vmatpush.msrb.mxu3 %v899_v8 }
 0x6a9   :  { %969 = vmatpush.msrb.mxu3 %v898_v13 }
 0x6de   :  { %v615_v15 = vpop.xlane.xlu0 %614 }
 0x6df   :  { %v618_v16 = vmul.f32 %v615_v15, %v1484_v12  ;;  %v927_v15 = vld [vmem:[#allocation6 + $0x118] sm:$0xff] }
 0x6e1   :  { %v620_v18 = vadd.f32 1e-12, %v618_v16  ;;  %v946_v16 = vld [vmem:[#allocation6 + $0x1b0] sm:$0xff] }
 0x6e2   :  { %1038 = vmatpush.msrb.mxu2 %v946_v16 }
 0x6e3   :  { %1161 = vrsqrt.f32 %v620_v18  ;;  %vm628_vm4 = vweird.f32 %v620_v18 }
 0x6e9   :  { %v1162_v19 = vpop.eup %1161 }
 0x6ea   :  { %v623_v20 = vmul.f32 %v1162_v19, %v620_v18  ;;  %vm629_vm0 = vweird.f32 %v1162_v19  ;;  %v897_v18 = vld [vmem:[#allocation6 + $0x28] sm:$0xff] }
 0x6eb   :  { %vm630_vm5 = vmor %vm628_vm4, %vm629_vm0  ;;  %970 = vmatpush.msrb.mxu3 %v897_v18 }
 0x6ec   :  { %v624_v22 = vmul.f32 %v1162_v19, %v623_v20 }
 0x6ee   :  { %v625_v23 = vmul.f32 0.5, %v624_v22  ;;  %v926_v22 = vld [vmem:[#allocation6 + $0x110] sm:$0xff] }
 0x6f0   :  { %v626_v24 = vsub.f32 1.5, %v625_v23  ;;  %v945_v23 = vld [vmem:[#allocation6 + $0x1a8] sm:$0xff] }
 0x6f1   :  { %1039 = vmatpush.msrb.mxu2 %v945_v23 }
 0x6f2   :  { %v627_v26 = vmul.f32 %v1162_v19, %v626_v24  ;;  %v896_v24 = vld [vmem:[#allocation6 + $0x20] sm:$0xff] }
 0x6f3   :  { %v600_v28 = vpop.xlane.xlu2 %599  ;;  %971 = vmatpush.msrb.mxu3 %v896_v24 }
 0x6f4   :  { %v631_v29 = vsel %vm630_vm5, %v1162_v19, %v627_v26  ;;  %v609_v30 = vmul.f32 %v1484_v12, %v600_v28  ;;  %v910_v19 = vld [vmem:[#allocation6 + $0x90] sm:$0xff]  ;;  %v909_v28 = vld [vmem:[#allocation6 + $0x88] sm:$0xff] }
 0x6f5   :  { %v642_v9 = vmul.f32 %v631_v29, %v1487_v17  ;;  %v923_v17 = vld [vmem:[#allocation6 + $0xf8] sm:$0xff]  ;;  %v925_v29 = vld [vmem:[#allocation6 + $0x108] sm:$0xff] }
 0x6f6   :  { %v1509_v32 = vsub.f32 %v1492_v21, %v609_v30  ;;  %v939_v21 = vld [vmem:[#allocation6 + $0x178] sm:$0xff]  ;;  %983 = vmatpush.msrb.mxu0 %v923_v17  ;;  %v944_v30 = vld [vmem:[#allocation6 + $0x1a0] sm:$0xff] }
 0x6f7   :  { %v647_v33 = vmul.f32 %v1499_v27, %v642_v9  ;;  %1006 = vmatpush.msrb.mxu1 %v939_v21  ;;  %v895_v9 = vld [vmem:[#allocation6 + $0x18] sm:$0xff]  ;;  %v924_v17 = vld [vmem:[#allocation6 + $0x100] sm:$0xff]  ;;  %1040 = vmatpush.msrb.mxu2 %v944_v30 }
 0x6f8   :  { %v613_v34 = vmul.f32 %v1509_v32, %v1509_v32  ;;  %984 = vmatpush.msrb.mxu0 %v922_v36  ;;  %v943_v21 = vld [vmem:[#allocation6 + $0x198] sm:$0xff]  ;;  %v1525_v36 = vld [vmem:[%s1586_s9] sm:$0xf]  ;;  %972 = vmatpush.msrb.mxu3 %v895_v9 }
 0x6f9   :  { %v1515_v35 = vadd.f32 %v1506_v31, %v647_v33  ;;  %1007 = vmatpush.msrb.mxu1 %v938_v37  ;;  %v908_v33 = vld [vmem:[#allocation6 + $0x80] sm:$0xff]  ;;  %1041 = vmatpush.msrb.mxu2 %v943_v21  ;;  %v894_v37 = vld [vmem:[#allocation6 + $0x10] sm:$0xff]  ;;  %v722_v44 = vperm.slane %v1525_v36, 2  ;;  %v723_v58 = vperm.slane %v1525_v36, 3 }
 0x6fa   :  { %616 = vadd.xlane.f32.xlu1 %v613_v34  ;;  %985 = vmatpush.msrb.mxu0 %v921_v38  ;;  %v942_v38 = vld [vmem:[#allocation6 + $0x190] sm:$0xff] }
 0x6fb   :  { %744 = vmatmul.f32.vlgmr.msra.gmra.mxu3 %v1515_v35  ;;  %767 = vmatmul.f32.vlgmr.msra.gmra.mxu0 %v1515_v35 }
 0x6fc   :  { %790 = vmatmul.f32.vlgmr.msra.gmra.mxu1 %v1515_v35  ;;  %813 = vmatmul.f32.vlgmr.msra.gmra.mxu2 %v1515_v35 }
 0x6fd   :  { %1008 = vmatpush.msrb.mxu1 %v937_v39  ;;  %986 = vmatpush.msrb.mxu0 %v920_v41  ;;  %v893_v39 = vld [vmem:[#allocation6 + $0x8] sm:$0xff]  ;;  %v721_v41 = vperm.slane %v1525_v36, 1 }
 0x6fe   :  { %973 = vmatpush.msrb.mxu3 %v894_v37  ;;  %1042 = vmatpush.msrb.mxu2 %v942_v38 }
 0x6ff   :  { %1009 = vmatpush.msrb.mxu1 %v936_v43  ;;  %987 = vmatpush.msrb.mxu0 %v919_v46  ;;  %v892_v43 = vld [vmem:[#allocation6] sm:$0xff] }
 0x700   :  { %974 = vmatpush.msrb.mxu3 %v893_v39  ;;  %1043 = vmatpush.msrb.mxu2 %v941_v40 }
 0x701   :  { %1010 = vmatpush.msrb.mxu1 %v935_v47  ;;  %988 = vmatpush.msrb.mxu0 %v918_v51 }
 0x702   :  { %975 = vmatpush.msrb.mxu3 %v892_v43  ;;  %1044 = vmatpush.msrb.mxu2 %v940_v45 }
 0x703   :  { %1011 = vmatpush.msrb.mxu1 %v934_v52  ;;  %989 = vmatpush.msrb.mxu0 %v917_v55  ;;  %v720_v55 = vperm.slane %v1525_v36, 0  ;;  %v1140_v36 = vld [vmem:[%s1588_s11] ss:$0 sm:$0xff] }
 0x705   :  { %1012 = vmatpush.msrb.mxu1 %v933_v57  ;;  %990 = vmatpush.msrb.mxu0 %v916_v25 }
 0x707   :  { %1013 = vmatpush.msrb.mxu1 %v932_v60  ;;  %991 = vmatpush.msrb.mxu0 %v915_v63 }
 0x709   :  { %1014 = vmatpush.msrb.mxu1 %v931_v0  ;;  %992 = vmatpush.msrb.mxu0 %v914_v3 }
 0x70b   :  { %1015 = vmatpush.msrb.mxu1 %v930_v4  ;;  %993 = vmatpush.msrb.mxu0 %v913_v7 }
 0x70d   :  { %1016 = vmatpush.msrb.mxu1 %v929_v49  ;;  %994 = vmatpush.msrb.mxu0 %v912_v42 }
 0x70f   :  { %1017 = vmatpush.msrb.mxu1 %v928_v10  ;;  %995 = vmatpush.msrb.mxu0 %v911_v14 }
 0x711   :  { %1018 = vmatpush.msrb.mxu1 %v927_v15  ;;  %996 = vmatpush.msrb.mxu0 %v910_v19 }
 0x713   :  { %1019 = vmatpush.msrb.mxu1 %v926_v22  ;;  %997 = vmatpush.msrb.mxu0 %v909_v28 }
 0x715   :  { %1020 = vmatpush.msrb.mxu1 %v925_v29  ;;  %998 = vmatpush.msrb.mxu0 %v908_v33 }
 0x717   :  { %1021 = vmatpush.msrb.mxu1 %v924_v17 }
 0x76d   :  { %v617_v20 = vpop.xlane.xlu1 %616 }
 0x76e   :  { %v619_v26 = vmul.f32 %v617_v20, %v1484_v12 }
 0x770   :  { %v621_v34 = vadd.f32 1e-12, %v619_v26 }
 0x772   :  { %1163 = vrsqrt.f32 %v621_v34  ;;  %vm638_vm7 = vweird.f32 %v621_v34 }
 0x778   :  { %v1164_v46 = vpop.eup %1163  ;;  %v768_v47 = vpop.f32.mrf.mxu0 }
 0x779   :  { %v633_v48 = vmul.f32 %v1164_v46, %v621_v34  ;;  %v769_v50 = vadd.f32 %v768_v47, %v721_v41  ;;  %v791_v51 = vpop.f32.mrf.mxu1  ;;  %vm639_vm6 = vweird.f32 %v1164_v46 }
 0x77a   :  { %v792_v52 = vadd.f32 %v791_v51, %v722_v44  ;;  %vm640_vm8 = vmor %vm638_vm7, %vm639_vm6 }
 0x77b   :  { %v634_v53 = vmul.f32 %v1164_v46, %v633_v48  ;;  %v821_v54 = vmul.f32 %v769_v50, %v769_v50 }
 0x77c   :  { %v822_v57 = vmul.f32 %v792_v52, %v792_v52 }
 0x77d   :  { %v635_v59 = vmul.f32 0.5, %v634_v53  ;;  %v829_v25 = vmul.f32 %v821_v54, %v769_v50 }
 0x77e   :  { %v830_v60 = vmul.f32 %v822_v57, %v792_v52  ;;  %v745_v61 = vpop.f32.mrf.mxu3 }
 0x77f   :  { %v636_v62 = vsub.f32 1.5, %v635_v59  ;;  %v837_v63 = vmul.f32 0.044715, %v829_v25  ;;  %v746_v0 = vadd.f32 %v745_v61, %v720_v55  ;;  %v814_v1 = vpop.f32.mrf.mxu2 }
 0x780   :  { %v838_v2 = vmul.f32 0.044715, %v830_v60  ;;  %v815_v3 = vadd.f32 %v814_v1, %v723_v58 }
 0x781   :  { %v637_v4 = vmul.f32 %v1164_v46, %v636_v62  ;;  %v845_v5 = vadd.f32 %v837_v63, %v769_v50  ;;  %v820_v6 = vmul.f32 %v746_v0, %v746_v0 }
 0x782   :  { %v846_v7 = vadd.f32 %v838_v2, %v792_v52  ;;  %v823_v49 = vmul.f32 %v815_v3, %v815_v3 }
 0x783   :  { %v641_v56 = vsel %vm640_vm8, %v1164_v46, %v637_v4  ;;  %v853_v8 = vmul.f32 0.7978846, %v845_v5  ;;  %v828_v42 = vmul.f32 %v820_v6, %v746_v0 }
 0x784   :  { %v643_v10 = vmul.f32 %v641_v56, %v1509_v32  ;;  %v854_v11 = vmul.f32 0.7978846, %v846_v7  ;;  %v831_v13 = vmul.f32 %v823_v49, %v815_v3 }
 0x785   :  { %1165 = vtanh.f32 %v853_v8  ;;  %v836_v14 = vmul.f32 0.044715, %v828_v42 }
 0x786   :  { %v648_v15 = vmul.f32 %v1499_v27, %v643_v10  ;;  %1167 = vtanh.f32 %v854_v11  ;;  %v839_v16 = vmul.f32 0.044715, %v831_v13 }
 0x787   :  { %v844_v18 = vadd.f32 %v836_v14, %v746_v0 }
 0x788   :  { %v847_v19 = vadd.f32 %v839_v16, %v815_v3  ;;  %v1542_v20 = vadd.f32 %v1506_v31, %v648_v15 }
 0x789   :  { %v852_v22 = vmul.f32 0.7978846, %v844_v18 }
 0x78a   :  { %v855_v23 = vmul.f32 0.7978846, %v847_v19  ;;  %747 = vmatmul.f32.gmra.mxu3 %v1542_v20  ;;  %770 = vmatmul.f32.gmra.mxu0 %v1542_v20 }
 0x78b   :  { %v1166_v32 = vpop.eup %1165  ;;  %1169 = vtanh.f32 %v852_v22  ;;  %793 = vmatmul.f32.gmra.mxu1 %v1542_v20  ;;  %816 = vmatmul.f32.gmra.mxu2 %v1542_v20 }
 0x78c   :  { %v1168_v27 = vpop.eup %1167  ;;  %1171 = vtanh.f32 %v855_v23  ;;  %v869_v24 = vadd.f32 1.0, %v1166_v32 }
 0x78d   :  { %v870_v26 = vadd.f32 1.0, %v1168_v27 }
 0x78e   :  { %v877_v28 = vmul.f32 0.5, %v869_v24 }
 0x78f   :  { %v878_v29 = vmul.f32 0.5, %v870_v26 }
 0x790   :  { %v885_v31 = vmul.f32 %v877_v28, %v769_v50 }
 0x791   :  { %v1170_v30 = vpop.eup %1169  ;;  %v886_v9 = vmul.f32 %v878_v29, %v792_v52 }
 0x792   :  { %v1172_v33 = vpop.eup %1171  ;;  %999 = vmatmul.f32.vlgmr.msrb.gmra.mxu0 %v885_v31  ;;  %v868_v34 = vadd.f32 1.0, %v1170_v30 }
 0x793   :  { %1022 = vmatmul.f32.vlgmr.msrb.gmra.mxu1 %v886_v9  ;;  %v871_v17 = vadd.f32 1.0, %v1172_v33 }
 0x794   :  { %v876_v21 = vmul.f32 0.5, %v868_v34 }
 0x795   :  { %v879_v37 = vmul.f32 0.5, %v871_v17 }
 0x796   :  { %v884_v38 = vmul.f32 %v876_v21, %v746_v0 }
 0x797   :  { %v887_v39 = vmul.f32 %v879_v37, %v815_v3 }
 0x798   :  { %976 = vmatmul.f32.vlgmr.msrb.gmra.mxu3 %v884_v38 }
 0x799   :  { %1045 = vmatmul.f32.vlgmr.msrb.gmra.mxu2 %v887_v39 }
 0x807   :  { %v771_v40 = vpop.f32.mrf.mxu0 }
 0x808   :  { %v772_v43 = vadd.f32 %v771_v40, %v721_v41  ;;  %v794_v45 = vpop.f32.mrf.mxu1 }
 0x809   :  { %v795_v46 = vadd.f32 %v794_v45, %v722_v44 }
 0x80a   :  { %v825_v47 = vmul.f32 %v772_v43, %v772_v43 }
 0x80b   :  { %v826_v48 = vmul.f32 %v795_v46, %v795_v46 }
 0x80c   :  { %v833_v50 = vmul.f32 %v825_v47, %v772_v43 }
 0x80d   :  { %v834_v51 = vmul.f32 %v826_v48, %v795_v46  ;;  %v748_v52 = vpop.f32.mrf.mxu3 }
 0x80e   :  { %v749_v53 = vadd.f32 %v748_v52, %v720_v55  ;;  %v817_v54 = vpop.f32.mrf.mxu2  ;;  %v841_v57 = vmul.f32 0.044715, %v833_v50 }
 0x80f   :  { %v818_v59 = vadd.f32 %v817_v54, %v723_v58  ;;  %v842_v25 = vmul.f32 0.044715, %v834_v51  ;;  %v1000_v10 = vpop.f32.mrf.mxu0 }
 0x810   :  { %v824_v60 = vmul.f32 %v749_v53, %v749_v53  ;;  %v849_v41 = vadd.f32 %v841_v57, %v772_v43  ;;  %v1023_v15 = vpop.f32.mrf.mxu1 }
 0x811   :  { %v827_v61 = vmul.f32 %v818_v59, %v818_v59  ;;  %v850_v62 = vadd.f32 %v842_v25, %v795_v46 }
 0x812   :  { %v832_v63 = vmul.f32 %v824_v60, %v749_v53  ;;  %v857_v44 = vmul.f32 0.7978846, %v849_v41  ;;  %v1141_v60 = vld [vmem:[%s1589_s12] ss:$0 sm:$0xff] }
 0x813   :  { %v835_v0 = vmul.f32 %v827_v61, %v818_v59  ;;  %v858_v1 = vmul.f32 0.7978846, %v850_v62  ;;  %v1142_v62 = vld [vmem:[%s1590_s13] ss:$0 sm:$0xff] }
 0x814   :  { %1173 = vtanh.f32 %v857_v44  ;;  %v840_v2 = vmul.f32 0.044715, %v832_v63 }
 0x815   :  { %1175 = vtanh.f32 %v858_v1  ;;  %v843_v3 = vmul.f32 0.044715, %v835_v0 }
 0x816   :  { %v848_v4 = vadd.f32 %v840_v2, %v749_v53 }
 0x817   :  { %v851_v55 = vadd.f32 %v843_v3, %v818_v59 }
 0x818   :  { %v856_v58 = vmul.f32 0.7978846, %v848_v4 }
 0x819   :  { %v859_v5 = vmul.f32 0.7978846, %v851_v55 }
 0x81a   :  { %v1174_v6 = vpop.eup %1173  ;;  %1177 = vtanh.f32 %v856_v58 }
 0x81b   :  { %v1176_v7 = vpop.eup %1175  ;;  %v977_v49 = vpop.f32.mrf.mxu3  ;;  %v873_v56 = vadd.f32 1.0, %v1174_v6  ;;  %1179 = vtanh.f32 %v859_v5 }
 0x81c   :  { %v978_v8 = vadd.f32 %v1140_v36, %v977_v49  ;;  %v874_v42 = vadd.f32 1.0, %v1176_v7  ;;  %v1046_v32 = vpop.f32.mrf.mxu2 }
 0x81d   :  { %v881_v11 = vmul.f32 0.5, %v873_v56 }
 0x81e   :  { %v1001_v13 = vadd.f32 %v1000_v10, %v978_v8  ;;  %v882_v14 = vmul.f32 0.5, %v874_v42 }
 0x81f   :  { %v889_v16 = vmul.f32 %v881_v11, %v772_v43 }
 0x820   :  { %v1178_v18 = vpop.eup %1177  ;;  %v1024_v19 = vadd.f32 %v1023_v15, %v1001_v13  ;;  %v890_v22 = vmul.f32 %v882_v14, %v795_v46 }
 0x821   :  { %v1180_v23 = vpop.eup %1179  ;;  %1002 = vmatmul.f32.gmra.mxu0 %v889_v16  ;;  %v872_v27 = vadd.f32 1.0, %v1178_v18 }
 0x822   :  { %v1047_v24 = vadd.f32 %v1046_v32, %v1024_v19  ;;  %1025 = vmatmul.f32.gmra.mxu1 %v890_v22  ;;  %v875_v26 = vadd.f32 1.0, %v1180_v23 }
 0x823   :  { %v880_v28 = vmul.f32 0.5, %v872_v27 }
 0x824   :  { %v1052_v29 = vadd.f32 %v1047_v24, %v1515_v35  ;;  %v883_v31 = vmul.f32 0.5, %v875_v26 }
 0x825   :  { %v888_v30 = vmul.f32 %v880_v28, %v749_v53 }
 0x826   :  { %1056 = vadd.xlane.f32.xlu1 %v1052_v29  ;;  %v891_v9 = vmul.f32 %v883_v31, %v818_v59 }
 0x827   :  { %979 = vmatmul.f32.gmra.mxu3 %v888_v30 }
 0x828   :  { %1048 = vmatmul.f32.gmra.mxu2 %v891_v9 }
 0x899   :  { %v1057_v33 = vpop.xlane.xlu1 %1056 }
 0x89a   :  { %v1060_v34 = vmul.f32 %v1057_v33, %v1484_v12 }
 0x89c   :  { %v1062_v17 = vsub.f32 %v1052_v29, %v1060_v34 }
 0x89e   :  { %v1064_v21 = vmul.f32 %v1062_v17, %v1062_v17  ;;  %v1003_v39 = vpop.f32.mrf.mxu0 }
 0x89f   :  { %v1026_v43 = vpop.f32.mrf.mxu1 }
 0x8a0   :  { %1066 = vadd.xlane.f32.xlu0 %v1064_v21 }
 0x8aa   :  { %v980_v37 = vpop.f32.mrf.mxu3 }
 0x8ab   :  { %v981_v38 = vadd.f32 %v1140_v36, %v980_v37  ;;  %v1049_v46 = vpop.f32.mrf.mxu2 }
 0x8ad   :  { %v1004_v40 = vadd.f32 %v1003_v39, %v981_v38 }
 0x8af   :  { %v1027_v45 = vadd.f32 %v1026_v43, %v1004_v40 }
 0x8b1   :  { %v1050_v35 = vadd.f32 %v1049_v46, %v1027_v45 }
 0x8b3   :  { %v1053_v47 = vadd.f32 %v1050_v35, %v1542_v20 }
 0x8b5   :  { %1058 = vadd.xlane.f32.xlu2 %v1053_v47 }
 0x913   :  { %v1067_v48 = vpop.xlane.xlu0 %1066 }
 0x914   :  { %v1070_v50 = vmul.f32 %v1067_v48, %v1484_v12 }
 0x916   :  { %v1072_v51 = vadd.f32 1e-12, %v1070_v50 }
 0x918   :  { %1181 = vrsqrt.f32 %v1072_v51  ;;  %vm1080_vm10 = vweird.f32 %v1072_v51 }
 0x91e   :  { %v1182_v52 = vpop.eup %1181 }
 0x91f   :  { %v1075_v53 = vmul.f32 %v1182_v52, %v1072_v51  ;;  %vm1081_vm9 = vweird.f32 %v1182_v52 }
 0x920   :  { %vm1082_vm11 = vmor %vm1080_vm10, %vm1081_vm9 }
 0x921   :  { %v1076_v54 = vmul.f32 %v1182_v52, %v1075_v53 }
 0x923   :  { %v1077_v57 = vmul.f32 0.5, %v1076_v54 }
 0x925   :  { %v1078_v59 = vsub.f32 1.5, %v1077_v57 }
 0x927   :  { %v1079_v25 = vmul.f32 %v1182_v52, %v1078_v59 }
 0x928   :  { %v1059_v20 = vpop.xlane.xlu2 %1058 }
 0x929   :  { %v1083_v41 = vsel %vm1082_vm11, %v1182_v52, %v1079_v25  ;;  %v1061_v61 = vmul.f32 %v1059_v20, %v1484_v12 }
 0x92a   :  { %v1094_v63 = vmul.f32 %v1083_v41, %v1062_v17 }
 0x92b   :  { %v1063_v44 = vsub.f32 %v1053_v47, %v1061_v61 }
 0x92c   :  { %v1099_v0 = vmul.f32 %v1141_v60, %v1094_v63 }
 0x92d   :  { %v1065_v1 = vmul.f32 %v1063_v44, %v1063_v44 }
 0x92e   :  { %v1104_v2 = vadd.f32 %v1142_v62, %v1099_v0 }
 0x92f   :  { %1068 = vadd.xlane.f32.xlu1 %v1065_v1 }
 0x930   :  { %1106 = vst [vmem:[%s1591_s14] sm:$0xff] %v1104_v2 }
 0x9a2   :  { %v1069_v3 = vpop.xlane.xlu1 %1068 }
 0x9a3   :  { %v1071_v4 = vmul.f32 %v1069_v3, %v1484_v12 }
 0x9a5   :  { %v1073_v55 = vadd.f32 1e-12, %v1071_v4 }
 0x9a7   :  { %1183 = vrsqrt.f32 %v1073_v55  ;;  %vm1090_vm13 = vweird.f32 %v1073_v55 }
 0x9ad   :  { %v1184_v36 = vpop.eup %1183 }
 0x9ae   :  { %v1085_v58 = vmul.f32 %v1184_v36, %v1073_v55  ;;  %vm1091_vm12 = vweird.f32 %v1184_v36 }
 0x9af   :  { %vm1092_vm14 = vmor %vm1090_vm13, %vm1091_vm12 }
 0x9b0   :  { %v1086_v5 = vmul.f32 %v1184_v36, %v1085_v58 }
 0x9b2   :  { %v1087_v6 = vmul.f32 0.5, %v1086_v5 }
 0x9b4   :  { %v1088_v7 = vsub.f32 1.5, %v1087_v6 }
 0x9b6   :  { %v1089_v49 = vmul.f32 %v1184_v36, %v1088_v7 }
 0x9b8   :  { %v1093_v56 = vsel %vm1092_vm14, %v1184_v36, %v1089_v49 }
 0x9b9   :  { %v1095_v8 = vmul.f32 %v1093_v56, %v1063_v44 }
 0x9bb   :  { %v1100_v42 = vmul.f32 %v1141_v60, %v1095_v8 }
 0x9bd   :  { %v1105_v10 = vadd.f32 %v1142_v62, %v1100_v42 }
 0x9bf   :  { %1107 = vst [vmem:[%s1591_s14 + $0x8] sm:$0xff] %v1105_v10 }
 0x9c0   :  { %1112 = vsyncpa [#allocation3], 1 }
 0x9c1   :  { %1113 = vsyncpa [#allocation5], 1 }

// kernel: forward.6
= control target key start
LH: loop header
LB: loop body
LE: loop exit
PB: predicated region body
PF: predicated region fallthrough
CT: control target
= control target key end

     0   :  { %19 = vsyncpa [#allocation3], 0  ;;  %s1577_s0 = inlined_call_operand.vmem [shape: f32[16,128], index: 0, kind: input, shape index: {}]   ;;  %s1578_s1 = inlined_call_operand.vmem [shape: f32[2,8], index: 1, kind: input, shape index: {}]   ;;  %s1579_s2 = inlined_call_operand.hbm [shape: f32[128,384], index: 2, kind: input, shape index: {}]   ;;  %s1580_s3 = inlined_call_operand.vmem [shape: f32[1,384], index: 3, kind: input, shape index: {}]   ;;  %s1581_s4 = inlined_call_operand.hbm [shape: f32[128,128], index: 4, kind: input, shape index: {}]   ;;  %s1582_s5 = inlined_call_operand.vmem [shape: f32[1,128], index: 5, kind: input, shape index: {}]   ;;  %s1583_s6 = inlined_call_operand.vmem [shape: f32[1,128], index: 6, kind: input, shape index: {}]   ;;  %s1584_s7 = inlined_call_operand.vmem [shape: f32[1,128], index: 7, kind: input, shape index: {}]   ;;  %s1585_s8 = inlined_call_operand.hbm [shape: f32[128,512], index: 8, kind: input, shape index: {}]   ;;  %s1586_s9 = inlined_call_operand.vmem [shape: f32[1,512], index: 9, kind: input, shape index: {}]   ;;  %s1587_s10 = inlined_call_operand.hbm [shape: f32[512,128], index: 10, kind: input, shape index: {}]   ;;  %s1588_s11 = inlined_call_operand.vmem [shape: f32[1,128], index: 11, kind: input, shape index: {}]   ;;  %s1589_s12 = inlined_call_operand.vmem [shape: f32[1,128], index: 12, kind: input, shape index: {}]   ;;  %s1590_s13 = inlined_call_operand.vmem [shape: f32[1,128], index: 13, kind: input, shape index: {}]   ;;  %s1591_s14 = inlined_call_operand.vmem [shape: f32[16,128], index: 14, kind: output, shape index: {}]  }
   0x1   :  { %20 = vsyncpa [#allocation5], 0  ;;  %s45_s15 = sshll.u32 %s1581_s4, 4  ;;  %s46_s15 = int_to_ptr.hbm [resolvable:$true] %s45_s15 }
   0x2   :  { %21 = vsyncpa [#allocation8], 0  ;;  %s1305_s16 = smov [#allocation4]   ;;  %s30_s20 = sshll.u32 %s1579_s2, 4  ;;  %s31_s20 = int_to_ptr.hbm [resolvable:$true] %s30_s20 }
   0x3   :  { %s47_s17 = sshll.u32 %s1305_s16, 4  ;;  %s1306_s21 = smov 128   ;;  %s48_s17 = int_to_ptr.vmem [resolvable:$true] %s47_s17 }
   0x4   :  { %s1307_s22 = smov 8   ;;  %s1308_s23 = smov [#allocation2]  }
   0x5   :  { %53 = dma.hbm_to_vmem [thread:$0]  %s46_s15, 2048, %s48_s17, [#allocation5], %s1306_s21, %s1306_s21, %s1307_s22  }
   0x6   :  { %s32_s24 = sshll.u32 %s1308_s23, 4  ;;  %s1309_s25 = smov 384   ;;  %s33_s24 = int_to_ptr.vmem [resolvable:$true] %s32_s24 }
   0x7   :  { %s1310_s26 = smov 24   ;;  %s64_s28 = sshll.u32 %s1585_s8, 4  ;;  %s65_s28 = int_to_ptr.hbm [resolvable:$true] %s64_s28 }
   0x8   :  { %38 = dma.hbm_to_vmem [thread:$0]  %s31_s20, 6144, %s33_s24, [#allocation3], %s1309_s25, %s1309_s25, %s1310_s26  }
   0x9   :  { %s1311_s29 = smov [#allocation6]   ;;  %s79_s18 = sshll.u32 %s1587_s10, 4  ;;  %s80_s18 = int_to_ptr.hbm [resolvable:$true] %s79_s18 }
   0xa   :  { %s66_s30 = sshll.u32 %s1311_s29, 4  ;;  %s1312_s15 = smov 512   ;;  %s67_s30 = int_to_ptr.vmem [resolvable:$true] %s66_s30 }
   0xb   :  { %s1313_s17 = smov 32   ;;  %s1314_s19 = smov [#allocation7]  }
   0xc   :  { %72 = dma.hbm_to_vmem [thread:$0]  %s65_s28, 8192, %s67_s30, [#allocation5], %s1312_s15, %s1312_s15, %s1313_s17  }
   0xd   :  { %s81_s23 = sshll.u32 %s1314_s19, 4  ;;  %s82_s23 = int_to_ptr.vmem [resolvable:$true] %s81_s23 }
   0xe   :  { %87 = dma.hbm_to_vmem [thread:$0]  %s80_s18, 8192, %s82_s23, [#allocation8], %s1306_s21, %s1306_s21, %s1307_s22  }
   0xf   :  { %1299 = dma.done.wait [#allocation3], 6144  }
  0x10   :  { %1300 = vsyncadd [#allocation3], 4294961152 }
  0x11   :  { %1301 = dma.done.wait [#allocation5], 10240  }
  0x12   :  { %1302 = vsyncadd [#allocation5], 4294957056 }
  0x13   :  { %1303 = dma.done.wait [#allocation8], 8192  }
  0x14   :  { %1304 = vsyncadd [#allocation8], 4294959104  ;;  %v158_v0 = vld [vmem:[#allocation2 + $0x170] sm:$0xff]  ;;  %v155_v1 = vld [vmem:[#allocation2 + $0x158] sm:$0xff]  ;;  %vm240_vm0 = vcmask 523264   ;;  %s1315_s22 = smov 64  }
  0x15   :  { %v157_v2 = vld [vmem:[#allocation2 + $0x168] sm:$0xff]  ;;  %191 = vmatpush.msra.mxu1 %v158_v0  ;;  %v154_v3 = vld [vmem:[#allocation2 + $0x150] sm:$0xff]  ;;  %v152_v4 = vld [vmem:[#allocation2 + $0x140] sm:$0xff]  ;;  %vm270_vm1 = vcmask 64512  }
  0x16   :  { %168 = vmatpush.msra.mxu0 %v157_v2  ;;  %v151_v5 = vld [vmem:[#allocation2 + $0x138] sm:$0xff]  ;;  %v149_v6 = vld [vmem:[#allocation2 + $0x128] sm:$0xff]  ;;  %v148_v7 = vld [vmem:[#allocation2 + $0x120] sm:$0xff] }
  0x17   :  { %192 = vmatpush.msra.mxu1 %v155_v1  ;;  %v146_v8 = vld [vmem:[#allocation2 + $0x110] sm:$0xff]  ;;  %v145_v9 = vld [vmem:[#allocation2 + $0x108] sm:$0xff]  ;;  %v143_v10 = vld [vmem:[#allocation2 + $0xf8] sm:$0xff] }
  0x18   :  { %169 = vmatpush.msra.mxu0 %v154_v3  ;;  %v142_v11 = vld [vmem:[#allocation2 + $0xf0] sm:$0xff]  ;;  %v140_v12 = vld [vmem:[#allocation2 + $0xe0] sm:$0xff]  ;;  %v139_v13 = vld [vmem:[#allocation2 + $0xd8] sm:$0xff] }
  0x19   :  { %193 = vmatpush.msra.mxu1 %v152_v4  ;;  %v159_v14 = vld [vmem:[#allocation2 + $0x178] sm:$0xff]  ;;  %v156_v15 = vld [vmem:[#allocation2 + $0x160] sm:$0xff]  ;;  %v137_v16 = vld [vmem:[#allocation2 + $0xc8] sm:$0xff] }
  0x1a   :  { %170 = vmatpush.msra.mxu0 %v151_v5  ;;  %v136_v17 = vld [vmem:[#allocation2 + $0xc0] sm:$0xff]  ;;  %214 = vmatpush.msra.mxu2 %v159_v14  ;;  %v153_v18 = vld [vmem:[#allocation2 + $0x148] sm:$0xff]  ;;  %v134_v19 = vld [vmem:[#allocation2 + $0xb0] sm:$0xff] }
  0x1b   :  { %194 = vmatpush.msra.mxu1 %v149_v6  ;;  %v133_v20 = vld [vmem:[#allocation2 + $0xa8] sm:$0xff]  ;;  %v131_v21 = vld [vmem:[#allocation2 + $0x98] sm:$0xff]  ;;  %v150_v22 = vld [vmem:[#allocation2 + $0x130] sm:$0xff] }
  0x1c   :  { %171 = vmatpush.msra.mxu0 %v148_v7  ;;  %215 = vmatpush.msra.mxu2 %v156_v15  ;;  %v128_v23 = vld [vmem:[#allocation2 + $0x80] sm:$0xff]  ;;  %v130_v24 = vld [vmem:[#allocation2 + $0x90] sm:$0xff]  ;;  %v127_v25 = vld [vmem:[#allocation2 + $0x78] sm:$0xff] }
  0x1d   :  { %195 = vmatpush.msra.mxu1 %v146_v8  ;;  %v147_v26 = vld [vmem:[#allocation2 + $0x118] sm:$0xff]  ;;  %v144_v27 = vld [vmem:[#allocation2 + $0x100] sm:$0xff]  ;;  %v125_v28 = vld [vmem:[#allocation2 + $0x68] sm:$0xff] }
  0x1e   :  { %172 = vmatpush.msra.mxu0 %v145_v9  ;;  %216 = vmatpush.msra.mxu2 %v153_v18  ;;  %v124_v29 = vld [vmem:[#allocation2 + $0x60] sm:$0xff]  ;;  %v141_v30 = vld [vmem:[#allocation2 + $0xe8] sm:$0xff]  ;;  %v122_v31 = vld [vmem:[#allocation2 + $0x50] sm:$0xff] }
  0x1f   :  { %196 = vmatpush.msra.mxu1 %v143_v10  ;;  %v121_v32 = vld [vmem:[#allocation2 + $0x48] sm:$0xff]  ;;  %v138_v33 = vld [vmem:[#allocation2 + $0xd0] sm:$0xff]  ;;  %v119_v34 = vld [vmem:[#allocation2 + $0x38] sm:$0xff] }
  0x20   :  { %173 = vmatpush.msra.mxu0 %v142_v11  ;;  %217 = vmatpush.msra.mxu2 %v150_v22  ;;  %v118_v35 = vld [vmem:[#allocation2 + $0x30] sm:$0xff]  ;;  %v135_v36 = vld [vmem:[#allocation2 + $0xb8] sm:$0xff]  ;;  %v116_v37 = vld [vmem:[#allocation2 + $0x20] sm:$0xff] }
  0x21   :  { %197 = vmatpush.msra.mxu1 %v140_v12  ;;  %v115_v38 = vld [vmem:[#allocation2 + $0x18] sm:$0xff]  ;;  %v132_v39 = vld [vmem:[#allocation2 + $0xa0] sm:$0xff]  ;;  %v113_v40 = vld [vmem:[#allocation2 + $0x8] sm:$0xff] }
  0x22   :  { %174 = vmatpush.msra.mxu0 %v139_v13  ;;  %218 = vmatpush.msra.mxu2 %v147_v26  ;;  %v112_v41 = vld [vmem:[#allocation2] sm:$0xff]  ;;  %v129_v43 = vld [vmem:[#allocation2 + $0x88] sm:$0xff]  ;;  %v126_v44 = vld [vmem:[#allocation2 + $0x70] sm:$0xff] }
  0x23   :  { %198 = vmatpush.msra.mxu1 %v137_v16  ;;  %v1407_v42 = vld [vmem:[%s1577_s0] sm:$0xff]  ;;  %v123_v45 = vld [vmem:[#allocation2 + $0x58] sm:$0xff]  ;;  %v117_v47 = vld [vmem:[#allocation2 + $0x28] sm:$0xff] }
  0x24   :  { %175 = vmatpush.msra.mxu0 %v136_v17  ;;  %219 = vmatpush.msra.mxu2 %v144_v27  ;;  %v120_v46 = vld [vmem:[#allocation2 + $0x40] sm:$0xff]  ;;  %v114_v48 = vld [vmem:[#allocation2 + $0x10] sm:$0xff]  ;;  %v1443_v9 = vld [vmem:[%s1577_s0 + $0x8] sm:$0xff] }
  0x25   :  { %199 = vmatpush.msra.mxu1 %v134_v19  ;;  %v1415_v49 = vld [vmem:[%s1580_s3] sm:$0x7] }
  0x26   :  { %176 = vmatpush.msra.mxu0 %v133_v20  ;;  %220 = vmatpush.msra.mxu2 %v141_v30  ;;  %v163_v50 = vperm.slane %v1415_v49, 1  ;;  %v162_v51 = vperm.slane %v1415_v49, 0  ;;  %v164_v56 = vperm.slane %v1415_v49, 2  ;;  %v237_v60 = vld [vmem:[%s1578_s1] sm:$0x3] }
  0x27   :  { %200 = vmatpush.msra.mxu1 %v131_v21  ;;  %v238_v61 = vsub.f32 1.0, %v237_v60 }
  0x28   :  { %177 = vmatpush.msra.mxu0 %v130_v24  ;;  %221 = vmatpush.msra.mxu2 %v138_v33 }
  0x29   :  { %201 = vmatpush.msra.mxu1 %v128_v23  ;;  %v1435_v62 = vmul.f32 -10000.0, %v238_v61 }
  0x2a   :  { %178 = vmatpush.msra.mxu0 %v127_v25  ;;  %222 = vmatpush.msra.mxu2 %v135_v36 }
  0x2b   :  { %202 = vmatpush.msra.mxu1 %v125_v28  ;;  %v268_v63 = vperm.slane %v1435_v62, 0 }
  0x2c   :  { %179 = vmatpush.msra.mxu0 %v124_v29  ;;  %223 = vmatpush.msra.mxu2 %v132_v39 }
  0x2d   :  { %203 = vmatpush.msra.mxu1 %v122_v31 }
  0x2e   :  { %180 = vmatpush.msra.mxu0 %v121_v32  ;;  %224 = vmatpush.msra.mxu2 %v129_v43  ;;  %v431_v43 = vperm.slane %v1435_v62, 1 }
  0x2f   :  { %204 = vmatpush.msra.mxu1 %v119_v34 }
  0x30   :  { %181 = vmatpush.msra.mxu0 %v118_v35  ;;  %225 = vmatpush.msra.mxu2 %v126_v44 }
  0x31   :  { %205 = vmatpush.msra.mxu1 %v116_v37 }
  0x32   :  { %182 = vmatpush.msra.mxu0 %v115_v38  ;;  %226 = vmatpush.msra.mxu2 %v123_v45 }
  0x33   :  { %206 = vmatpush.msra.mxu1 %v113_v40 }
  0x34   :  { %183 = vmatpush.msra.mxu0 %v112_v41  ;;  %207 = vmatmul.f32.vlgmr.msra.gmra.mxu1 %v1407_v42 }
  0x35   :  { %184 = vmatmul.f32.vlgmr.msra.gmra.mxu0 %v1407_v42  ;;  %227 = vmatpush.msra.mxu2 %v120_v46 }
  0x37   :  { %228 = vmatpush.msra.mxu2 %v117_v47 }
  0x39   :  { %229 = vmatpush.msra.mxu2 %v114_v48 }
  0x3a   :  { %230 = vmatmul.f32.vlgmr.msra.gmra.mxu2 %v1407_v42 }
  0x3c   :  { %210 = vmatmul.f32.gmra.mxu1 %v1443_v9 }
  0x3d   :  { %187 = vmatmul.f32.gmra.mxu0 %v1443_v9 }
  0x42   :  { %233 = vmatmul.f32.gmra.mxu2 %v1443_v9 }
  0xb1   :  { %v208_v52 = vpop.f32.mrf.mxu1 }
  0xb2   :  { %v185_v53 = vpop.f32.mrf.mxu0  ;;  %v209_v54 = vadd.f32 %v208_v52, %v163_v50 }
  0xb3   :  { %v186_v55 = vadd.f32 %v185_v53, %v162_v51 }
  0xb4   :  { %320 = vrot.lane.b32.xlu1 %v209_v54, %s1315_s22  ;;  %1131 = vmatpush.xpose.msk.msra.mxu3 %vm240_vm0, %v209_v54 }
  0xb7   :  { %1132 = vmatmul.msk.f32.vlgmr.msra.gmra.mxu3 %vm240_vm0, %v186_v55 }
  0xb9   :  { %v211_v30 = vpop.f32.mrf.mxu1 }
  0xba   :  { %v188_v23 = vpop.f32.mrf.mxu0  ;;  %v212_v31 = vadd.f32 %v211_v30, %v163_v50 }
  0xbb   :  { %v189_v24 = vadd.f32 %v188_v23, %v162_v51  ;;  %v581_v23 = vld [vmem:[#allocation4 + $0x78] sm:$0xff] }
  0xbc   :  { %318 = vrot.lane.b32.xlu1 %v186_v55, %s1315_s22  ;;  %586 = vmatpush.msrb.mxu2 %v581_v23  ;;  %v723_v23 = vld [vmem:[#allocation6 + $0x1a8] sm:$0xff] }
  0xbd   :  { %v231_v57 = vpop.f32.mrf.mxu2 }
  0xbe   :  { %v1428_v58 = vadd.f32 %v231_v57, %v164_v56 }
  0xc0   :  { %313 = vmatpush.msrb.mxu3 %v1428_v58 }
  0xc4   :  { %480 = vrot.lane.b32.xlu1 %v189_v24, %s1315_s22 }
  0xc5   :  { %v234_v60 = vpop.f32.mrf.mxu2 }
  0xc6   :  { %v235_v61 = vadd.f32 %v234_v60, %v164_v56 }
 0x126   :  { %v321_v59 = vpop.permute.xlu1 %320 }
 0x127   :  { %1134 = vmatpush.xpose.msk.msra.mxu3 %vm240_vm0, %v321_v59 }
 0x12e   :  { %v319_v22 = vpop.permute.xlu1 %318 }
 0x136   :  { %v481_v36 = vpop.permute.xlu1 %480 }
 0x13a   :  { %v264_v0 = vpop.f32.mrf.mxu3 }
 0x13b   :  { %v267_v1 = vmul.f32 0.125, %v264_v0 }
 0x13d   :  { %v269_v2 = vadd.f32 %v268_v63, %v267_v1 }
 0x13f   :  { %v271_v3 = vsel %vm270_vm1, %v269_v2, -inf }
 0x140   :  { %272 = vmax.xlane.f32.xlu0 %v271_v3 }
 0x1b3   :  { %v273_v4 = vpop.xlane.xlu0 %272 }
 0x1b4   :  { %v274_v5 = vsub.f32 %v269_v2, %v273_v4 }
 0x1b6   :  { %v275_v6 = vmul.f32 1.442695, %v274_v5 }
 0x1b8   :  { %1161 = vpow2.f32 %v275_v6 }
 0x1be   :  { %v1162_v7 = vpop.eup %1161 }
 0x1bf   :  { %v277_v8 = vsel %vm270_vm1, %v1162_v7, 0.0 }
 0x1c0   :  { %278 = vadd.xlane.f32.xlu0 %v277_v8 }
 0x233   :  { %v279_v10 = vpop.xlane.xlu0 %278 }
 0x234   :  { %1163 = vrcp.f32 %v279_v10  ;;  %v291_v14 = vand.u32 2147483648, %v279_v10  ;;  %v289_v16 = vand.u32 2147483647, %v279_v10  ;;  %vm285_vm3 = vweird.f32 %v279_v10 }
 0x236   :  { %v292_v18 = vor.u32 1.1754944e-38, %v291_v14  ;;  %vm290_vm5 = vcmp.eq.f32.partialorder %v289_v16, 8.507059e+37 }
 0x23a   :  { %v1164_v11 = vpop.eup %1163 }
 0x23b   :  { %v281_v12 = vmul.f32 %v1164_v11, %v279_v10  ;;  %vm286_vm2 = vweird.f32 %v1164_v11 }
 0x23c   :  { %vm287_vm4 = vmor %vm285_vm3, %vm286_vm2 }
 0x23d   :  { %v282_v13 = vsub.f32 1.0, %v281_v12 }
 0x23f   :  { %v283_v15 = vmul.f32 %v1164_v11, %v282_v13 }
 0x241   :  { %v284_v17 = vadd.f32 %v1164_v11, %v283_v15 }
 0x243   :  { %v288_v19 = vsel %vm287_vm4, %v1164_v11, %v284_v17 }
 0x244   :  { %v293_v20 = vsel %vm290_vm5, %v292_v18, %v288_v19 }
 0x245   :  { %v294_v21 = vmul.f32 %v1162_v7, %v293_v20 }
 0x247   :  { %1133 = vmatmul.msk.f32.vlgmr.msrb.gmra.mxu3 %vm270_vm1, %v294_v21 }
 0x24f   :  { %1135 = vmatmul.msk.f32.vlgmr.msra.gmra.mxu3 %vm240_vm0, %v319_v22 }
 0x2ca   :  { %v1451_v25 = vpop.f32.mrf.mxu3 }
 0x2d2   :  { %v343_v26 = vpop.f32.mrf.mxu3 }
 0x2d3   :  { %v346_v27 = vmul.f32 0.125, %v343_v26  ;;  %v579_v26 = vld [vmem:[#allocation4 + $0x68] sm:$0xff] }
 0x2d5   :  { %v347_v28 = vadd.f32 %v346_v27, %v268_v63  ;;  %v578_v27 = vld [vmem:[#allocation4 + $0x60] sm:$0xff] }
 0x2d7   :  { %v348_v29 = vsel %vm270_vm1, %v347_v28, -inf }
 0x2d8   :  { %349 = vmax.xlane.f32.xlu2 %v348_v29  ;;  %v577_v29 = vld [vmem:[#allocation4 + $0x58] sm:$0xff] }
 0x2f0   :  { %482 = vrot.lane.b32.xlu2 %v212_v31, %s1315_s22 }
 0x34b   :  { %v350_v32 = vpop.xlane.xlu2 %349 }
 0x34c   :  { %v351_v33 = vsub.f32 %v347_v28, %v350_v32  ;;  %v575_v32 = vld [vmem:[#allocation4 + $0x48] sm:$0xff] }
 0x34e   :  { %v352_v34 = vmul.f32 1.442695, %v351_v33  ;;  %v574_v33 = vld [vmem:[#allocation4 + $0x40] sm:$0xff] }
 0x350   :  { %1165 = vpow2.f32 %v352_v34  ;;  %v573_v34 = vld [vmem:[#allocation4 + $0x38] sm:$0xff] }
 0x353   :  { %v483_v35 = vpop.permute.xlu2 %482 }
 0x354   :  { %1140 = vmatpush.xpose.msk.msrb.mxu0 %vm240_vm0, %v483_v35  ;;  %v572_v35 = vld [vmem:[#allocation4 + $0x30] sm:$0xff] }
 0x356   :  { %v1166_v37 = vpop.eup %1165 }
 0x357   :  { %1141 = vmatmul.msk.f32.vlgmr.msrb.gmra.mxu0 %vm240_vm0, %v481_v36  ;;  %v354_v38 = vsel %vm270_vm1, %v1166_v37, 0.0  ;;  %v571_v36 = vld [vmem:[#allocation4 + $0x28] sm:$0xff] }
 0x358   :  { %355 = vadd.xlane.f32.xlu0 %v354_v38  ;;  %v569_v38 = vld [vmem:[#allocation4 + $0x18] sm:$0xff] }
 0x36c   :  { %373 = vrot.lane.b32.xlu0 %v1428_v58, %s1315_s22 }
 0x3cb   :  { %v356_v39 = vpop.xlane.xlu0 %355 }
 0x3cc   :  { %1167 = vrcp.f32 %v356_v39  ;;  %v368_v47 = vand.u32 2147483648, %v356_v39  ;;  %v366_v50 = vand.u32 2147483647, %v356_v39  ;;  %vm362_vm7 = vweird.f32 %v356_v39 }
 0x3ce   :  { %v369_v54 = vor.u32 1.1754944e-38, %v368_v47  ;;  %vm367_vm9 = vcmp.eq.f32.partialorder %v366_v50, 8.507059e+37 }
 0x3d2   :  { %v1168_v40 = vpop.eup %1167 }
 0x3d3   :  { %v358_v41 = vmul.f32 %v1168_v40, %v356_v39  ;;  %vm363_vm6 = vweird.f32 %v1168_v40  ;;  %v568_v39 = vld [vmem:[#allocation4 + $0x10] sm:$0xff] }
 0x3d4   :  { %v505_v44 = vpop.f32.mrf.mxu0  ;;  %vm364_vm8 = vmor %vm362_vm7, %vm363_vm6 }
 0x3d5   :  { %v359_v45 = vsub.f32 1.0, %v358_v41  ;;  %v508_v46 = vmul.f32 0.125, %v505_v44  ;;  %v566_v41 = vld [vmem:[#allocation4] sm:$0xff] }
 0x3d7   :  { %v360_v48 = vmul.f32 %v1168_v40, %v359_v45  ;;  %v509_v51 = vadd.f32 %v508_v46, %v431_v43 }
 0x3d9   :  { %v361_v52 = vadd.f32 %v1168_v40, %v360_v48  ;;  %v510_v53 = vsel %vm270_vm1, %v509_v51, -inf }
 0x3da   :  { %511 = vmax.xlane.f32.xlu1 %v510_v53 }
 0x3db   :  { %v365_v55 = vsel %vm364_vm8, %v1168_v40, %v361_v52  ;;  %v567_v40 = vld [vmem:[#allocation4 + $0x8] sm:$0xff] }
 0x3dc   :  { %v370_v57 = vsel %vm367_vm9, %v369_v54, %v365_v55 }
 0x3dd   :  { %v371_v58 = vmul.f32 %v1166_v37, %v370_v57  ;;  %v570_v37 = vld [vmem:[#allocation4 + $0x20] sm:$0xff] }
 0x3de   :  { %v374_v59 = vpop.permute.xlu0 %373 }
 0x3df   :  { %394 = vmatpush.msrb.mxu3 %v374_v59 }
 0x3e0   :  { %1136 = vmatmul.msk.f32.vlgmr.msrb.gmra.mxu3 %vm270_vm1, %v371_v58 }
 0x3e1   :  { %1137 = vmatpush.xpose.msk.msra.mxu3 %vm240_vm0, %v212_v31  ;;  %v576_v31 = vld [vmem:[#allocation4 + $0x50] sm:$0xff] }
 0x3e5   :  { %475 = vmatpush.msrb.mxu3 %v235_v61 }
 0x3e8   :  { %1138 = vmatmul.msk.f32.vlgmr.msra.gmra.mxu3 %vm240_vm0, %v189_v24  ;;  %v580_v24 = vld [vmem:[#allocation4 + $0x70] sm:$0xff] }
 0x3e9   :  { %587 = vmatpush.msrb.mxu2 %v580_v24  ;;  %v724_v24 = vld [vmem:[#allocation6 + $0x1b0] sm:$0xff] }
 0x3eb   :  { %588 = vmatpush.msrb.mxu2 %v579_v26  ;;  %v725_v26 = vld [vmem:[#allocation6 + $0x1b8] sm:$0xff] }
 0x3ed   :  { %589 = vmatpush.msrb.mxu2 %v578_v27  ;;  %v718_v27 = vld [vmem:[#allocation6 + $0x180] sm:$0xff] }
 0x3ef   :  { %590 = vmatpush.msrb.mxu2 %v577_v29  ;;  %v720_v29 = vld [vmem:[#allocation6 + $0x190] sm:$0xff] }
 0x3f1   :  { %591 = vmatpush.msrb.mxu2 %v576_v31  ;;  %v715_v31 = vld [vmem:[#allocation6 + $0x168] sm:$0xff] }
 0x3f3   :  { %535 = vrot.lane.b32.xlu1 %v235_v61, %s1315_s22  ;;  %592 = vmatpush.msrb.mxu2 %v575_v32  ;;  %v716_v32 = vld [vmem:[#allocation6 + $0x170] sm:$0xff] }
 0x3f5   :  { %593 = vmatpush.msrb.mxu2 %v574_v33  ;;  %v717_v33 = vld [vmem:[#allocation6 + $0x178] sm:$0xff] }
 0x3f7   :  { %594 = vmatpush.msrb.mxu2 %v573_v34  ;;  %v710_v34 = vld [vmem:[#allocation6 + $0x140] sm:$0xff] }
 0x3f9   :  { %595 = vmatpush.msrb.mxu2 %v572_v35  ;;  %v711_v35 = vld [vmem:[#allocation6 + $0x148] sm:$0xff] }
 0x3fb   :  { %596 = vmatpush.msrb.mxu2 %v571_v36  ;;  %v712_v36 = vld [vmem:[#allocation6 + $0x150] sm:$0xff] }
 0x3fd   :  { %597 = vmatpush.msrb.mxu2 %v570_v37  ;;  %v713_v37 = vld [vmem:[#allocation6 + $0x158] sm:$0xff] }
 0x3ff   :  { %598 = vmatpush.msrb.mxu2 %v569_v38  ;;  %v706_v38 = vld [vmem:[#allocation6 + $0x120] sm:$0xff] }
 0x401   :  { %599 = vmatpush.msrb.mxu2 %v568_v39  ;;  %v707_v39 = vld [vmem:[#allocation6 + $0x128] sm:$0xff] }
 0x403   :  { %600 = vmatpush.msrb.mxu2 %v567_v40  ;;  %v708_v40 = vld [vmem:[#allocation6 + $0x130] sm:$0xff] }
 0x405   :  { %601 = vmatpush.msrb.mxu2 %v566_v41  ;;  %v709_v41 = vld [vmem:[#allocation6 + $0x138] sm:$0xff] }
 0x44d   :  { %v512_v62 = vpop.xlane.xlu1 %511 }
 0x44e   :  { %v513_v63 = vsub.f32 %v509_v51, %v512_v62 }
 0x450   :  { %v514_v0 = vmul.f32 1.442695, %v513_v63 }
 0x452   :  { %1169 = vpow2.f32 %v514_v0 }
 0x458   :  { %v1170_v1 = vpop.eup %1169 }
 0x459   :  { %v516_v2 = vsel %vm270_vm1, %v1170_v1, 0.0 }
 0x45a   :  { %517 = vadd.xlane.f32.xlu0 %v516_v2  ;;  %v1316_v2 = vmov 128.0  }
 0x463   :  { %v396_v3 = vpop.f32.mrf.mxu3 }
 0x465   :  { %v536_v49 = vpop.permute.xlu1 %535 }
 0x466   :  { %556 = vmatpush.msrb.mxu1 %v536_v49  ;;  %v730_v49 = vld [vmem:[#allocation6 + $0x1e0] sm:$0xff] }
 0x467   :  { %744 = vmatpush.msra.mxu3 %v730_v49  ;;  %v674_v49 = vld [vmem:[#allocation6 + $0x20] sm:$0xff] }
 0x46b   :  { %v427_v4 = vpop.f32.mrf.mxu3 }
 0x46c   :  { %v430_v5 = vmul.f32 0.125, %v427_v4 }
 0x46e   :  { %v432_v6 = vadd.f32 %v431_v43, %v430_v5 }
 0x470   :  { %v433_v7 = vsel %vm270_vm1, %v432_v6, -inf }
 0x471   :  { %434 = vmax.xlane.f32.xlu2 %v433_v7 }
 0x4cd   :  { %v518_v56 = vpop.xlane.xlu0 %517 }
 0x4ce   :  { %1171 = vrcp.f32 %v518_v56  ;;  %v530_v12 = vand.u32 2147483648, %v518_v56  ;;  %v528_v14 = vand.u32 2147483647, %v518_v56  ;;  %vm524_vm11 = vweird.f32 %v518_v56 }
 0x4d0   :  { %v531_v16 = vor.u32 1.1754944e-38, %v530_v12  ;;  %vm529_vm13 = vcmp.eq.f32.partialorder %v528_v14, 8.507059e+37  ;;  %v729_v14 = vld [vmem:[#allocation6 + $0x1d8] sm:$0xff] }
 0x4d4   :  { %v1172_v8 = vpop.eup %1171 }
 0x4d5   :  { %v520_v10 = vmul.f32 %v1172_v8, %v518_v56  ;;  %vm525_vm10 = vweird.f32 %v1172_v8  ;;  %v731_v56 = vld [vmem:[#allocation6 + $0x1e8] sm:$0xff] }
 0x4d6   :  { %vm526_vm12 = vmor %vm524_vm11, %vm525_vm10  ;;  %767 = vmatpush.msra.mxu0 %v731_v56  ;;  %v675_v56 = vld [vmem:[#allocation6 + $0x28] sm:$0xff] }
 0x4d7   :  { %v521_v11 = vsub.f32 1.0, %v520_v10  ;;  %v726_v10 = vld [vmem:[#allocation6 + $0x1c0] sm:$0xff] }
 0x4d8   :  { %745 = vmatpush.msra.mxu3 %v726_v10  ;;  %v670_v10 = vld [vmem:[#allocation6] sm:$0xff] }
 0x4d9   :  { %v522_v13 = vmul.f32 %v1172_v8, %v521_v11  ;;  %v727_v11 = vld [vmem:[#allocation6 + $0x1c8] sm:$0xff] }
 0x4da   :  { %768 = vmatpush.msra.mxu0 %v727_v11  ;;  %v671_v11 = vld [vmem:[#allocation6 + $0x8] sm:$0xff] }
 0x4db   :  { %v523_v15 = vadd.f32 %v1172_v8, %v522_v13  ;;  %v728_v13 = vld [vmem:[#allocation6 + $0x1d0] sm:$0xff] }
 0x4dc   :  { %769 = vmatpush.msra.mxu0 %v723_v23 }
 0x4dd   :  { %v527_v17 = vsel %vm526_vm12, %v1172_v8, %v523_v15  ;;  %v732_v8 = vld [vmem:[#allocation6 + $0x1f0] sm:$0xff] }
 0x4de   :  { %v532_v18 = vsel %vm529_vm13, %v531_v16, %v527_v17  ;;  %790 = vmatpush.msra.mxu1 %v732_v8  ;;  %v676_v8 = vld [vmem:[#allocation6 + $0x30] sm:$0xff] }
 0x4df   :  { %v533_v19 = vmul.f32 %v1170_v1, %v532_v18 }
 0x4e0   :  { %791 = vmatpush.msra.mxu1 %v728_v13  ;;  %v672_v13 = vld [vmem:[#allocation6 + $0x10] sm:$0xff] }
 0x4e1   :  { %1142 = vmatmul.msk.f32.vlgmr.msrb.gmra.mxu1 %vm270_vm1, %v533_v19 }
 0x4e2   :  { %792 = vmatpush.msra.mxu1 %v724_v24 }
 0x4e4   :  { %v435_v20 = vpop.xlane.xlu2 %434  ;;  %793 = vmatpush.msra.mxu1 %v720_v29 }
 0x4e5   :  { %v436_v21 = vsub.f32 %v432_v6, %v435_v20 }
 0x4e6   :  { %794 = vmatpush.msra.mxu1 %v716_v32 }
 0x4e7   :  { %v437_v22 = vmul.f32 1.442695, %v436_v21 }
 0x4e8   :  { %795 = vmatpush.msra.mxu1 %v712_v36  ;;  %v938_v36 = vld [vmem:[#allocation7 + $0xf0] sm:$0xff] }
 0x4e9   :  { %1173 = vpow2.f32 %v437_v22  ;;  %v722_v22 = vld [vmem:[#allocation6 + $0x1a0] sm:$0xff] }
 0x4ea   :  { %746 = vmatpush.msra.mxu3 %v722_v22  ;;  %796 = vmatpush.msra.mxu1 %v708_v40  ;;  %v923_v40 = vld [vmem:[#allocation7 + $0x78] sm:$0xff] }
 0x4ec   :  { %747 = vmatpush.msra.mxu3 %v718_v27  ;;  %v1499_v27 = vld [vmem:[%s1583_s6] ss:$0 sm:$0xff] }
 0x4ef   :  { %v1174_v28 = vpop.eup %1173 }
 0x4f0   :  { %v439_v30 = vsel %vm270_vm1, %v1174_v28, 0.0 }
 0x4f1   :  { %440 = vadd.xlane.f32.xlu2 %v439_v30  ;;  %v721_v30 = vld [vmem:[#allocation6 + $0x198] sm:$0xff] }
 0x509   :  { %400 = vrot.lane.b32.xlu2 %v396_v3, %s1315_s22 }
 0x55e   :  { %v558_v43 = vpop.f32.mrf.mxu1 }
 0x55f   :  { %562 = vrot.lane.b32.xlu0 %v558_v43, %s1315_s22  ;;  %v702_v43 = vld [vmem:[#allocation6 + $0x100] sm:$0xff] }
 0x564   :  { %v441_v44 = vpop.xlane.xlu2 %440 }
 0x565   :  { %1175 = vrcp.f32 %v441_v44  ;;  %v453_v51 = vand.u32 2147483648, %v441_v44  ;;  %v451_v53 = vand.u32 2147483647, %v441_v44  ;;  %vm447_vm15 = vweird.f32 %v441_v44 }
 0x566   :  { %1177 = vrcp.f32 %v1316_v2  ;;  %v684_v2 = vld [vmem:[#allocation6 + $0x70] sm:$0xff] }
 0x567   :  { %v454_v55 = vor.u32 1.1754944e-38, %v453_v51  ;;  %vm452_vm3 = vcmp.eq.f32.partialorder %v451_v53, 8.507059e+37  ;;  %v701_v51 = vld [vmem:[#allocation6 + $0xf8] sm:$0xff]  ;;  %v695_v53 = vld [vmem:[#allocation6 + $0xc8] sm:$0xff] }
 0x56b   :  { %v1176_v45 = vpop.eup %1175 }
 0x56c   :  { %v443_v46 = vmul.f32 %v1176_v45, %v441_v44  ;;  %v401_v47 = vpop.permute.xlu2 %400  ;;  %vm448_vm14 = vweird.f32 %v1176_v45  ;;  %v1178_v3 = vpop.eup %1177  ;;  %v703_v44 = vld [vmem:[#allocation6 + $0x108] sm:$0xff] }
 0x56d   :  { %v403_v48 = vsel %vm240_vm0, %v1451_v25, %v401_v47  ;;  %vm449_vm2 = vmor %vm447_vm15, %vm448_vm14  ;;  %v1155_v25 = vld [vmem:[%s1582_s5] ss:$0 sm:$0xff]  ;;  %v618_v4 = vmul.f32 128.0, %v1178_v3 }
 0x56e   :  { %v444_v50 = vsub.f32 1.0, %v443_v46  ;;  %602 = vmatmul.f32.vlgmr.msrb.gmra.mxu2 %v403_v48  ;;  %v705_v46 = vld [vmem:[#allocation6 + $0x118] sm:$0xff]  ;;  %v698_v47 = vld [vmem:[#allocation6 + $0xe0] sm:$0xff]  ;;  %v699_v48 = vld [vmem:[#allocation6 + $0xe8] sm:$0xff] }
 0x56f   :  { %v619_v5 = vsub.f32 1.0, %v618_v4  ;;  %v678_v4 = vld [vmem:[#allocation6 + $0x40] sm:$0xff] }
 0x570   :  { %v445_v52 = vmul.f32 %v1176_v45, %v444_v50  ;;  %v700_v50 = vld [vmem:[#allocation6 + $0xf0] sm:$0xff] }
 0x571   :  { %v620_v6 = vmul.f32 %v1178_v3, %v619_v5  ;;  %v679_v5 = vld [vmem:[#allocation6 + $0x48] sm:$0xff] }
 0x572   :  { %v446_v54 = vadd.f32 %v1176_v45, %v445_v52  ;;  %v694_v52 = vld [vmem:[#allocation6 + $0xc0] sm:$0xff] }
 0x573   :  { %v621_v7 = vadd.f32 %v1178_v3, %v620_v6  ;;  %v680_v6 = vld [vmem:[#allocation6 + $0x50] sm:$0xff] }
 0x574   :  { %v450_v57 = vsel %vm449_vm2, %v1176_v45, %v446_v54  ;;  %v704_v45 = vld [vmem:[#allocation6 + $0x110] sm:$0xff] }
 0x575   :  { %v455_v58 = vsel %vm452_vm3, %v454_v55, %v450_v57  ;;  %797 = vmatpush.msra.mxu1 %v704_v45  ;;  %v696_v54 = vld [vmem:[#allocation6 + $0xd0] sm:$0xff]  ;;  %v697_v55 = vld [vmem:[#allocation6 + $0xd8] sm:$0xff]  ;;  %v690_v57 = vld [vmem:[#allocation6 + $0xa0] sm:$0xff] }
 0x576   :  { %v456_v59 = vmul.f32 %v1174_v28, %v455_v58  ;;  %v719_v28 = vld [vmem:[#allocation6 + $0x188] sm:$0xff]  ;;  %v922_v45 = vld [vmem:[#allocation7 + $0x70] sm:$0xff] }
 0x577   :  { %770 = vmatpush.msra.mxu0 %v719_v28  ;;  %798 = vmatpush.msra.mxu1 %v700_v50  ;;  %v691_v58 = vld [vmem:[#allocation6 + $0xa8] sm:$0xff] }
 0x578   :  { %1139 = vmatmul.msk.f32.vlgmr.msrb.gmra.mxu3 %vm270_vm1, %v456_v59  ;;  %vm622_vm1 = vweird.f32 %v1178_v3  ;;  %v692_v59 = vld [vmem:[#allocation6 + $0xb0] sm:$0xff]  ;;  %v921_v50 = vld [vmem:[#allocation7 + $0x68] sm:$0xff] }
 0x579   :  { %v1484_v12 = vsel %vm622_vm1, %v1178_v3, %v621_v7  ;;  %771 = vmatpush.msra.mxu0 %v715_v31  ;;  %799 = vmatpush.msra.mxu1 %v696_v54  ;;  %v685_v3 = vld [vmem:[#allocation6 + $0x78] sm:$0xff]  ;;  %v1506_v31 = vld [vmem:[%s1584_s7] ss:$0 sm:$0xff] }
 0x57a   :  { %v681_v7 = vld [vmem:[#allocation6 + $0x58] sm:$0xff]  ;;  %v920_v54 = vld [vmem:[#allocation7 + $0x60] sm:$0xff] }
 0x57b   :  { %772 = vmatpush.msra.mxu0 %v711_v35  ;;  %800 = vmatpush.msra.mxu1 %v692_v59  ;;  %v919_v59 = vld [vmem:[#allocation7 + $0x58] sm:$0xff] }
 0x57d   :  { %773 = vmatpush.msra.mxu0 %v707_v39  ;;  %v953_v39 = vld [vmem:[#allocation7 + $0x168] sm:$0xff] }
 0x57f   :  { %774 = vmatpush.msra.mxu0 %v703_v44  ;;  %v971_v44 = vld [vmem:[#allocation7 + $0x1f8] sm:$0xff] }
 0x581   :  { %775 = vmatpush.msra.mxu0 %v699_v48  ;;  %v970_v48 = vld [vmem:[#allocation7 + $0x1f0] sm:$0xff] }
 0x583   :  { %776 = vmatpush.msra.mxu0 %v695_v53  ;;  %v969_v53 = vld [vmem:[#allocation7 + $0x1e8] sm:$0xff] }
 0x585   :  { %777 = vmatpush.msra.mxu0 %v691_v58  ;;  %v968_v58 = vld [vmem:[#allocation7 + $0x1e0] sm:$0xff] }
 0x5d1   :  { %v563_v63 = vpop.permute.xlu0 %562 }
 0x5f1   :  { %v603_v60 = vpop.f32.mrf.mxu2 }
 0x5f2   :  { %v604_v61 = vadd.f32 %v1155_v25, %v603_v60  ;;  %v686_v60 = vld [vmem:[#allocation6 + $0x80] sm:$0xff] }
 0x5f4   :  { %v609_v62 = vadd.f32 %v604_v61, %v1407_v42  ;;  %v733_v42 = vld [vmem:[#allocation6 + $0x1f8] sm:$0xff]  ;;  %v687_v61 = vld [vmem:[#allocation6 + $0x88] sm:$0xff] }
 0x5f5   :  { %813 = vmatpush.msra.mxu2 %v733_v42  ;;  %778 = vmatpush.msra.mxu0 %v687_v61  ;;  %v677_v42 = vld [vmem:[#allocation6 + $0x38] sm:$0xff] }
 0x5f6   :  { %613 = vadd.xlane.f32.xlu1 %v609_v62  ;;  %v967_v61 = vld [vmem:[#allocation7 + $0x1d8] sm:$0xff] }
 0x5f7   :  { %814 = vmatpush.msra.mxu2 %v729_v14  ;;  %v673_v14 = vld [vmem:[#allocation6 + $0x18] sm:$0xff] }
 0x5f9   :  { %815 = vmatpush.msra.mxu2 %v725_v26 }
 0x5fb   :  { %v477_v0 = vpop.f32.mrf.mxu3  ;;  %816 = vmatpush.msra.mxu2 %v721_v30 }
 0x5fc   :  { %v565_v1 = vsel %vm240_vm0, %v477_v0, %v563_v63  ;;  %v689_v63 = vld [vmem:[#allocation6 + $0x98] sm:$0xff]  ;;  %v682_v0 = vld [vmem:[#allocation6 + $0x60] sm:$0xff] }
 0x5fd   :  { %605 = vmatmul.f32.gmra.mxu2 %v565_v1  ;;  %v683_v1 = vld [vmem:[#allocation6 + $0x68] sm:$0xff] }
 0x5fe   :  { %817 = vmatpush.msra.mxu2 %v717_v33  ;;  %779 = vmatpush.msra.mxu0 %v683_v1  ;;  %v966_v1 = vld [vmem:[#allocation7 + $0x1d0] sm:$0xff] }
 0x600   :  { %818 = vmatpush.msra.mxu2 %v713_v37  ;;  %780 = vmatpush.msra.mxu0 %v679_v5  ;;  %v954_v37 = vld [vmem:[#allocation7 + $0x170] sm:$0xff]  ;;  %v965_v5 = vld [vmem:[#allocation7 + $0x1c8] sm:$0xff] }
 0x602   :  { %819 = vmatpush.msra.mxu2 %v709_v41  ;;  %781 = vmatpush.msra.mxu0 %v675_v56  ;;  %v936_v41 = vld [vmem:[#allocation7 + $0xe0] sm:$0xff] }
 0x603   :  { %v964_v56 = vld [vmem:[#allocation7 + $0x1c0] sm:$0xff] }
 0x604   :  { %820 = vmatpush.msra.mxu2 %v705_v46  ;;  %782 = vmatpush.msra.mxu0 %v671_v11  ;;  %v935_v46 = vld [vmem:[#allocation7 + $0xd8] sm:$0xff] }
 0x605   :  { %v963_v11 = vld [vmem:[#allocation7 + $0x1b8] sm:$0xff] }
 0x606   :  { %821 = vmatpush.msra.mxu2 %v701_v51  ;;  %v934_v51 = vld [vmem:[#allocation7 + $0xd0] sm:$0xff] }
 0x608   :  { %822 = vmatpush.msra.mxu2 %v697_v55  ;;  %v933_v55 = vld [vmem:[#allocation7 + $0xc8] sm:$0xff] }
 0x669   :  { %v614_v15 = vpop.xlane.xlu1 %613 }
 0x66a   :  { %v624_v16 = vmul.f32 %v1484_v12, %v614_v15 }
 0x66c   :  { %v1487_v17 = vsub.f32 %v609_v62, %v624_v16  ;;  %v688_v62 = vld [vmem:[#allocation6 + $0x90] sm:$0xff] }
 0x66d   :  { %801 = vmatpush.msra.mxu1 %v688_v62  ;;  %v918_v62 = vld [vmem:[#allocation7 + $0x50] sm:$0xff] }
 0x66e   :  { %v628_v18 = vmul.f32 %v1487_v17, %v1487_v17 }
 0x66f   :  { %802 = vmatpush.msra.mxu1 %v684_v2  ;;  %v917_v2 = vld [vmem:[#allocation7 + $0x48] sm:$0xff] }
 0x670   :  { %630 = vadd.xlane.f32.xlu0 %v628_v18 }
 0x671   :  { %803 = vmatpush.msra.mxu1 %v680_v6  ;;  %v916_v6 = vld [vmem:[#allocation7 + $0x40] sm:$0xff] }
 0x673   :  { %804 = vmatpush.msra.mxu1 %v676_v8  ;;  %v915_v8 = vld [vmem:[#allocation7 + $0x38] sm:$0xff] }
 0x675   :  { %805 = vmatpush.msra.mxu1 %v672_v13  ;;  %v914_v13 = vld [vmem:[#allocation7 + $0x30] sm:$0xff] }
 0x680   :  { %v606_v19 = vpop.f32.mrf.mxu2 }
 0x681   :  { %v607_v20 = vadd.f32 %v1155_v25, %v606_v19  ;;  %v693_v25 = vld [vmem:[#allocation6 + $0xb8] sm:$0xff] }
 0x682   :  { %823 = vmatpush.msra.mxu2 %v693_v25  ;;  %v932_v25 = vld [vmem:[#allocation7 + $0xc0] sm:$0xff] }
 0x683   :  { %v1492_v21 = vadd.f32 %v607_v20, %v1443_v9  ;;  %v714_v9 = vld [vmem:[#allocation6 + $0x160] sm:$0xff] }
 0x684   :  { %748 = vmatpush.msra.mxu3 %v714_v9  ;;  %824 = vmatpush.msra.mxu2 %v689_v63  ;;  %v931_v63 = vld [vmem:[#allocation7 + $0xb8] sm:$0xff] }
 0x685   :  { %615 = vadd.xlane.f32.xlu2 %v1492_v21 }
 0x686   :  { %749 = vmatpush.msra.mxu3 %v710_v34  ;;  %825 = vmatpush.msra.mxu2 %v685_v3  ;;  %v930_v3 = vld [vmem:[#allocation7 + $0xb0] sm:$0xff] }
 0x688   :  { %750 = vmatpush.msra.mxu3 %v706_v38  ;;  %826 = vmatpush.msra.mxu2 %v681_v7  ;;  %v937_v38 = vld [vmem:[#allocation7 + $0xe8] sm:$0xff] }
 0x689   :  { %v929_v7 = vld [vmem:[#allocation7 + $0xa8] sm:$0xff] }
 0x68a   :  { %751 = vmatpush.msra.mxu3 %v702_v43  ;;  %827 = vmatpush.msra.mxu2 %v677_v42  ;;  %v952_v43 = vld [vmem:[#allocation7 + $0x160] sm:$0xff] }
 0x68b   :  { %v928_v42 = vld [vmem:[#allocation7 + $0xa0] sm:$0xff] }
 0x68c   :  { %752 = vmatpush.msra.mxu3 %v698_v47  ;;  %828 = vmatpush.msra.mxu2 %v673_v14  ;;  %v951_v47 = vld [vmem:[#allocation7 + $0x158] sm:$0xff] }
 0x68d   :  { %v927_v14 = vld [vmem:[#allocation7 + $0x98] sm:$0xff] }
 0x68e   :  { %753 = vmatpush.msra.mxu3 %v694_v52  ;;  %1045 = vmatpush.msrb.mxu2 %v971_v44  ;;  %v950_v52 = vld [vmem:[#allocation7 + $0x150] sm:$0xff] }
 0x690   :  { %754 = vmatpush.msra.mxu3 %v690_v57  ;;  %1046 = vmatpush.msrb.mxu2 %v970_v48  ;;  %v949_v57 = vld [vmem:[#allocation7 + $0x148] sm:$0xff] }
 0x692   :  { %755 = vmatpush.msra.mxu3 %v686_v60  ;;  %1047 = vmatpush.msrb.mxu2 %v969_v53  ;;  %v948_v60 = vld [vmem:[#allocation7 + $0x140] sm:$0xff] }
 0x694   :  { %756 = vmatpush.msra.mxu3 %v682_v0  ;;  %1048 = vmatpush.msrb.mxu2 %v968_v58  ;;  %v947_v0 = vld [vmem:[#allocation7 + $0x138] sm:$0xff] }
 0x696   :  { %757 = vmatpush.msra.mxu3 %v678_v4  ;;  %1049 = vmatpush.msrb.mxu2 %v967_v61  ;;  %v946_v4 = vld [vmem:[#allocation7 + $0x130] sm:$0xff] }
 0x698   :  { %758 = vmatpush.msra.mxu3 %v674_v49  ;;  %1050 = vmatpush.msrb.mxu2 %v966_v1  ;;  %v945_v49 = vld [vmem:[#allocation7 + $0x128] sm:$0xff] }
 0x69a   :  { %759 = vmatpush.msra.mxu3 %v670_v10  ;;  %1051 = vmatpush.msrb.mxu2 %v965_v5  ;;  %v944_v10 = vld [vmem:[#allocation7 + $0x120] sm:$0xff] }
 0x69c   :  { %976 = vmatpush.msrb.mxu3 %v923_v40  ;;  %1052 = vmatpush.msrb.mxu2 %v964_v56  ;;  %v957_v40 = vld [vmem:[#allocation7 + $0x188] sm:$0xff] }
 0x69e   :  { %977 = vmatpush.msrb.mxu3 %v922_v45  ;;  %1053 = vmatpush.msrb.mxu2 %v963_v11  ;;  %v956_v45 = vld [vmem:[#allocation7 + $0x180] sm:$0xff] }
 0x6a0   :  { %978 = vmatpush.msrb.mxu3 %v921_v50 }
 0x6a2   :  { %979 = vmatpush.msrb.mxu3 %v920_v54 }
 0x6a4   :  { %980 = vmatpush.msrb.mxu3 %v919_v59 }
 0x6a6   :  { %981 = vmatpush.msrb.mxu3 %v918_v62 }
 0x6a8   :  { %982 = vmatpush.msrb.mxu3 %v917_v2 }
 0x6aa   :  { %983 = vmatpush.msrb.mxu3 %v916_v6 }
 0x6ac   :  { %984 = vmatpush.msrb.mxu3 %v915_v8 }
 0x6ae   :  { %985 = vmatpush.msrb.mxu3 %v914_v13 }
 0x6e3   :  { %v631_v15 = vpop.xlane.xlu0 %630 }
 0x6e4   :  { %v634_v16 = vmul.f32 %v631_v15, %v1484_v12  ;;  %v943_v15 = vld [vmem:[#allocation7 + $0x118] sm:$0xff] }
 0x6e6   :  { %v636_v18 = vadd.f32 1e-12, %v634_v16  ;;  %v962_v16 = vld [vmem:[#allocation7 + $0x1b0] sm:$0xff] }
 0x6e7   :  { %1054 = vmatpush.msrb.mxu2 %v962_v16 }
 0x6e8   :  { %1179 = vrsqrt.f32 %v636_v18  ;;  %vm644_vm4 = vweird.f32 %v636_v18 }
 0x6ee   :  { %v1180_v19 = vpop.eup %1179 }
 0x6ef   :  { %v639_v20 = vmul.f32 %v1180_v19, %v636_v18  ;;  %vm645_vm0 = vweird.f32 %v1180_v19  ;;  %v913_v18 = vld [vmem:[#allocation7 + $0x28] sm:$0xff] }
 0x6f0   :  { %vm646_vm5 = vmor %vm644_vm4, %vm645_vm0  ;;  %986 = vmatpush.msrb.mxu3 %v913_v18 }
 0x6f1   :  { %v640_v22 = vmul.f32 %v1180_v19, %v639_v20 }
 0x6f3   :  { %v641_v23 = vmul.f32 0.5, %v640_v22  ;;  %v942_v22 = vld [vmem:[#allocation7 + $0x110] sm:$0xff] }
 0x6f5   :  { %v642_v24 = vsub.f32 1.5, %v641_v23  ;;  %v961_v23 = vld [vmem:[#allocation7 + $0x1a8] sm:$0xff] }
 0x6f6   :  { %1055 = vmatpush.msrb.mxu2 %v961_v23 }
 0x6f7   :  { %v643_v26 = vmul.f32 %v1180_v19, %v642_v24  ;;  %v912_v24 = vld [vmem:[#allocation7 + $0x20] sm:$0xff] }
 0x6f8   :  { %v616_v28 = vpop.xlane.xlu2 %615  ;;  %987 = vmatpush.msrb.mxu3 %v912_v24 }
 0x6f9   :  { %v647_v29 = vsel %vm646_vm5, %v1180_v19, %v643_v26  ;;  %v625_v30 = vmul.f32 %v1484_v12, %v616_v28  ;;  %v926_v19 = vld [vmem:[#allocation7 + $0x90] sm:$0xff]  ;;  %v925_v28 = vld [vmem:[#allocation7 + $0x88] sm:$0xff] }
 0x6fa   :  { %v658_v9 = vmul.f32 %v647_v29, %v1487_v17  ;;  %v939_v17 = vld [vmem:[#allocation7 + $0xf8] sm:$0xff]  ;;  %v941_v29 = vld [vmem:[#allocation7 + $0x108] sm:$0xff] }
 0x6fb   :  { %v1509_v32 = vsub.f32 %v1492_v21, %v625_v30  ;;  %v955_v21 = vld [vmem:[#allocation7 + $0x178] sm:$0xff]  ;;  %999 = vmatpush.msrb.mxu0 %v939_v17  ;;  %v960_v30 = vld [vmem:[#allocation7 + $0x1a0] sm:$0xff] }
 0x6fc   :  { %v663_v33 = vmul.f32 %v1499_v27, %v658_v9  ;;  %1022 = vmatpush.msrb.mxu1 %v955_v21  ;;  %v911_v9 = vld [vmem:[#allocation7 + $0x18] sm:$0xff]  ;;  %v940_v17 = vld [vmem:[#allocation7 + $0x100] sm:$0xff]  ;;  %1056 = vmatpush.msrb.mxu2 %v960_v30 }
 0x6fd   :  { %v629_v34 = vmul.f32 %v1509_v32, %v1509_v32  ;;  %1000 = vmatpush.msrb.mxu0 %v938_v36  ;;  %v959_v21 = vld [vmem:[#allocation7 + $0x198] sm:$0xff]  ;;  %v1525_v36 = vld [vmem:[%s1586_s9] sm:$0xf]  ;;  %988 = vmatpush.msrb.mxu3 %v911_v9 }
 0x6fe   :  { %v1515_v35 = vadd.f32 %v1506_v31, %v663_v33  ;;  %1023 = vmatpush.msrb.mxu1 %v954_v37  ;;  %v924_v33 = vld [vmem:[#allocation7 + $0x80] sm:$0xff]  ;;  %1057 = vmatpush.msrb.mxu2 %v959_v21  ;;  %v910_v37 = vld [vmem:[#allocation7 + $0x10] sm:$0xff]  ;;  %v738_v44 = vperm.slane %v1525_v36, 2  ;;  %v739_v58 = vperm.slane %v1525_v36, 3 }
 0x6ff   :  { %632 = vadd.xlane.f32.xlu1 %v629_v34  ;;  %1001 = vmatpush.msrb.mxu0 %v937_v38  ;;  %v958_v38 = vld [vmem:[#allocation7 + $0x190] sm:$0xff] }
 0x700   :  { %760 = vmatmul.f32.vlgmr.msra.gmra.mxu3 %v1515_v35  ;;  %783 = vmatmul.f32.vlgmr.msra.gmra.mxu0 %v1515_v35 }
 0x701   :  { %806 = vmatmul.f32.vlgmr.msra.gmra.mxu1 %v1515_v35  ;;  %829 = vmatmul.f32.vlgmr.msra.gmra.mxu2 %v1515_v35 }
 0x702   :  { %1024 = vmatpush.msrb.mxu1 %v953_v39  ;;  %1002 = vmatpush.msrb.mxu0 %v936_v41  ;;  %v909_v39 = vld [vmem:[#allocation7 + $0x8] sm:$0xff]  ;;  %v737_v41 = vperm.slane %v1525_v36, 1 }
 0x703   :  { %989 = vmatpush.msrb.mxu3 %v910_v37  ;;  %1058 = vmatpush.msrb.mxu2 %v958_v38 }
 0x704   :  { %1025 = vmatpush.msrb.mxu1 %v952_v43  ;;  %1003 = vmatpush.msrb.mxu0 %v935_v46  ;;  %v908_v43 = vld [vmem:[#allocation7] sm:$0xff] }
 0x705   :  { %990 = vmatpush.msrb.mxu3 %v909_v39  ;;  %1059 = vmatpush.msrb.mxu2 %v957_v40 }
 0x706   :  { %1026 = vmatpush.msrb.mxu1 %v951_v47  ;;  %1004 = vmatpush.msrb.mxu0 %v934_v51 }
 0x707   :  { %991 = vmatpush.msrb.mxu3 %v908_v43  ;;  %1060 = vmatpush.msrb.mxu2 %v956_v45 }
 0x708   :  { %1027 = vmatpush.msrb.mxu1 %v950_v52  ;;  %1005 = vmatpush.msrb.mxu0 %v933_v55  ;;  %v736_v55 = vperm.slane %v1525_v36, 0  ;;  %v1158_v36 = vld [vmem:[%s1588_s11] ss:$0 sm:$0xff] }
 0x70a   :  { %1028 = vmatpush.msrb.mxu1 %v949_v57  ;;  %1006 = vmatpush.msrb.mxu0 %v932_v25 }
 0x70c   :  { %1029 = vmatpush.msrb.mxu1 %v948_v60  ;;  %1007 = vmatpush.msrb.mxu0 %v931_v63 }
 0x70e   :  { %1030 = vmatpush.msrb.mxu1 %v947_v0  ;;  %1008 = vmatpush.msrb.mxu0 %v930_v3 }
 0x710   :  { %1031 = vmatpush.msrb.mxu1 %v946_v4  ;;  %1009 = vmatpush.msrb.mxu0 %v929_v7 }
 0x712   :  { %1032 = vmatpush.msrb.mxu1 %v945_v49  ;;  %1010 = vmatpush.msrb.mxu0 %v928_v42 }
 0x714   :  { %1033 = vmatpush.msrb.mxu1 %v944_v10  ;;  %1011 = vmatpush.msrb.mxu0 %v927_v14 }
 0x716   :  { %1034 = vmatpush.msrb.mxu1 %v943_v15  ;;  %1012 = vmatpush.msrb.mxu0 %v926_v19 }
 0x718   :  { %1035 = vmatpush.msrb.mxu1 %v942_v22  ;;  %1013 = vmatpush.msrb.mxu0 %v925_v28 }
 0x71a   :  { %1036 = vmatpush.msrb.mxu1 %v941_v29  ;;  %1014 = vmatpush.msrb.mxu0 %v924_v33 }
 0x71c   :  { %1037 = vmatpush.msrb.mxu1 %v940_v17 }
 0x772   :  { %v633_v20 = vpop.xlane.xlu1 %632 }
 0x773   :  { %v635_v26 = vmul.f32 %v633_v20, %v1484_v12 }
 0x775   :  { %v637_v34 = vadd.f32 1e-12, %v635_v26 }
 0x777   :  { %1181 = vrsqrt.f32 %v637_v34  ;;  %vm654_vm7 = vweird.f32 %v637_v34 }
 0x77d   :  { %v1182_v46 = vpop.eup %1181  ;;  %v784_v47 = vpop.f32.mrf.mxu0 }
 0x77e   :  { %v649_v48 = vmul.f32 %v1182_v46, %v637_v34  ;;  %v785_v50 = vadd.f32 %v784_v47, %v737_v41  ;;  %v807_v51 = vpop.f32.mrf.mxu1  ;;  %vm655_vm6 = vweird.f32 %v1182_v46 }
 0x77f   :  { %v808_v52 = vadd.f32 %v807_v51, %v738_v44  ;;  %vm656_vm8 = vmor %vm654_vm7, %vm655_vm6 }
 0x780   :  { %v650_v53 = vmul.f32 %v1182_v46, %v649_v48  ;;  %v837_v54 = vmul.f32 %v785_v50, %v785_v50 }
 0x781   :  { %v838_v57 = vmul.f32 %v808_v52, %v808_v52 }
 0x782   :  { %v651_v59 = vmul.f32 0.5, %v650_v53  ;;  %v845_v25 = vmul.f32 %v837_v54, %v785_v50 }
 0x783   :  { %v846_v60 = vmul.f32 %v838_v57, %v808_v52  ;;  %v761_v61 = vpop.f32.mrf.mxu3 }
 0x784   :  { %v652_v62 = vsub.f32 1.5, %v651_v59  ;;  %v853_v63 = vmul.f32 0.044715, %v845_v25  ;;  %v762_v0 = vadd.f32 %v761_v61, %v736_v55  ;;  %v830_v1 = vpop.f32.mrf.mxu2 }
 0x785   :  { %v854_v2 = vmul.f32 0.044715, %v846_v60  ;;  %v831_v3 = vadd.f32 %v830_v1, %v739_v58 }
 0x786   :  { %v653_v4 = vmul.f32 %v1182_v46, %v652_v62  ;;  %v861_v5 = vadd.f32 %v853_v63, %v785_v50  ;;  %v836_v6 = vmul.f32 %v762_v0, %v762_v0 }
 0x787   :  { %v862_v7 = vadd.f32 %v854_v2, %v808_v52  ;;  %v839_v49 = vmul.f32 %v831_v3, %v831_v3 }
 0x788   :  { %v657_v56 = vsel %vm656_vm8, %v1182_v46, %v653_v4  ;;  %v869_v8 = vmul.f32 0.7978846, %v861_v5  ;;  %v844_v42 = vmul.f32 %v836_v6, %v762_v0 }
 0x789   :  { %v659_v10 = vmul.f32 %v657_v56, %v1509_v32  ;;  %v870_v11 = vmul.f32 0.7978846, %v862_v7  ;;  %v847_v13 = vmul.f32 %v839_v49, %v831_v3 }
 0x78a   :  { %1183 = vtanh.f32 %v869_v8  ;;  %v852_v14 = vmul.f32 0.044715, %v844_v42 }
 0x78b   :  { %v664_v15 = vmul.f32 %v1499_v27, %v659_v10  ;;  %1185 = vtanh.f32 %v870_v11  ;;  %v855_v16 = vmul.f32 0.044715, %v847_v13 }
 0x78c   :  { %v860_v18 = vadd.f32 %v852_v14, %v762_v0 }
 0x78d   :  { %v863_v19 = vadd.f32 %v855_v16, %v831_v3  ;;  %v1542_v20 = vadd.f32 %v1506_v31, %v664_v15 }
 0x78e   :  { %v868_v22 = vmul.f32 0.7978846, %v860_v18 }
 0x78f   :  { %v871_v23 = vmul.f32 0.7978846, %v863_v19  ;;  %763 = vmatmul.f32.gmra.mxu3 %v1542_v20  ;;  %786 = vmatmul.f32.gmra.mxu0 %v1542_v20 }
 0x790   :  { %v1184_v32 = vpop.eup %1183  ;;  %1187 = vtanh.f32 %v868_v22  ;;  %809 = vmatmul.f32.gmra.mxu1 %v1542_v20  ;;  %832 = vmatmul.f32.gmra.mxu2 %v1542_v20 }
 0x791   :  { %v1186_v27 = vpop.eup %1185  ;;  %1189 = vtanh.f32 %v871_v23  ;;  %v885_v24 = vadd.f32 1.0, %v1184_v32 }
 0x792   :  { %v886_v26 = vadd.f32 1.0, %v1186_v27 }
 0x793   :  { %v893_v28 = vmul.f32 0.5, %v885_v24 }
 0x794   :  { %v894_v29 = vmul.f32 0.5, %v886_v26 }
 0x795   :  { %v901_v31 = vmul.f32 %v893_v28, %v785_v50 }
 0x796   :  { %v1188_v30 = vpop.eup %1187  ;;  %v902_v9 = vmul.f32 %v894_v29, %v808_v52 }
 0x797   :  { %v1190_v33 = vpop.eup %1189  ;;  %1015 = vmatmul.f32.vlgmr.msrb.gmra.mxu0 %v901_v31  ;;  %v884_v34 = vadd.f32 1.0, %v1188_v30 }
 0x798   :  { %1038 = vmatmul.f32.vlgmr.msrb.gmra.mxu1 %v902_v9  ;;  %v887_v17 = vadd.f32 1.0, %v1190_v33 }
 0x799   :  { %v892_v21 = vmul.f32 0.5, %v884_v34 }
 0x79a   :  { %v895_v37 = vmul.f32 0.5, %v887_v17 }
 0x79b   :  { %v900_v38 = vmul.f32 %v892_v21, %v762_v0 }
 0x79c   :  { %v903_v39 = vmul.f32 %v895_v37, %v831_v3 }
 0x79d   :  { %992 = vmatmul.f32.vlgmr.msrb.gmra.mxu3 %v900_v38 }
 0x79e   :  { %1061 = vmatmul.f32.vlgmr.msrb.gmra.mxu2 %v903_v39 }
 0x80c   :  { %v787_v40 = vpop.f32.mrf.mxu0 }
 0x80d   :  { %v788_v43 = vadd.f32 %v787_v40, %v737_v41  ;;  %v810_v45 = vpop.f32.mrf.mxu1 }
 0x80e   :  { %v811_v46 = vadd.f32 %v810_v45, %v738_v44 }
 0x80f   :  { %v841_v47 = vmul.f32 %v788_v43, %v788_v43 }
 0x810   :  { %v842_v48 = vmul.f32 %v811_v46, %v811_v46 }
 0x811   :  { %v849_v50 = vmul.f32 %v841_v47, %v788_v43 }
 0x812   :  { %v850_v51 = vmul.f32 %v842_v48, %v811_v46  ;;  %v764_v52 = vpop.f32.mrf.mxu3 }
 0x813   :  { %v765_v53 = vadd.f32 %v764_v52, %v736_v55  ;;  %v833_v54 = vpop.f32.mrf.mxu2  ;;  %v857_v57 = vmul.f32 0.044715, %v849_v50 }
 0x814   :  { %v834_v59 = vadd.f32 %v833_v54, %v739_v58  ;;  %v858_v25 = vmul.f32 0.044715, %v850_v51  ;;  %v1016_v10 = vpop.f32.mrf.mxu0 }
 0x815   :  { %v840_v60 = vmul.f32 %v765_v53, %v765_v53  ;;  %v865_v41 = vadd.f32 %v857_v57, %v788_v43  ;;  %v1039_v15 = vpop.f32.mrf.mxu1 }
 0x816   :  { %v843_v61 = vmul.f32 %v834_v59, %v834_v59  ;;  %v866_v62 = vadd.f32 %v858_v25, %v811_v46 }
 0x817   :  { %v848_v63 = vmul.f32 %v840_v60, %v765_v53  ;;  %v873_v44 = vmul.f32 0.7978846, %v865_v41  ;;  %v1159_v60 = vld [vmem:[%s1589_s12] ss:$0 sm:$0xff] }
 0x818   :  { %v851_v0 = vmul.f32 %v843_v61, %v834_v59  ;;  %v874_v1 = vmul.f32 0.7978846, %v866_v62  ;;  %v1160_v62 = vld [vmem:[%s1590_s13] ss:$0 sm:$0xff] }
 0x819   :  { %1191 = vtanh.f32 %v873_v44  ;;  %v856_v2 = vmul.f32 0.044715, %v848_v63 }
 0x81a   :  { %1193 = vtanh.f32 %v874_v1  ;;  %v859_v3 = vmul.f32 0.044715, %v851_v0 }
 0x81b   :  { %v864_v4 = vadd.f32 %v856_v2, %v765_v53 }
 0x81c   :  { %v867_v55 = vadd.f32 %v859_v3, %v834_v59 }
 0x81d   :  { %v872_v58 = vmul.f32 0.7978846, %v864_v4 }
 0x81e   :  { %v875_v5 = vmul.f32 0.7978846, %v867_v55 }
 0x81f   :  { %v1192_v6 = vpop.eup %1191  ;;  %1195 = vtanh.f32 %v872_v58 }
 0x820   :  { %v1194_v7 = vpop.eup %1193  ;;  %v993_v49 = vpop.f32.mrf.mxu3  ;;  %v889_v56 = vadd.f32 1.0, %v1192_v6  ;;  %1197 = vtanh.f32 %v875_v5 }
 0x821   :  { %v994_v8 = vadd.f32 %v1158_v36, %v993_v49  ;;  %v890_v42 = vadd.f32 1.0, %v1194_v7  ;;  %v1062_v32 = vpop.f32.mrf.mxu2 }
 0x822   :  { %v897_v11 = vmul.f32 0.5, %v889_v56 }
 0x823   :  { %v1017_v13 = vadd.f32 %v1016_v10, %v994_v8  ;;  %v898_v14 = vmul.f32 0.5, %v890_v42 }
 0x824   :  { %v905_v16 = vmul.f32 %v897_v11, %v788_v43 }
 0x825   :  { %v1196_v18 = vpop.eup %1195  ;;  %v1040_v19 = vadd.f32 %v1039_v15, %v1017_v13  ;;  %v906_v22 = vmul.f32 %v898_v14, %v811_v46 }
 0x826   :  { %v1198_v23 = vpop.eup %1197  ;;  %1018 = vmatmul.f32.gmra.mxu0 %v905_v16  ;;  %v888_v27 = vadd.f32 1.0, %v1196_v18 }
 0x827   :  { %v1063_v24 = vadd.f32 %v1062_v32, %v1040_v19  ;;  %1041 = vmatmul.f32.gmra.mxu1 %v906_v22  ;;  %v891_v26 = vadd.f32 1.0, %v1198_v23 }
 0x828   :  { %v896_v28 = vmul.f32 0.5, %v888_v27 }
 0x829   :  { %v1068_v29 = vadd.f32 %v1063_v24, %v1515_v35  ;;  %v899_v31 = vmul.f32 0.5, %v891_v26 }
 0x82a   :  { %v904_v30 = vmul.f32 %v896_v28, %v765_v53 }
 0x82b   :  { %1072 = vadd.xlane.f32.xlu1 %v1068_v29  ;;  %v907_v9 = vmul.f32 %v899_v31, %v834_v59 }
 0x82c   :  { %995 = vmatmul.f32.gmra.mxu3 %v904_v30 }
 0x82d   :  { %1064 = vmatmul.f32.gmra.mxu2 %v907_v9 }
 0x89e   :  { %v1073_v33 = vpop.xlane.xlu1 %1072 }
 0x89f   :  { %v1076_v34 = vmul.f32 %v1073_v33, %v1484_v12 }
 0x8a1   :  { %v1078_v17 = vsub.f32 %v1068_v29, %v1076_v34 }
 0x8a3   :  { %v1080_v21 = vmul.f32 %v1078_v17, %v1078_v17  ;;  %v1019_v39 = vpop.f32.mrf.mxu0 }
 0x8a4   :  { %v1042_v43 = vpop.f32.mrf.mxu1 }
 0x8a5   :  { %1082 = vadd.xlane.f32.xlu0 %v1080_v21 }
 0x8af   :  { %v996_v37 = vpop.f32.mrf.mxu3 }
 0x8b0   :  { %v997_v38 = vadd.f32 %v1158_v36, %v996_v37  ;;  %v1065_v46 = vpop.f32.mrf.mxu2 }
 0x8b2   :  { %v1020_v40 = vadd.f32 %v1019_v39, %v997_v38 }
 0x8b4   :  { %v1043_v45 = vadd.f32 %v1042_v43, %v1020_v40 }
 0x8b6   :  { %v1066_v35 = vadd.f32 %v1065_v46, %v1043_v45 }
 0x8b8   :  { %v1069_v47 = vadd.f32 %v1066_v35, %v1542_v20 }
 0x8ba   :  { %1074 = vadd.xlane.f32.xlu2 %v1069_v47 }
 0x918   :  { %v1083_v48 = vpop.xlane.xlu0 %1082 }
 0x919   :  { %v1086_v50 = vmul.f32 %v1083_v48, %v1484_v12 }
 0x91b   :  { %v1088_v51 = vadd.f32 1e-12, %v1086_v50 }
 0x91d   :  { %1199 = vrsqrt.f32 %v1088_v51  ;;  %vm1096_vm10 = vweird.f32 %v1088_v51 }
 0x923   :  { %v1200_v52 = vpop.eup %1199 }
 0x924   :  { %v1091_v53 = vmul.f32 %v1200_v52, %v1088_v51  ;;  %vm1097_vm9 = vweird.f32 %v1200_v52 }
 0x925   :  { %vm1098_vm11 = vmor %vm1096_vm10, %vm1097_vm9 }
 0x926   :  { %v1092_v54 = vmul.f32 %v1200_v52, %v1091_v53 }
 0x928   :  { %v1093_v57 = vmul.f32 0.5, %v1092_v54 }
 0x92a   :  { %v1094_v59 = vsub.f32 1.5, %v1093_v57 }
 0x92c   :  { %v1095_v25 = vmul.f32 %v1200_v52, %v1094_v59 }
 0x92d   :  { %v1075_v20 = vpop.xlane.xlu2 %1074 }
 0x92e   :  { %v1099_v41 = vsel %vm1098_vm11, %v1200_v52, %v1095_v25  ;;  %v1077_v61 = vmul.f32 %v1075_v20, %v1484_v12 }
 0x92f   :  { %v1110_v63 = vmul.f32 %v1099_v41, %v1078_v17 }
 0x930   :  { %v1079_v44 = vsub.f32 %v1069_v47, %v1077_v61 }
 0x931   :  { %v1115_v0 = vmul.f32 %v1159_v60, %v1110_v63 }
 0x932   :  { %v1081_v1 = vmul.f32 %v1079_v44, %v1079_v44 }
 0x933   :  { %v1120_v2 = vadd.f32 %v1160_v62, %v1115_v0 }
 0x934   :  { %1084 = vadd.xlane.f32.xlu1 %v1081_v1 }
 0x935   :  { %1122 = vst [vmem:[%s1591_s14] sm:$0xff] %v1120_v2 }
 0x9a7   :  { %v1085_v3 = vpop.xlane.xlu1 %1084 }
 0x9a8   :  { %v1087_v4 = vmul.f32 %v1085_v3, %v1484_v12 }
 0x9aa   :  { %v1089_v55 = vadd.f32 1e-12, %v1087_v4 }
 0x9ac   :  { %1201 = vrsqrt.f32 %v1089_v55  ;;  %vm1106_vm13 = vweird.f32 %v1089_v55 }
 0x9b2   :  { %v1202_v36 = vpop.eup %1201 }
 0x9b3   :  { %v1101_v58 = vmul.f32 %v1202_v36, %v1089_v55  ;;  %vm1107_vm12 = vweird.f32 %v1202_v36 }
 0x9b4   :  { %vm1108_vm14 = vmor %vm1106_vm13, %vm1107_vm12 }
 0x9b5   :  { %v1102_v5 = vmul.f32 %v1202_v36, %v1101_v58 }
 0x9b7   :  { %v1103_v6 = vmul.f32 0.5, %v1102_v5 }
 0x9b9   :  { %v1104_v7 = vsub.f32 1.5, %v1103_v6 }
 0x9bb   :  { %v1105_v49 = vmul.f32 %v1202_v36, %v1104_v7 }
 0x9bd   :  { %v1109_v56 = vsel %vm1108_vm14, %v1202_v36, %v1105_v49 }
 0x9be   :  { %v1111_v8 = vmul.f32 %v1109_v56, %v1079_v44 }
 0x9c0   :  { %v1116_v42 = vmul.f32 %v1159_v60, %v1111_v8 }
 0x9c2   :  { %v1121_v10 = vadd.f32 %v1160_v62, %v1116_v42 }
 0x9c4   :  { %1123 = vst [vmem:[%s1591_s14 + $0x8] sm:$0xff] %v1121_v10 }
 0x9c5   :  { %1128 = vsyncpa [#allocation3], 1 }
 0x9c6   :  { %1129 = vsyncpa [#allocation5], 1 }
 0x9c7   :  { %1130 = vsyncpa [#allocation8], 1 }

</bundles_post_ra>
